<compile_context>
chip_gen: v7x
topology: tpu7x:2x2x1
jax: 0.10.0
libtpu: 0.0.40
codegen_flags: <defaults>
</compile_context>

<pallas_src>
import jax
import jax.numpy as jnp
from jax import lax
from jax.experimental import pallas as pl
from jax.experimental.pallas import tpu as pltpu

EPS = 1e-8


def _visual_conv1d_kernel(x_ref, pv_ref, w1_ref, phc_ref, phr_ref, w2_ref,
                          a_ref, o_ref):
    f32 = jnp.float32
    bf16 = jnp.bfloat16
    NB, V, T = x_ref.shape
    H = w1_ref.shape[0]
    n_v = float(V * T)
    n_h = float(H * T)

    # ----- grid-/batch-invariant parameter folds (tiny: O(H*V)), hoisted -----
    g0 = pv_ref[0:1, :]                              # (1, V)
    b0 = pv_ref[1:2, :]                              # (1, V)
    w1 = w1_ref[...]                                 # (H, V)
    w1g = w1 * g0
    w1g_bf = w1g.astype(bf16)                        # bf16 MXU operand
    sum_w1g = jnp.sum(w1g, axis=1, keepdims=True)    # (H, 1)
    sum_w1b = jnp.sum(w1 * b0, axis=1, keepdims=True)

    g1 = phc_ref[:, 0:1]                             # (H, 1)
    b1 = phc_ref[:, 1:2]
    dw_l = phc_ref[:, 2:3]                           # depthwise tap for t-1
    dw_c = phc_ref[:, 3:4]                           # tap for t
    dw_r = phc_ref[:, 4:5]                           # tap for t+1

    g2 = phr_ref[0:1, :]                             # (1, H)
    b2 = phr_ref[1:2, :]
    w2 = w2_ref[...]                                 # (V, H)
    w2g = w2 * g2
    w2g_bf = w2g.astype(bf16)
    sum_w2g = jnp.sum(w2g, axis=1, keepdims=True)    # (V, 1)
    sum_w2b = jnp.sum(w2 * b2, axis=1, keepdims=True)

    a = a_ref[0, 0]                                  # PReLU scalar (SMEM)
    t_lane = lax.broadcasted_iota(jnp.int32, (1, T), 1)

    # Static unroll over the nb batch elements folded into this grid step:
    # amortizes per-step overhead and lets the scheduler overlap one element's
    # global reductions with another's MXU drain.
    for b in range(NB):
        y = jnp.maximum(x_ref[b].astype(f32), 0.0)   # (V, T) ReLU

        # ---- gLN(V) folded into conv1x1; matmul independent of the stats ----
        # q has no data dependency on mean0/inv0, so the (V,T) reduce overlaps
        # with the MXU push.
        q = jnp.dot(w1g_bf, y.astype(bf16), preferred_element_type=f32)  # (H,T)
        mean0 = jnp.sum(y) / n_v
        ex2_0 = jnp.sum(y * y) / n_v
        inv0 = lax.rsqrt(ex2_0 - mean0 * mean0 + EPS)    # EUP slot
        col0 = sum_w1b - (mean0 * inv0) * sum_w1g        # rank-1 column fix
        h = inv0 * q + col0                              # (H, T)

        # ---- ReLU + gLN(H): applied directly (depthwise conv needs it) ----
        h = jnp.maximum(h, 0.0)
        mean1 = jnp.sum(h) / n_h
        ex2_1 = jnp.sum(h * h) / n_h
        inv1 = lax.rsqrt(ex2_1 - mean1 * mean1 + EPS)
        s1 = g1 * inv1
        hn = h * s1 + (b1 - mean1 * s1)                  # single FMA pass

        # ---- depthwise conv, kernel=3, stride=1, pad=1, groups=H ----
        # Non-negative shifts only: shift=1 -> hn[:, t-1]; shift=T-1 (== -1)
        # -> hn[:, t+1]. Boundaries zeroed with a cheap (1, T) lane mask.
        h_prev = jnp.where(t_lane >= 1, pltpu.roll(hn, shift=1, axis=1), 0.0)
        h_next = jnp.where(t_lane <= T - 2,
                           pltpu.roll(hn, shift=T - 1, axis=1), 0.0)
        z = dw_l * h_prev + dw_c * hn + dw_r * h_next    # (H, T)

        # ---- PReLU (single shared parameter) ----
        z = jnp.where(z >= 0.0, z, a * z)

        # ---- gLN(H) folded into pw_conv; matmul independent of the stats ----
        r = jnp.dot(w2g_bf, z.astype(bf16), preferred_element_type=f32)  # (V,T)
        mean2 = jnp.sum(z) / n_h
        ex2_2 = jnp.sum(z * z) / n_h
        inv2 = lax.rsqrt(ex2_2 - mean2 * mean2 + EPS)
        col2 = sum_w2b - (mean2 * inv2) * sum_w2g
        out = inv2 * r + col2                            # (V, T)

        # ---- residual: re-read x from the resident VMEM block (cheap vld,
        # avoids keeping x live in vregs across the whole body) ----
        o_ref[b] = (out + x_ref[b].astype(f32)).astype(o_ref.dtype)


def _vmem_limit_bytes():
    """Per-generation scoped-VMEM limit (cap on v7x, raise on v5e/v6e)."""
    try:
        kind = jax.devices()[0].device_kind.lower()
    except Exception:
        return None
    if "v7" in kind:
        return 48 * 1024 * 1024    # 64 MiB physical -> leave DMA headroom
    if "v5" in kind or "v6" in kind or "v4" in kind:
        return 96 * 1024 * 1024    # 128 MiB physical -> allow bigger tiles
    return None                    # unknown: keep compiler default


def visual_conv1d(x, params, nb=None):
    """x: (B, V, T) float32. params: dict of weights. Returns (B, V, T)."""
    B, V, T = x.shape
    H = params["w1"].shape[0]
    if nb is None:
        nb = 2 if B % 2 == 0 else 1
    assert B % nb == 0, "batch must be divisible by the per-step fold nb"

    # Pack the small per-channel params into a few slabs (fewer DMA streams),
    # oriented so no in-kernel transpose/reshape is needed.
    pv = jnp.stack([params["g0"], params["b0"]], axis=0)                 # (2, V)
    phc = jnp.concatenate([params["g1"][:, None], params["b1"][:, None],
                           params["dw"]], axis=1)                        # (H, 5)
    phr = jnp.stack([params["g2"], params["b2"]], axis=0)                # (2, H)
    a = params["prelu_a"].reshape(1, 1).astype(jnp.float32)              # SMEM

    const2d = lambda shape: pl.BlockSpec(shape, lambda g: (0, 0))

    return pl.pallas_call(
        _visual_conv1d_kernel,
        out_shape=jax.ShapeDtypeStruct((B, V, T), x.dtype),
        grid_spec=pltpu.PrefetchScalarGridSpec(
            num_scalar_prefetch=0,
            grid=(B // nb,),
            in_specs=[
                pl.BlockSpec((nb, V, T), lambda g: (g, 0, 0)),     # x fold
                const2d((2, V)),                                   # [g0 ; b0]
                const2d((H, V)),                                   # w1 (conv1x1)
                const2d((H, 5)),                                   # [g1|b1|dw_l|dw_c|dw_r]
                const2d((2, H)),                                   # [g2 ; b2]
                const2d((V, H)),                                   # w2 (pw_conv)
                pl.BlockSpec(memory_space=pltpu.MemorySpace.SMEM), # prelu a
            ],
            out_specs=pl.BlockSpec((nb, V, T), lambda g: (g, 0, 0)),
        ),
        compiler_params=pltpu.CompilerParams(
            dimension_semantics=("parallel",),          # batch groups -> megacore
            vmem_limit_bytes=_vmem_limit_bytes(),
        ),
    )(x, pv, params["w1"], phc, phr, params["w2"], a)


def _ref_forward(x, p):
    """Pure-JAX reference matching PyTorch VisualConv1D semantics (f32)."""
    HI = lax.Precision.HIGHEST

    def gln(y, g, b):
        mean = jnp.mean(y, axis=(1, 2), keepdims=True)
        var = jnp.mean((y - mean) ** 2, axis=(1, 2), keepdims=True)
        return g[None, :, None] * (y - mean) / jnp.sqrt(var + EPS) + b[None, :, None]

    y = jnp.maximum(x, 0.0)
    y = gln(y, p["g0"], p["b0"])
    h = jnp.einsum("hv,bvt->bht", p["w1"], y, precision=HI)
    h = jnp.maximum(h, 0.0)
    h = gln(h, p["g1"], p["b1"])
    hp = jnp.pad(h, ((0, 0), (0, 0), (1, 1)))
    dw = p["dw"]                                      # (H, 3)
    z = (dw[None, :, 0:1] * hp[:, :, :-2]
         + dw[None, :, 1:2] * hp[:, :, 1:-1]
         + dw[None, :, 2:3] * hp[:, :, 2:])
    a = p["prelu_a"][0]
    z = jnp.where(z >= 0.0, z, a * z)
    z = gln(z, p["g2"], p["b2"])
    out = jnp.einsum("vh,bht->bvt", p["w2"], z, precision=HI)
    return out + x


if __name__ == "__main__":
    # Small but MXU-friendly shapes: T = 256 so the matmul N dimension fills
    # the 256-wide MXU on v6e/v7x and stores are unmasked, lane-dense vst;
    # channel dims are multiples of 8 sublanes. B=4 with nb=2 -> grid of 2
    # parallel steps (megacore on v7x) with 2 batch elements folded per step.
    B, V, T, H = 4, 64, 256, 128

    key = jax.random.PRNGKey(0)
    k_x, k_w1, k_w2, k_dw, k_g = jax.random.split(key, 5)
    kg0, kb0, kg1, kb1, kg2, kb2 = jax.random.split(k_g, 6)

    x = jax.random.normal(k_x, (B, V, T), dtype=jnp.float32)

    params = {
        # GlobalLayerNorm params (init = 1 / 0 in PyTorch; perturbed here so
        # the folded-affine path is fully exercised).
        "g0": 1.0 + 0.1 * jax.random.normal(kg0, (V,), jnp.float32),
        "b0": 0.1 * jax.random.normal(kb0, (V,), jnp.float32),
        "g1": 1.0 + 0.1 * jax.random.normal(kg1, (H,), jnp.float32),
        "b1": 0.1 * jax.random.normal(kb1, (H,), jnp.float32),
        "g2": 1.0 + 0.1 * jax.random.normal(kg2, (H,), jnp.float32),
        "b2": 0.1 * jax.random.normal(kb2, (H,), jnp.float32),
        # conv1x1: Conv1d(V, H, 1, bias=False) -> weight (H, V)
        "w1": jax.random.normal(k_w1, (H, V), jnp.float32) / jnp.sqrt(float(V)),
        # dsconv: Conv1d(H, H, 3, groups=H, bias=False) -> weight (H, 1, 3) stored (H, 3)
        "dw": jax.random.normal(k_dw, (H, 3), jnp.float32) / jnp.sqrt(3.0),
        # PReLU default init (single shared parameter)
        "prelu_a": jnp.full((1,), 0.25, jnp.float32),
        # pw_conv: Conv1d(H, V, 1, bias=False) -> weight (V, H)
        "w2": jax.random.normal(k_w2, (V, H), jnp.float32) / jnp.sqrt(float(H)),
    }

    out = jax.block_until_ready(visual_conv1d(x, params, nb=2))
    ref = _ref_forward(x, params)

    assert out.shape == (B, V, T)
    max_err = float(jnp.max(jnp.abs(out - ref)))
    # Tolerance accounts for the bf16 MXU operands (f32 accumulation); the
    # reference is full-precision f32.
    assert jnp.allclose(out, ref, rtol=2e-2, atol=2e-2), (
        f"mismatch vs reference (max abs err = {max_err})")

    print("KERNEL_OK")
</pallas_src>

<mosaic_0001>
module attributes {stable_mosaic.version = 11 : i64} {
  func.func @_visual_conv1d_kernel(%arg0: i32, %arg1: memref<2x64x256xf32, #tpu.memory_space<vmem>>, %arg2: memref<2x64xf32, #tpu.memory_space<vmem>>, %arg3: memref<128x64xf32, #tpu.memory_space<vmem>>, %arg4: memref<128x5xf32, #tpu.memory_space<vmem>>, %arg5: memref<2x128xf32, #tpu.memory_space<vmem>>, %arg6: memref<64x128xf32, #tpu.memory_space<vmem>>, %arg7: memref<1x1xf32, #tpu.memory_space<smem>>, %arg8: memref<2x64x256xf32, #tpu.memory_space<vmem>>) attributes {dimension_semantics = [#tpu.dimension_semantics<parallel>], iteration_bounds = array<i64: 2>, scalar_prefetch = 0 : i64, scratch_operands = 0 : i64, tpu.core_type = #tpu.core_type<tc>, window_params = [{transform_indices = @transform_0, window_bounds = array<i64: 2, 64, 256>}, {pipeline_mode = #tpu.pipeline_mode<synchronous>, transform_indices = @transform_1, window_bounds = array<i64: 2, 64>}, {pipeline_mode = #tpu.pipeline_mode<synchronous>, transform_indices = @transform_2, window_bounds = array<i64: 128, 64>}, {pipeline_mode = #tpu.pipeline_mode<synchronous>, transform_indices = @transform_3, window_bounds = array<i64: 128, 5>}, {pipeline_mode = #tpu.pipeline_mode<synchronous>, transform_indices = @transform_4, window_bounds = array<i64: 2, 128>}, {pipeline_mode = #tpu.pipeline_mode<synchronous>, transform_indices = @transform_5, window_bounds = array<i64: 64, 128>}, {transform_indices = @transform_6, window_bounds = array<i64: 1, 1>}, {transform_indices = @transform_7, window_bounds = array<i64: 2, 64, 256>}]} {
    %c0 = arith.constant 0 : index
    %c0_0 = arith.constant 0 : index
    %0 = vector.load %arg2[%c0, %c0_0] : memref<2x64xf32, #tpu.memory_space<vmem>>, vector<1x64xf32>
    %c1 = arith.constant 1 : index
    %c0_1 = arith.constant 0 : index
    %1 = vector.load %arg2[%c1, %c0_1] : memref<2x64xf32, #tpu.memory_space<vmem>>, vector<1x64xf32>
    %c0_2 = arith.constant 0 : index
    %c0_3 = arith.constant 0 : index
    %2 = vector.load %arg3[%c0_2, %c0_3] : memref<128x64xf32, #tpu.memory_space<vmem>>, vector<128x64xf32>
    %3 = vector.broadcast %0 : vector<1x64xf32> to vector<128x64xf32>
    %4 = arith.mulf %2, %3 : vector<128x64xf32>
    %5 = arith.truncf %4 : vector<128x64xf32> to vector<128x64xbf16>
    %cst = arith.constant dense<0.000000e+00> : vector<128xf32>
    %6 = vector.multi_reduction <add>, %4, %cst [1] : vector<128x64xf32> to vector<128xf32>
    %7 = vector.shape_cast %6 : vector<128xf32> to vector<128x1xf32>
    %8 = vector.broadcast %1 : vector<1x64xf32> to vector<128x64xf32>
    %9 = arith.mulf %2, %8 : vector<128x64xf32>
    %cst_4 = arith.constant dense<0.000000e+00> : vector<128xf32>
    %10 = vector.multi_reduction <add>, %9, %cst_4 [1] : vector<128x64xf32> to vector<128xf32>
    %11 = vector.shape_cast %10 : vector<128xf32> to vector<128x1xf32>
    %c0_5 = arith.constant 0 : index
    %c0_6 = arith.constant 0 : index
    %12 = vector.load %arg4[%c0_5, %c0_6] : memref<128x5xf32, #tpu.memory_space<vmem>>, vector<128x1xf32>
    %c0_7 = arith.constant 0 : index
    %c1_8 = arith.constant 1 : index
    %13 = vector.load %arg4[%c0_7, %c1_8] : memref<128x5xf32, #tpu.memory_space<vmem>>, vector<128x1xf32>
    %c0_9 = arith.constant 0 : index
    %c2 = arith.constant 2 : index
    %14 = vector.load %arg4[%c0_9, %c2] : memref<128x5xf32, #tpu.memory_space<vmem>>, vector<128x1xf32>
    %c0_10 = arith.constant 0 : index
    %c3 = arith.constant 3 : index
    %15 = vector.load %arg4[%c0_10, %c3] : memref<128x5xf32, #tpu.memory_space<vmem>>, vector<128x1xf32>
    %c0_11 = arith.constant 0 : index
    %c4 = arith.constant 4 : index
    %16 = vector.load %arg4[%c0_11, %c4] : memref<128x5xf32, #tpu.memory_space<vmem>>, vector<128x1xf32>
    %c0_12 = arith.constant 0 : index
    %c0_13 = arith.constant 0 : index
    %17 = vector.load %arg5[%c0_12, %c0_13] : memref<2x128xf32, #tpu.memory_space<vmem>>, vector<1x128xf32>
    %c1_14 = arith.constant 1 : index
    %c0_15 = arith.constant 0 : index
    %18 = vector.load %arg5[%c1_14, %c0_15] : memref<2x128xf32, #tpu.memory_space<vmem>>, vector<1x128xf32>
    %c0_16 = arith.constant 0 : index
    %c0_17 = arith.constant 0 : index
    %19 = vector.load %arg6[%c0_16, %c0_17] : memref<64x128xf32, #tpu.memory_space<vmem>>, vector<64x128xf32>
    %20 = vector.broadcast %17 : vector<1x128xf32> to vector<64x128xf32>
    %21 = arith.mulf %19, %20 : vector<64x128xf32>
    %22 = arith.truncf %21 : vector<64x128xf32> to vector<64x128xbf16>
    %cst_18 = arith.constant dense<0.000000e+00> : vector<64xf32>
    %23 = vector.multi_reduction <add>, %21, %cst_18 [1] : vector<64x128xf32> to vector<64xf32>
    %24 = vector.shape_cast %23 : vector<64xf32> to vector<64x1xf32>
    %25 = vector.broadcast %18 : vector<1x128xf32> to vector<64x128xf32>
    %26 = arith.mulf %19, %25 : vector<64x128xf32>
    %cst_19 = arith.constant dense<0.000000e+00> : vector<64xf32>
    %27 = vector.multi_reduction <add>, %26, %cst_19 [1] : vector<64x128xf32> to vector<64xf32>
    %28 = vector.shape_cast %27 : vector<64xf32> to vector<64x1xf32>
    %c0_20 = arith.constant 0 : index
    %c0_21 = arith.constant 0 : index
    %29 = memref.load %arg7[%c0_20, %c0_21] : memref<1x1xf32, #tpu.memory_space<smem>>
    %30 = tpu.iota {dimensions = array<i32: 1>} : vector<1x256xi32>
    %c0_22 = arith.constant 0 : index
    %c0_23 = arith.constant 0 : index
    %c0_24 = arith.constant 0 : index
    %31 = vector.load %arg1[%c0_22, %c0_23, %c0_24] : memref<2x64x256xf32, #tpu.memory_space<vmem>>, vector<1x64x256xf32>
    %32 = vector.shape_cast %31 : vector<1x64x256xf32> to vector<64x256xf32>
    %cst_25 = arith.constant 0.000000e+00 : f32
    %33 = vector.broadcast %cst_25 : f32 to vector<64x256xf32>
    %34 = arith.maximumf %32, %33 : vector<64x256xf32>
    %35 = arith.truncf %34 : vector<64x256xf32> to vector<64x256xbf16>
    %cst_26 = arith.constant dense<0.000000e+00> : vector<128x256xf32>
    %36 = tpu.matmul %5, %35, %cst_26 {dimension_numbers = #tpu.dot_dimension_numbers<[1], [0], [0], [1], [0, 0, 1, 1], [], []>} : vector<128x64xbf16>, vector<64x256xbf16>, vector<128x256xf32> -> vector<128x256xf32>
    %37 = vector.shape_cast %34 : vector<64x256xf32> to vector<1x64x256xf32>
    %cst_27 = arith.constant dense<0.000000e+00> : vector<1xf32>
    %38 = vector.multi_reduction <add>, %37, %cst_27 [1, 2] : vector<1x64x256xf32> to vector<1xf32>
    %39 = vector.shape_cast %38 : vector<1xf32> to vector<1x1x1xf32>
    %40 = vector.extract %39[0, 0, 0] : f32 from vector<1x1x1xf32>
    %cst_28 = arith.constant 1.638400e+04 : f32
    %41 = arith.divf %40, %cst_28 : f32
    %42 = arith.mulf %34, %34 : vector<64x256xf32>
    %43 = vector.shape_cast %42 : vector<64x256xf32> to vector<1x64x256xf32>
    %cst_29 = arith.constant dense<0.000000e+00> : vector<1xf32>
    %44 = vector.multi_reduction <add>, %43, %cst_29 [1, 2] : vector<1x64x256xf32> to vector<1xf32>
    %45 = vector.shape_cast %44 : vector<1xf32> to vector<1x1x1xf32>
    %46 = vector.extract %45[0, 0, 0] : f32 from vector<1x1x1xf32>
    %cst_30 = arith.constant 1.638400e+04 : f32
    %47 = arith.divf %46, %cst_30 : f32
    %48 = arith.mulf %41, %41 : f32
    %49 = arith.subf %47, %48 : f32
    %cst_31 = arith.constant 9.99999993E-9 : f32
    %50 = arith.addf %49, %cst_31 : f32
    %51 = math.rsqrt %50 : f32
    %52 = arith.mulf %41, %51 : f32
    %53 = vector.broadcast %52 : f32 to vector<128x1xf32>
    %54 = arith.mulf %53, %7 : vector<128x1xf32>
    %55 = arith.subf %11, %54 : vector<128x1xf32>
    %56 = vector.broadcast %51 : f32 to vector<128x256xf32>
    %57 = arith.mulf %56, %36 : vector<128x256xf32>
    %58 = vector.broadcast %55 : vector<128x1xf32> to vector<128x256xf32>
    %59 = arith.addf %57, %58 : vector<128x256xf32>
    %cst_32 = arith.constant 0.000000e+00 : f32
    %60 = vector.broadcast %cst_32 : f32 to vector<128x256xf32>
    %61 = arith.maximumf %59, %60 : vector<128x256xf32>
    %62 = vector.shape_cast %61 : vector<128x256xf32> to vector<1x128x256xf32>
    %cst_33 = arith.constant dense<0.000000e+00> : vector<1xf32>
    %63 = vector.multi_reduction <add>, %62, %cst_33 [1, 2] : vector<1x128x256xf32> to vector<1xf32>
    %64 = vector.shape_cast %63 : vector<1xf32> to vector<1x1x1xf32>
    %65 = vector.extract %64[0, 0, 0] : f32 from vector<1x1x1xf32>
    %cst_34 = arith.constant 3.276800e+04 : f32
    %66 = arith.divf %65, %cst_34 : f32
    %67 = arith.mulf %61, %61 : vector<128x256xf32>
    %68 = vector.shape_cast %67 : vector<128x256xf32> to vector<1x128x256xf32>
    %cst_35 = arith.constant dense<0.000000e+00> : vector<1xf32>
    %69 = vector.multi_reduction <add>, %68, %cst_35 [1, 2] : vector<1x128x256xf32> to vector<1xf32>
    %70 = vector.shape_cast %69 : vector<1xf32> to vector<1x1x1xf32>
    %71 = vector.extract %70[0, 0, 0] : f32 from vector<1x1x1xf32>
    %cst_36 = arith.constant 3.276800e+04 : f32
    %72 = arith.divf %71, %cst_36 : f32
    %73 = arith.mulf %66, %66 : f32
    %74 = arith.subf %72, %73 : f32
    %cst_37 = arith.constant 9.99999993E-9 : f32
    %75 = arith.addf %74, %cst_37 : f32
    %76 = math.rsqrt %75 : f32
    %77 = vector.broadcast %76 : f32 to vector<128x1xf32>
    %78 = arith.mulf %12, %77 : vector<128x1xf32>
    %79 = vector.broadcast %78 : vector<128x1xf32> to vector<128x256xf32>
    %80 = arith.mulf %61, %79 : vector<128x256xf32>
    %81 = vector.broadcast %66 : f32 to vector<128x1xf32>
    %82 = arith.mulf %81, %78 : vector<128x1xf32>
    %83 = arith.subf %13, %82 : vector<128x1xf32>
    %84 = vector.broadcast %83 : vector<128x1xf32> to vector<128x256xf32>
    %85 = arith.addf %80, %84 : vector<128x256xf32>
    %c1_i32 = arith.constant 1 : i32
    %86 = vector.broadcast %c1_i32 : i32 to vector<1x256xi32>
    %87 = arith.cmpi sge, %30, %86 : vector<1x256xi32>
    %c1_i32_38 = arith.constant 1 : i32
    %88 = tpu.dynamic_rotate %85 by %c1_i32_38 dim 1 : vector<128x256xf32>, i32 -> vector<128x256xf32>
    %cst_39 = arith.constant 0.000000e+00 : f32
    %89 = vector.shape_cast %87 : vector<1x256xi1> to vector<1x256xi1>
    %90 = vector.broadcast %89 : vector<1x256xi1> to vector<128x256xi1>
    %91 = vector.broadcast %cst_39 : f32 to vector<128x256xf32>
    %92 = arith.select %90, %88, %91 : vector<128x256xi1>, vector<128x256xf32>
    %c254_i32 = arith.constant 254 : i32
    %93 = vector.broadcast %c254_i32 : i32 to vector<1x256xi32>
    %94 = arith.cmpi sle, %30, %93 : vector<1x256xi32>
    %c255_i32 = arith.constant 255 : i32
    %95 = tpu.dynamic_rotate %85 by %c255_i32 dim 1 : vector<128x256xf32>, i32 -> vector<128x256xf32>
    %cst_40 = arith.constant 0.000000e+00 : f32
    %96 = vector.shape_cast %94 : vector<1x256xi1> to vector<1x256xi1>
    %97 = vector.broadcast %96 : vector<1x256xi1> to vector<128x256xi1>
    %98 = vector.broadcast %cst_40 : f32 to vector<128x256xf32>
    %99 = arith.select %97, %95, %98 : vector<128x256xi1>, vector<128x256xf32>
    %100 = vector.broadcast %14 : vector<128x1xf32> to vector<128x256xf32>
    %101 = arith.mulf %100, %92 : vector<128x256xf32>
    %102 = vector.broadcast %15 : vector<128x1xf32> to vector<128x256xf32>
    %103 = arith.mulf %102, %85 : vector<128x256xf32>
    %104 = arith.addf %101, %103 : vector<128x256xf32>
    %105 = vector.broadcast %16 : vector<128x1xf32> to vector<128x256xf32>
    %106 = arith.mulf %105, %99 : vector<128x256xf32>
    %107 = arith.addf %104, %106 : vector<128x256xf32>
    %cst_41 = arith.constant 0.000000e+00 : f32
    %108 = vector.broadcast %cst_41 : f32 to vector<128x256xf32>
    %109 = arith.cmpf oge, %107, %108 : vector<128x256xf32>
    %110 = vector.broadcast %29 : f32 to vector<128x256xf32>
    %111 = arith.mulf %110, %107 : vector<128x256xf32>
    %112 = arith.select %109, %107, %111 : vector<128x256xi1>, vector<128x256xf32>
    %113 = arith.truncf %112 : vector<128x256xf32> to vector<128x256xbf16>
    %cst_42 = arith.constant dense<0.000000e+00> : vector<64x256xf32>
    %114 = tpu.matmul %22, %113, %cst_42 {dimension_numbers = #tpu.dot_dimension_numbers<[1], [0], [0], [1], [0, 0, 1, 1], [], []>} : vector<64x128xbf16>, vector<128x256xbf16>, vector<64x256xf32> -> vector<64x256xf32>
    %115 = vector.shape_cast %112 : vector<128x256xf32> to vector<1x128x256xf32>
    %cst_43 = arith.constant dense<0.000000e+00> : vector<1xf32>
    %116 = vector.multi_reduction <add>, %115, %cst_43 [1, 2] : vector<1x128x256xf32> to vector<1xf32>
    %117 = vector.shape_cast %116 : vector<1xf32> to vector<1x1x1xf32>
    %118 = vector.extract %117[0, 0, 0] : f32 from vector<1x1x1xf32>
    %cst_44 = arith.constant 3.276800e+04 : f32
    %119 = arith.divf %118, %cst_44 : f32
    %120 = arith.mulf %112, %112 : vector<128x256xf32>
    %121 = vector.shape_cast %120 : vector<128x256xf32> to vector<1x128x256xf32>
    %cst_45 = arith.constant dense<0.000000e+00> : vector<1xf32>
    %122 = vector.multi_reduction <add>, %121, %cst_45 [1, 2] : vector<1x128x256xf32> to vector<1xf32>
    %123 = vector.shape_cast %122 : vector<1xf32> to vector<1x1x1xf32>
    %124 = vector.extract %123[0, 0, 0] : f32 from vector<1x1x1xf32>
    %cst_46 = arith.constant 3.276800e+04 : f32
    %125 = arith.divf %124, %cst_46 : f32
    %126 = arith.mulf %119, %119 : f32
    %127 = arith.subf %125, %126 : f32
    %cst_47 = arith.constant 9.99999993E-9 : f32
    %128 = arith.addf %127, %cst_47 : f32
    %129 = math.rsqrt %128 : f32
    %130 = arith.mulf %119, %129 : f32
    %131 = vector.broadcast %130 : f32 to vector<64x1xf32>
    %132 = arith.mulf %131, %24 : vector<64x1xf32>
    %133 = arith.subf %28, %132 : vector<64x1xf32>
    %134 = vector.broadcast %129 : f32 to vector<64x256xf32>
    %135 = arith.mulf %134, %114 : vector<64x256xf32>
    %136 = vector.broadcast %133 : vector<64x1xf32> to vector<64x256xf32>
    %137 = arith.addf %135, %136 : vector<64x256xf32>
    %c0_48 = arith.constant 0 : index
    %c0_49 = arith.constant 0 : index
    %c0_50 = arith.constant 0 : index
    %138 = vector.load %arg1[%c0_48, %c0_49, %c0_50] : memref<2x64x256xf32, #tpu.memory_space<vmem>>, vector<1x64x256xf32>
    %139 = vector.shape_cast %138 : vector<1x64x256xf32> to vector<64x256xf32>
    %140 = arith.addf %137, %139 : vector<64x256xf32>
    %c0_51 = arith.constant 0 : index
    %c0_52 = arith.constant 0 : index
    %c0_53 = arith.constant 0 : index
    %141 = vector.load %arg8[%c0_51, %c0_52, %c0_53] : memref<2x64x256xf32, #tpu.memory_space<vmem>>, vector<1x64x256xf32>
    %142 = vector.shape_cast %141 : vector<1x64x256xf32> to vector<64x256xf32>
    %143 = vector.shape_cast %140 : vector<64x256xf32> to vector<1x64x256xf32>
    tpu.vector_store %arg8[%c0_51, %c0_52, %c0_53], %143 {strides = array<i32>} : memref<2x64x256xf32, #tpu.memory_space<vmem>>, vector<1x64x256xf32>,
    %c1_54 = arith.constant 1 : index
    %c0_55 = arith.constant 0 : index
    %c0_56 = arith.constant 0 : index
    %144 = vector.load %arg1[%c1_54, %c0_55, %c0_56] : memref<2x64x256xf32, #tpu.memory_space<vmem>>, vector<1x64x256xf32>
    %145 = vector.shape_cast %144 : vector<1x64x256xf32> to vector<64x256xf32>
    %cst_57 = arith.constant 0.000000e+00 : f32
    %146 = vector.broadcast %cst_57 : f32 to vector<64x256xf32>
    %147 = arith.maximumf %145, %146 : vector<64x256xf32>
    %148 = arith.truncf %147 : vector<64x256xf32> to vector<64x256xbf16>
    %cst_58 = arith.constant dense<0.000000e+00> : vector<128x256xf32>
    %149 = tpu.matmul %5, %148, %cst_58 {dimension_numbers = #tpu.dot_dimension_numbers<[1], [0], [0], [1], [0, 0, 1, 1], [], []>} : vector<128x64xbf16>, vector<64x256xbf16>, vector<128x256xf32> -> vector<128x256xf32>
    %150 = vector.shape_cast %147 : vector<64x256xf32> to vector<1x64x256xf32>
    %cst_59 = arith.constant dense<0.000000e+00> : vector<1xf32>
    %151 = vector.multi_reduction <add>, %150, %cst_59 [1, 2] : vector<1x64x256xf32> to vector<1xf32>
    %152 = vector.shape_cast %151 : vector<1xf32> to vector<1x1x1xf32>
    %153 = vector.extract %152[0, 0, 0] : f32 from vector<1x1x1xf32>
    %cst_60 = arith.constant 1.638400e+04 : f32
    %154 = arith.divf %153, %cst_60 : f32
    %155 = arith.mulf %147, %147 : vector<64x256xf32>
    %156 = vector.shape_cast %155 : vector<64x256xf32> to vector<1x64x256xf32>
    %cst_61 = arith.constant dense<0.000000e+00> : vector<1xf32>
    %157 = vector.multi_reduction <add>, %156, %cst_61 [1, 2] : vector<1x64x256xf32> to vector<1xf32>
    %158 = vector.shape_cast %157 : vector<1xf32> to vector<1x1x1xf32>
    %159 = vector.extract %158[0, 0, 0] : f32 from vector<1x1x1xf32>
    %cst_62 = arith.constant 1.638400e+04 : f32
    %160 = arith.divf %159, %cst_62 : f32
    %161 = arith.mulf %154, %154 : f32
    %162 = arith.subf %160, %161 : f32
    %cst_63 = arith.constant 9.99999993E-9 : f32
    %163 = arith.addf %162, %cst_63 : f32
    %164 = math.rsqrt %163 : f32
    %165 = arith.mulf %154, %164 : f32
    %166 = vector.broadcast %165 : f32 to vector<128x1xf32>
    %167 = arith.mulf %166, %7 : vector<128x1xf32>
    %168 = arith.subf %11, %167 : vector<128x1xf32>
    %169 = vector.broadcast %164 : f32 to vector<128x256xf32>
    %170 = arith.mulf %169, %149 : vector<128x256xf32>
    %171 = vector.broadcast %168 : vector<128x1xf32> to vector<128x256xf32>
    %172 = arith.addf %170, %171 : vector<128x256xf32>
    %cst_64 = arith.constant 0.000000e+00 : f32
    %173 = vector.broadcast %cst_64 : f32 to vector<128x256xf32>
    %174 = arith.maximumf %172, %173 : vector<128x256xf32>
    %175 = vector.shape_cast %174 : vector<128x256xf32> to vector<1x128x256xf32>
    %cst_65 = arith.constant dense<0.000000e+00> : vector<1xf32>
    %176 = vector.multi_reduction <add>, %175, %cst_65 [1, 2] : vector<1x128x256xf32> to vector<1xf32>
    %177 = vector.shape_cast %176 : vector<1xf32> to vector<1x1x1xf32>
    %178 = vector.extract %177[0, 0, 0] : f32 from vector<1x1x1xf32>
    %cst_66 = arith.constant 3.276800e+04 : f32
    %179 = arith.divf %178, %cst_66 : f32
    %180 = arith.mulf %174, %174 : vector<128x256xf32>
    %181 = vector.shape_cast %180 : vector<128x256xf32> to vector<1x128x256xf32>
    %cst_67 = arith.constant dense<0.000000e+00> : vector<1xf32>
    %182 = vector.multi_reduction <add>, %181, %cst_67 [1, 2] : vector<1x128x256xf32> to vector<1xf32>
    %183 = vector.shape_cast %182 : vector<1xf32> to vector<1x1x1xf32>
    %184 = vector.extract %183[0, 0, 0] : f32 from vector<1x1x1xf32>
    %cst_68 = arith.constant 3.276800e+04 : f32
    %185 = arith.divf %184, %cst_68 : f32
    %186 = arith.mulf %179, %179 : f32
    %187 = arith.subf %185, %186 : f32
    %cst_69 = arith.constant 9.99999993E-9 : f32
    %188 = arith.addf %187, %cst_69 : f32
    %189 = math.rsqrt %188 : f32
    %190 = vector.broadcast %189 : f32 to vector<128x1xf32>
    %191 = arith.mulf %12, %190 : vector<128x1xf32>
    %192 = vector.broadcast %191 : vector<128x1xf32> to vector<128x256xf32>
    %193 = arith.mulf %174, %192 : vector<128x256xf32>
    %194 = vector.broadcast %179 : f32 to vector<128x1xf32>
    %195 = arith.mulf %194, %191 : vector<128x1xf32>
    %196 = arith.subf %13, %195 : vector<128x1xf32>
    %197 = vector.broadcast %196 : vector<128x1xf32> to vector<128x256xf32>
    %198 = arith.addf %193, %197 : vector<128x256xf32>
    %c1_i32_70 = arith.constant 1 : i32
    %199 = vector.broadcast %c1_i32_70 : i32 to vector<1x256xi32>
    %200 = arith.cmpi sge, %30, %199 : vector<1x256xi32>
    %c1_i32_71 = arith.constant 1 : i32
    %201 = tpu.dynamic_rotate %198 by %c1_i32_71 dim 1 : vector<128x256xf32>, i32 -> vector<128x256xf32>
    %cst_72 = arith.constant 0.000000e+00 : f32
    %202 = vector.shape_cast %200 : vector<1x256xi1> to vector<1x256xi1>
    %203 = vector.broadcast %202 : vector<1x256xi1> to vector<128x256xi1>
    %204 = vector.broadcast %cst_72 : f32 to vector<128x256xf32>
    %205 = arith.select %203, %201, %204 : vector<128x256xi1>, vector<128x256xf32>
    %c254_i32_73 = arith.constant 254 : i32
    %206 = vector.broadcast %c254_i32_73 : i32 to vector<1x256xi32>
    %207 = arith.cmpi sle, %30, %206 : vector<1x256xi32>
    %c255_i32_74 = arith.constant 255 : i32
    %208 = tpu.dynamic_rotate %198 by %c255_i32_74 dim 1 : vector<128x256xf32>, i32 -> vector<128x256xf32>
    %cst_75 = arith.constant 0.000000e+00 : f32
    %209 = vector.shape_cast %207 : vector<1x256xi1> to vector<1x256xi1>
    %210 = vector.broadcast %209 : vector<1x256xi1> to vector<128x256xi1>
    %211 = vector.broadcast %cst_75 : f32 to vector<128x256xf32>
    %212 = arith.select %210, %208, %211 : vector<128x256xi1>, vector<128x256xf32>
    %213 = vector.broadcast %14 : vector<128x1xf32> to vector<128x256xf32>
    %214 = arith.mulf %213, %205 : vector<128x256xf32>
    %215 = vector.broadcast %15 : vector<128x1xf32> to vector<128x256xf32>
    %216 = arith.mulf %215, %198 : vector<128x256xf32>
    %217 = arith.addf %214, %216 : vector<128x256xf32>
    %218 = vector.broadcast %16 : vector<128x1xf32> to vector<128x256xf32>
    %219 = arith.mulf %218, %212 : vector<128x256xf32>
    %220 = arith.addf %217, %219 : vector<128x256xf32>
    %cst_76 = arith.constant 0.000000e+00 : f32
    %221 = vector.broadcast %cst_76 : f32 to vector<128x256xf32>
    %222 = arith.cmpf oge, %220, %221 : vector<128x256xf32>
    %223 = vector.broadcast %29 : f32 to vector<128x256xf32>
    %224 = arith.mulf %223, %220 : vector<128x256xf32>
    %225 = arith.select %222, %220, %224 : vector<128x256xi1>, vector<128x256xf32>
    %226 = arith.truncf %225 : vector<128x256xf32> to vector<128x256xbf16>
    %cst_77 = arith.constant dense<0.000000e+00> : vector<64x256xf32>
    %227 = tpu.matmul %22, %226, %cst_77 {dimension_numbers = #tpu.dot_dimension_numbers<[1], [0], [0], [1], [0, 0, 1, 1], [], []>} : vector<64x128xbf16>, vector<128x256xbf16>, vector<64x256xf32> -> vector<64x256xf32>
    %228 = vector.shape_cast %225 : vector<128x256xf32> to vector<1x128x256xf32>
    %cst_78 = arith.constant dense<0.000000e+00> : vector<1xf32>
    %229 = vector.multi_reduction <add>, %228, %cst_78 [1, 2] : vector<1x128x256xf32> to vector<1xf32>
    %230 = vector.shape_cast %229 : vector<1xf32> to vector<1x1x1xf32>
    %231 = vector.extract %230[0, 0, 0] : f32 from vector<1x1x1xf32>
    %cst_79 = arith.constant 3.276800e+04 : f32
    %232 = arith.divf %231, %cst_79 : f32
    %233 = arith.mulf %225, %225 : vector<128x256xf32>
    %234 = vector.shape_cast %233 : vector<128x256xf32> to vector<1x128x256xf32>
    %cst_80 = arith.constant dense<0.000000e+00> : vector<1xf32>
    %235 = vector.multi_reduction <add>, %234, %cst_80 [1, 2] : vector<1x128x256xf32> to vector<1xf32>
    %236 = vector.shape_cast %235 : vector<1xf32> to vector<1x1x1xf32>
    %237 = vector.extract %236[0, 0, 0] : f32 from vector<1x1x1xf32>
    %cst_81 = arith.constant 3.276800e+04 : f32
    %238 = arith.divf %237, %cst_81 : f32
    %239 = arith.mulf %232, %232 : f32
    %240 = arith.subf %238, %239 : f32
    %cst_82 = arith.constant 9.99999993E-9 : f32
    %241 = arith.addf %240, %cst_82 : f32
    %242 = math.rsqrt %241 : f32
    %243 = arith.mulf %232, %242 : f32
    %244 = vector.broadcast %243 : f32 to vector<64x1xf32>
    %245 = arith.mulf %244, %24 : vector<64x1xf32>
    %246 = arith.subf %28, %245 : vector<64x1xf32>
    %247 = vector.broadcast %242 : f32 to vector<64x256xf32>
    %248 = arith.mulf %247, %227 : vector<64x256xf32>
    %249 = vector.broadcast %246 : vector<64x1xf32> to vector<64x256xf32>
    %250 = arith.addf %248, %249 : vector<64x256xf32>
    %c1_83 = arith.constant 1 : index
    %c0_84 = arith.constant 0 : index
    %c0_85 = arith.constant 0 : index
    %251 = vector.load %arg1[%c1_83, %c0_84, %c0_85] : memref<2x64x256xf32, #tpu.memory_space<vmem>>, vector<1x64x256xf32>
    %252 = vector.shape_cast %251 : vector<1x64x256xf32> to vector<64x256xf32>
    %253 = arith.addf %250, %252 : vector<64x256xf32>
    %c1_86 = arith.constant 1 : index
    %c0_87 = arith.constant 0 : index
    %c0_88 = arith.constant 0 : index
    %254 = vector.load %arg8[%c1_86, %c0_87, %c0_88] : memref<2x64x256xf32, #tpu.memory_space<vmem>>, vector<1x64x256xf32>
    %255 = vector.shape_cast %254 : vector<1x64x256xf32> to vector<64x256xf32>
    %256 = vector.shape_cast %253 : vector<64x256xf32> to vector<1x64x256xf32>
    tpu.vector_store %arg8[%c1_86, %c0_87, %c0_88], %256 {strides = array<i32>} : memref<2x64x256xf32, #tpu.memory_space<vmem>>, vector<1x64x256xf32>,
    return
  }
  func.func @transform_0(%arg0: i32) -> (i32, i32, i32) {
    %c0_i32 = arith.constant 0 : i32
    %c0_i32_0 = arith.constant 0 : i32
    %c0_i32_1 = arith.constant 0 : i32
    return %arg0, %c0_i32, %c0_i32_0 : i32, i32, i32
  }
  func.func @transform_1(%arg0: i32) -> (i32, i32) {
    %c0_i32 = arith.constant 0 : i32
    %c0_i32_0 = arith.constant 0 : i32
    %c0_i32_1 = arith.constant 0 : i32
    return %c0_i32, %c0_i32_0 : i32, i32
  }
  func.func @transform_2(%arg0: i32) -> (i32, i32) {
    %c0_i32 = arith.constant 0 : i32
    %c0_i32_0 = arith.constant 0 : i32
    %c0_i32_1 = arith.constant 0 : i32
    return %c0_i32, %c0_i32_0 : i32, i32
  }
  func.func @transform_3(%arg0: i32) -> (i32, i32) {
    %c0_i32 = arith.constant 0 : i32
    %c0_i32_0 = arith.constant 0 : i32
    %c0_i32_1 = arith.constant 0 : i32
    return %c0_i32, %c0_i32_0 : i32, i32
  }
  func.func @transform_4(%arg0: i32) -> (i32, i32) {
    %c0_i32 = arith.constant 0 : i32
    %c0_i32_0 = arith.constant 0 : i32
    %c0_i32_1 = arith.constant 0 : i32
    return %c0_i32, %c0_i32_0 : i32, i32
  }
  func.func @transform_5(%arg0: i32) -> (i32, i32) {
    %c0_i32 = arith.constant 0 : i32
    %c0_i32_0 = arith.constant 0 : i32
    %c0_i32_1 = arith.constant 0 : i32
    return %c0_i32, %c0_i32_0 : i32, i32
  }
  func.func @transform_6(%arg0: i32) -> (i32, i32) {
    %c0_i32 = arith.constant 0 : i32
    %c0_i32_0 = arith.constant 0 : i32
    %c0_i32_1 = arith.constant 0 : i32
    return %c0_i32, %c0_i32_0 : i32, i32
  }
  func.func @transform_7(%arg0: i32) -> (i32, i32, i32) {
    %c0_i32 = arith.constant 0 : i32
    %c0_i32_0 = arith.constant 0 : i32
    %c0_i32_1 = arith.constant 0 : i32
    return %arg0, %c0_i32, %c0_i32_0 : i32, i32, i32
  }
}

</mosaic_0001>

<bundles_post_ra>
// kernel: tpu_custom_call.1
= control target key start
LH: loop header
LB: loop body
LE: loop exit
PB: predicated region body
PF: predicated region fallthrough
CT: control target
= control target key end

     0   :  { %s8053_s0 = inlined_call_operand.hbm [shape: f32[4,64,256], index: 0, kind: input, shape index: {}]   ;;  %s8054_s1 = inlined_call_operand.vmem [shape: f32[2,64], index: 1, kind: input, shape index: {}]   ;;  %s8055_s2 = inlined_call_operand.vmem [shape: f32[128,64], index: 2, kind: input, shape index: {}]   ;;  %s8056_s3 = inlined_call_operand.vmem [shape: f32[128,5], index: 3, kind: input, shape index: {}]   ;;  %s8057_s4 = inlined_call_operand.vmem [shape: f32[2,128], index: 4, kind: input, shape index: {}]   ;;  %s8058_s5 = inlined_call_operand.vmem [shape: f32[64,128], index: 5, kind: input, shape index: {}]   ;;  %s8059_s6 = inlined_call_operand.<no memory space> [shape: f32[1,1], index: 6, kind: input, shape index: {}]   ;;  %s8060_s7 = inlined_call_operand.hbm [shape: f32[4,64,256], index: 7, kind: output, shape index: {}]  }
   0x1   :  { %12 = sst [smem:[#allocation2]] %s8059_s6 }
   0x2   :  { %13 = vsyncpa [#allocation4], 0 }
   0x3   :  { %15 = vsyncpa [#allocation4 + $0x1], 0 }
   0x4   :  { %16 = vsyncpa [#allocation5], 0 }
   0x5   :  { %18 = vsyncpa [#allocation5 + $0x1], 0  ;;  %s4567_s26 = smov 0   ;;  %s4569_s27 = smov 0  }
   0x6   :  { %s4571_s28 = smov 0   ;;  %s4573_s29 = smov 0  }
   0x7 LB: > { %s4588_s6 = sadd.s32 4294967295, %s4509_s29   ;;  %s4152_s30 = sadd.s32 4294967294, %s4509_s29   ;;  %s4509_s29 = sphi %s4573_s29, %s8598_s29   ;;  %s4505_s28 = sphi %s4571_s28, %s8597_s28   ;;  %s4501_s27 = sphi %s4569_s27, %s8596_s27   ;;  %s4497_s26 = sphi %s4567_s26, %s8595_s26  }
   0x8   : > { %s4592_s8 = sadd.s32 1, %s4509_s29   ;;  %s31_s9 = sadd.s32 1, %s4505_s28 }
   0x9   : > { %s28_s10 = ssub.s32 %s4509_s29, %s4592_s8  ;;  %p38_p0 = scmp.ne.s32.totalorder %s4505_s28, %s4501_s27 }
   0xa   : > { %p29_p1 = scmp.eq.s32.totalorder %s28_s10, 0  ;;  %p39_p2 = scmp.eq.s32.totalorder %s4509_s29, 0 }
   0xb   : > { %p44_p3 = scmp.ne.s32.totalorder %s4501_s27, %s4497_s26  ;;  %p45_p4 = scmp.eq.s32.totalorder %s4588_s6, 0 }
   0xc   : > { %s4604_s11 = scalar_select %p29_p1, %s4505_s28, %s31_s9  }
   0xd   : > { %p4606_p5 = por %p39_p2, %p38_p0  ;;  %p4610_p6 = por %p45_p4, %p44_p3 }
   0xe   : > { %p194_p7 = scmp.eq.s32.totalorder %s4588_s6, 1  ;;  %p200_p8 = scmp.eq.s32.totalorder %s4152_s30, 1 }
   0xf   : > { %p4272_p10 = scmp.lt.s32.totalorder %s4509_s29, 2  ;;  %s238_s16 = sand.u32 1, %s4505_s28  }
  0x10   : > { %p4617_p11 = por %p194_p7, %p38_p0  ;;  %p4621_p12 = por %p200_p8, %p44_p3 }
  0x11   : > { %s4221_s17 = sshll.u32 %s4509_s29, 12  ;;  %s4155_s18 = sshll.u32 %s238_s16, 8 }
  0x12   : > { %s8250_s14 = scalar_select %p4617_p11, 1, 0 }
  0x13   : > { %s8251_s15 = scalar_select %p4621_p12, 1, 0 }
  0x14   : > { %s4630_s21 = scalar_lea.hbm %s8053_s0, %s4221_s17  ;;  %s242_s22 = scalar_lea.vmem [#allocation3], %s4155_s18 }
  0x15   : > { %s250_s23 = sshll.u32 %s242_s22, 4  ;;  %p4634_p13 = pnand %p4272_p10, %p4606_p5  ;;  %s4638_s23 = int_to_ptr.vmem [resolvable:$true] %s250_s23 }
  0x16   : > { %s4640_s25 = scalar_lea.sflag [#allocation4], %s238_s16  ;;  %s4413_s30 = scalar_lea.hbm %s4630_s21, 4096 }
  0x17   : > { %p4414_p0 = scmp.ne.s32.totalorder %s4630_s21, %s4413_s30  ;;  %p4415_p1 = pneg %p4634_p13 }
  0x18   : > { %s4418_s12 = scalar_lea.hbm %s8053_s0, 8192  ;;  %p4419_p4 = scmp.lt.u32.totalorder %s4630_s21, %s8053_s0 }
  0x19   : > { %p4416_p2 = pnand %p4415_p1, %p4414_p0  ;;  %p4420_p5 = scmp.lt.u32.totalorder %s4418_s12, %s4413_s30 }
  0x1a   : > { %p4422_p8 = scmp.lt.u32.totalorder %s4413_s30, %s4630_s21 }
  0x1b   : > { %p4417_p3 = pneg %p4416_p2  ;;  %p4421_p7 = por %p4420_p5, %p4419_p4 }
  0x1d   : > { %p4423_p10 = por %p4422_p8, %p4421_p7 }
  0x1f   : > { %p4424_p9 = pnand %p4423_p10, %p4417_p3 }
  0x21   : > { %4427 = shalt.err (!%p4424_p9)
}
  0x22   : > { %s4428_s16 = scalar_lea.vmem %s4638_s23, 4096  ;;  %s4511_s19 = smov [#allocation3]  }
  0x23   : > { %p4429_p0 = scmp.ne.s32.totalorder %s4638_s23, %s4428_s16  ;;  %s4433_s20 = sshll.u32 %s4511_s19, 4  ;;  %s4434_s20 = int_to_ptr.vmem [resolvable:$false] %s4433_s20 }
  0x24   : > { %s4435_s22 = scalar_lea.vmem %s4434_s20, 8192  ;;  %p4436_p11 = scmp.lt.s32.totalorder %s4638_s23, %s4434_s20 }
  0x25   : > { %p4431_p2 = pnand %p4429_p0, %p4415_p1  ;;  %p4437_p4 = scmp.lt.s32.totalorder %s4435_s22, %s4428_s16 }
  0x27   : > { %p4432_p12 = pneg %p4431_p2  ;;  %p4438_p5 = por %p4437_p4, %p4436_p11 }
  0x29   : > { %p4439_p7 = pnand %p4438_p5, %p4432_p12 }
  0x2b   : > { %4442 = shalt.err (!%p4439_p7)
}
  0x2c   : > { %s4512_s30 = smov 256   ;;  %s4513_s9 = smov 16  }
  0x2d   : > { %4267 = dma.hbm_to_vmem [thread:$0]  (!%p4634_p13), %s4630_s21, 4096, %s4638_s23, %s4640_s25, %s4512_s30, %s4512_s30, %s4513_s9  }
  0x2e   : > { %p4159_p9 = scmp.ge.s32.totalorder %s4509_s29, 1  ;;  %p258_p1 = scmp.lt.s32.totalorder %s4509_s29, 3 }
  0x30   : > { %p259_p3 = pnand %p4159_p9, %p258_p1 }
  0x32   : > { %262 = sbr.rel (%p259_p3) target bundleno = 2900 (0xb54), region = 48 }
  0x39   : > { %s4671_s10 = sand.u32 1, %s4501_s27  }
  0x3a   : > { %s8219_s12 = sshll.u32 %s4671_s10, 8  ;;  %s265_s17 = scalar_lea.sflag [#allocation4], %s4671_s10 }
  0x3b   : > { %s4677_s18 = scalar_lea.vmem [#allocation3], %s8219_s12 }
  0x3c   : > { %4488 = dma.done.wait (%p4610_p6), %s265_s17, 4096  }
  0x3d   : > { %4490 = vsyncadd (%p4610_p6), %s265_s17, 4294963200  ;;  %v8062_v0 = vmov 0   ;;  %v556_v1 = vld [vmem:[%s4677_s18 + $0x8] sm:$0xff]  ;;  %v558_v2 = vld [vmem:[%s4677_s18 + $0x18] sm:$0xff]  ;;  %vm348_vm0 = vcmask 523264   ;;  %p8592_p11 = scmp.ne.s32.totalorder %s8250_s14, 0 }
  0x3e   : > { %651 = vmatprep.mubr.bf16.mxu0 %v8062_v0  ;;  %2184 = vmatprep.mubr.bf16.mxu1 %v8062_v0  ;;  %v555_v3 = vld [vmem:[%s4677_s18] sm:$0xff]  ;;  %v572_v4 = vmax.f32 %v556_v1, 0.0  ;;  %v574_v5 = vmax.f32 %v558_v2, 0.0  ;;  %v557_v6 = vld [vmem:[%s4677_s18 + $0x10] sm:$0xff]  ;;  %v560_v8 = vld [vmem:[%s4677_s18 + $0x28] sm:$0xff] }
  0x3f   : > { %v571_v7 = vmax.f32 %v555_v3, 0.0  ;;  %v562_v9 = vld [vmem:[%s4677_s18 + $0x38] sm:$0xff]  ;;  %v573_v10 = vmax.f32 %v557_v6, 0.0  ;;  %v576_v11 = vmax.f32 %v560_v8, 0.0  ;;  %v559_v13 = vld [vmem:[%s4677_s18 + $0x20] sm:$0xff]  ;;  %v561_v17 = vld [vmem:[%s4677_s18 + $0x30] sm:$0xff] }
  0x40   : > { %v578_v12 = vmax.f32 %v562_v9, 0.0  ;;  %v588_v14 = vpack.c.bf16 %v574_v5, %v572_v4  ;;  %v760_v15 = vmul.f32 %v572_v4, %v572_v4  ;;  %v564_v18 = vld [vmem:[%s4677_s18 + $0x48] sm:$0xff]  ;;  %v566_v19 = vld [vmem:[%s4677_s18 + $0x58] sm:$0xff]  ;;  %v563_v24 = vld [vmem:[%s4677_s18 + $0x40] sm:$0xff]  ;;  %v762_v25 = vmul.f32 %v574_v5, %v574_v5 }
  0x41   : > { %v732_v16 = vadd.f32 %v572_v4, %v571_v7  ;;  %v587_v20 = vpack.c.bf16 %v573_v10, %v571_v7  ;;  %v759_v21 = vmul.f32 %v571_v7, %v571_v7  ;;  %v761_v22 = vmul.f32 %v573_v10, %v573_v10  ;;  %v565_v28 = vld [vmem:[%s4677_s18 + $0x50] sm:$0xff]  ;;  %v568_v40 = vld [vmem:[%s4677_s18 + $0x68] sm:$0xff]  ;;  %v570_v41 = vld [vmem:[%s4677_s18 + $0x78] sm:$0xff] }
  0x42   : > { %v590_v23 = vpack.c.bf16 %v578_v12, %v576_v11  ;;  %619 = vmatprep.subr.bf16.mxu0 %v588_v14  ;;  %v575_v27 = vmax.f32 %v559_v13, 0.0  ;;  %v577_v30 = vmax.f32 %v561_v17, 0.0  ;;  %v580_v31 = vmax.f32 %v564_v18, 0.0  ;;  %v567_v43 = vld [vmem:[%s4677_s18 + $0x60] sm:$0xff]  ;;  %v569_v44 = vld [vmem:[%s4677_s18 + $0x70] sm:$0xff]  ;;  %v305_v53 = vld [vmem:[%s8055_s2 + $0x8] sm:$0xff] }
  0x43   : > { %v733_v26 = vadd.f32 %v732_v16, %v573_v10  ;;  %620 = vmatpush1.bf16.msra.mxu0 %v587_v20  ;;  %v775_v29 = vadd.f32 %v760_v15, %v759_v21  ;;  %v582_v32 = vmax.f32 %v566_v19, 0.0  ;;  %v579_v35 = vmax.f32 %v563_v24, 0.0  ;;  %v4704_v48 = vld [vmem:[%s8054_s1] ss:$0 sm:$0xff]  ;;  %v306_v9 = vld [vmem:[%s8055_s2 + $0x10] sm:$0xff]  ;;  %v307_v10 = vld [vmem:[%s8055_s2 + $0x18] sm:$0xff] }
  0x44   : > { %621 = vmatprep.subr.bf16.mxu0 %v590_v23  ;;  %v763_v34 = vmul.f32 %v575_v27, %v575_v27  ;;  %v589_v37 = vpack.c.bf16 %v577_v30, %v575_v27  ;;  %v581_v39 = vmax.f32 %v565_v28, 0.0  ;;  %v764_v46 = vmul.f32 %v576_v11, %v576_v11  ;;  %v4709_v49 = vld [vmem:[%s8055_s2] sm:$0xff] }
  0x45   : > { %v734_v33 = vadd.f32 %v733_v26, %v574_v5  ;;  %v776_v36 = vadd.f32 %v775_v29, %v761_v22  ;;  %v592_v38 = vpack.c.bf16 %v582_v32, %v580_v31  ;;  %v584_v51 = vmax.f32 %v568_v40, 0.0  ;;  %v4739_v20 = vld [vmem:[%s8054_s1 + $0x1] ss:$0 sm:$0xff] }
  0x46   : > { %v591_v47 = vpack.c.bf16 %v581_v39, %v579_v35  ;;  %v4711_v52 = vmax.f32 %v570_v41, 0.0  ;;  %v765_v54 = vmul.f32 %v577_v30, %v577_v30  ;;  %v583_v56 = vmax.f32 %v567_v43, 0.0 }
  0x47   : > { %v735_v42 = vadd.f32 %v734_v33, %v575_v27  ;;  %v777_v45 = vadd.f32 %v776_v36, %v762_v25  ;;  %622 = vmatpush1.bf16.msra.mxu0 %v589_v37  ;;  %v585_v57 = vmax.f32 %v569_v44, 0.0  ;;  %v324_v60 = vmul.f32 %v4704_v48, %v4709_v49 }
  0x48   : > { %623 = vmatprep.subr.bf16.mxu0 %v592_v38  ;;  %v594_v59 = vpack.c.bf16 %v4711_v52, %v584_v51  ;;  %v766_v61 = vmul.f32 %v578_v12, %v578_v12  ;;  %v325_v1 = vmul.f32 %v4704_v48, %v305_v53  ;;  %v767_v4 = vmul.f32 %v579_v35, %v579_v35 }
  0x49   : > { %v736_v50 = vadd.f32 %v735_v42, %v576_v11  ;;  %v778_v55 = vadd.f32 %v777_v45, %v763_v34  ;;  %v593_v63 = vpack.c.bf16 %v585_v57, %v583_v56  ;;  %v768_v7 = vmul.f32 %v580_v31, %v580_v31 }
  0x4a   : > { %v4720_v6 = vpack.c.bf16 %v325_v1, %v324_v60  ;;  %v326_v15 = vmul.f32 %v4704_v48, %v306_v9  ;;  %v4732_v16 = vmul.f32 %v4704_v48, %v307_v10  ;;  %v349_v17 = vsel %vm348_vm0, %v324_v60, 0.0  ;;  %v312_v60 = vld [vmem:[%s8055_s2 + $0x40] sm:$0xff] }
  0x4b   : > { %v737_v58 = vadd.f32 %v736_v50, %v577_v30  ;;  %v779_v62 = vadd.f32 %v778_v55, %v764_v46  ;;  %624 = vmatpush1.bf16.msra.mxu0 %v591_v47  ;;  %v770_v18 = vmul.f32 %v582_v32, %v582_v32  ;;  %350 = vadd.xlane.f32.xlu1 %v349_v17  ;;  %v352_v22 = vsel %vm348_vm0, %v325_v1, 0.0  ;;  %v308_v30 = vld [vmem:[%s8055_s2 + $0x20] sm:$0xff]  ;;  %v310_v50 = vld [vmem:[%s8055_s2 + $0x30] sm:$0xff] }
  0x4c   : > { %625 = vmatprep.subr.bf16.mxu0 %v594_v59  ;;  %8253 = vst [vmem:[#allocation9_spill] sm:$0xff] %v4720_v6  ;;  %v402_v23 = vmul.f32 %v4739_v20, %v305_v53  ;;  %v771_v24 = vmul.f32 %v583_v56, %v583_v56  ;;  %v4744_v27 = vpack.c.bf16 %v4732_v16, %v326_v15 }
  0x4d   : > { %v738_v2 = vadd.f32 %v737_v58, %v578_v12  ;;  %v780_v3 = vadd.f32 %v779_v62, %v765_v54  ;;  %v769_v12 = vmul.f32 %v581_v39, %v581_v39  ;;  %v772_v28 = vmul.f32 %v584_v51, %v584_v51 }
  0x4e   : > { %8254 = vst [vmem:[#allocation10_spill] sm:$0xff] %v4744_v27  ;;  %v420_v33 = vsel %vm348_vm0, %v402_v23, 0.0  ;;  %v403_v34 = vmul.f32 %v4739_v20, %v306_v9  ;;  %v328_v38 = vmul.f32 %v4704_v48, %v308_v30  ;;  %v774_v40 = vmul.f32 %v4711_v52, %v4711_v52  ;;  %v314_v9 = vld [vmem:[%s8055_s2 + $0x50] sm:$0xff] }
  0x4f   : > { %v739_v5 = vadd.f32 %v738_v2, %v579_v35  ;;  %v781_v8 = vadd.f32 %v780_v3, %v766_v61  ;;  %626 = vmatpush1.bf16.msra.mxu0 %v593_v63  ;;  %353 = vadd.xlane.f32.xlu1 %v352_v22  ;;  %v773_v35 = vmul.f32 %v585_v57, %v585_v57  ;;  %v313_v61 = vld [vmem:[%s8055_s2 + $0x48] sm:$0xff]  ;;  %v355_v62 = vsel %vm348_vm0, %v326_v15, 0.0 }
  0x50   : > { %v423_v43 = vsel %vm348_vm0, %v403_v34, 0.0  ;;  %v404_v44 = vmul.f32 %v4739_v20, %v307_v10  ;;  %v405_v54 = vmul.f32 %v4739_v20, %v308_v30  ;;  %v330_v55 = vmul.f32 %v4704_v48, %v310_v50  ;;  %v315_v10 = vld [vmem:[%s8055_s2 + $0x58] sm:$0xff]  ;;  %v317_v22 = vld [vmem:[%s8055_s2 + $0x68] sm:$0xff] }
  0x51   : > { %v740_v11 = vadd.f32 %v739_v5, %v580_v31  ;;  %v782_v13 = vadd.f32 %v781_v8, %v767_v4  ;;  %v309_v31 = vld [vmem:[%s8055_s2 + $0x28] sm:$0xff]  ;;  %v407_v1 = vmul.f32 %v4739_v20, %v310_v50  ;;  %v332_v2 = vmul.f32 %v4704_v48, %v312_v60  ;;  %v319_v34 = vld [vmem:[%s8055_s2 + $0x78] sm:$0xff] }
  0x52   : > { %4166 = vmatmul.mubr.msk.bf16.vlgmr.msra.gmra.mrb[0].mxu0 %vm348_vm0, %v4720_v6  ;;  %v426_v53 = vsel %vm348_vm0, %v404_v44, 0.0  ;;  %v406_v58 = vmul.f32 %v4739_v20, %v309_v31  ;;  %v333_v3 = vmul.f32 %v4704_v48, %v313_v61  ;;  %v358_v4 = vsel %vm348_vm0, %v4732_v16, 0.0 }
  0x53   : > { %v741_v14 = vadd.f32 %v740_v11, %v581_v39  ;;  %v783_v19 = vadd.f32 %v782_v13, %v768_v7  ;;  %661 = vmatprep.mubr.bf16.mxu0 %v8062_v0  ;;  %v329_v39 = vmul.f32 %v4704_v48, %v309_v31  ;;  %421 = vadd.xlane.f32.xlu1 %v420_v33  ;;  %v435_v5 = vsel %vm348_vm0, %v407_v1, 0.0  ;;  %v318_v33 = vld [vmem:[%s8055_s2 + $0x70] sm:$0xff] }
  0x54   : > { %v432_v63 = vsel %vm348_vm0, %v406_v58, 0.0  ;;  %v4804_v8 = vpack.c.bf16 %v333_v3, %v332_v2  ;;  %v361_v11 = vsel %vm348_vm0, %v328_v38, 0.0  ;;  %v409_v13 = vmul.f32 %v4739_v20, %v312_v60 }
  0x55   : > { %v742_v21 = vadd.f32 %v741_v14, %v582_v32  ;;  %v784_v25 = vadd.f32 %v783_v19, %v769_v12  ;;  %v4764_v46 = vpack.c.bf16 %v329_v39, %v328_v38  ;;  %v334_v14 = vmul.f32 %v4704_v48, %v314_v9 }
  0x56   : > { %8257 = vst [vmem:[#allocation13_spill] sm:$0xff] %v4804_v8  ;;  %v335_v15 = vmul.f32 %v4704_v48, %v315_v10  ;;  %v364_v16 = vsel %vm348_vm0, %v329_v39, 0.0  ;;  %v441_v17 = vsel %vm348_vm0, %v409_v13, 0.0  ;;  %v367_v23 = vsel %vm348_vm0, %v330_v55, 0.0 }
  0x57   : > { %v743_v26 = vadd.f32 %v742_v21, %v583_v56  ;;  %v785_v29 = vadd.f32 %v784_v25, %v770_v18  ;;  %8255 = vst [vmem:[#allocation11_spill] sm:$0xff] %v4764_v46  ;;  %424 = vadd.xlane.f32.xlu1 %v423_v43  ;;  %v410_v18 = vmul.f32 %v4739_v20, %v313_v61  ;;  %v316_v21 = vld [vmem:[%s8055_s2 + $0x60] sm:$0xff]  ;;  %v379_v44 = vsel %vm348_vm0, %v334_v14, 0.0 }
  0x58   : > { %v4823_v19 = vpack.c.bf16 %v335_v15, %v334_v14  ;;  %v411_v25 = vmul.f32 %v4739_v20, %v314_v9  ;;  %v412_v31 = vmul.f32 %v4739_v20, %v315_v10  ;;  %v338_v38 = vmul.f32 %v4704_v48, %v318_v33 }
  0x59   : > { %v744_v32 = vadd.f32 %v743_v26, %v584_v51  ;;  %v786_v36 = vadd.f32 %v785_v29, %v771_v24  ;;  %v311_v51 = vld [vmem:[%s8055_s2 + $0x38] sm:$0xff]  ;;  %v444_v24 = vsel %vm348_vm0, %v410_v18, 0.0  ;;  %v336_v26 = vmul.f32 %v4704_v48, %v316_v21 }
  0x5a   : > { %4167 = vmatmul.mubr.msk.bf16.gmra.mrb[4].mxu0 %vm348_vm0, %v4744_v27  ;;  %v331_v56 = vmul.f32 %v4704_v48, %v311_v51  ;;  %v408_v7 = vmul.f32 %v4739_v20, %v311_v51  ;;  %8258 = vst [vmem:[#allocation14_spill] sm:$0xff] %v4823_v19  ;;  %v447_v30 = vsel %vm348_vm0, %v411_v25, 0.0  ;;  %v339_v39 = vmul.f32 %v4704_v48, %v319_v34 }
  0x5b   : > { %v745_v37 = vadd.f32 %v744_v32, %v585_v57  ;;  %v787_v41 = vadd.f32 %v786_v36, %v772_v28  ;;  %671 = vmatprep.mubr.bf16.mxu0 %v8062_v0  ;;  %427 = vadd.xlane.f32.xlu1 %v426_v53  ;;  %v337_v28 = vmul.f32 %v4704_v48, %v317_v22  ;;  %v450_v36 = vsel %vm348_vm0, %v412_v31, 0.0 }
  0x5c   : > { %v4784_v59 = vpack.c.bf16 %v331_v56, %v330_v55  ;;  %v438_v12 = vsel %vm348_vm0, %v408_v7, 0.0  ;;  %v370_v29 = vsel %vm348_vm0, %v331_v56, 0.0  ;;  %v4861_v43 = vpack.c.bf16 %v339_v39, %v338_v38 }
  0x5d   : > { %v746_v42 = vadd.f32 %v745_v37, %v4711_v52  ;;  %v788_v45 = vadd.f32 %v787_v41, %v773_v35  ;;  %v401_v52 = vmul.f32 %v4739_v20, %v4709_v49  ;;  %v429_v49 = vsel %vm348_vm0, %v405_v54, 0.0 }
  0x5e   : > { %8256 = vst [vmem:[#allocation12_spill] sm:$0xff] %v4784_v59  ;;  %v4842_v32 = vpack.c.bf16 %v337_v28, %v336_v26  ;;  %v373_v35 = vsel %vm348_vm0, %v332_v2, 0.0  ;;  %v413_v37 = vmul.f32 %v4739_v20, %v316_v21  ;;  %8260 = vst [vmem:[#allocation16_spill] sm:$0xff] %v4861_v43  ;;  %v415_v48 = vmul.f32 %v4739_v20, %v318_v33 }
  0x5f   : > { %747 = vadd.xlane.f32.xlu0 %v746_v42  ;;  %v789_v47 = vadd.f32 %v788_v45, %v774_v40  ;;  %v417_v57 = vsel %vm348_vm0, %v401_v52, 0.0  ;;  %430 = vadd.xlane.f32.xlu1 %v429_v49  ;;  %v376_v40 = vsel %vm348_vm0, %v333_v3, 0.0  ;;  %v414_v42 = vmul.f32 %v4739_v20, %v317_v22 }
  0x60   : > { %8259 = vst [vmem:[#allocation15_spill] sm:$0xff] %v4842_v32  ;;  %v453_v41 = vsel %vm348_vm0, %v413_v37, 0.0  ;;  %v459_v50 = vsel %vm348_vm0, %v415_v48, 0.0  ;;  %v416_v51 = vmul.f32 %v4739_v20, %v319_v34  ;;  %v385_v52 = vsel %vm348_vm0, %v336_v26, 0.0 }
  0x61   : > { %v456_v45 = vsel %vm348_vm0, %v414_v42, 0.0  ;;  %v388_v54 = vsel %vm348_vm0, %v337_v28, 0.0  ;;  %v391_v55 = vsel %vm348_vm0, %v338_v38, 0.0  ;;  %v394_v56 = vsel %vm348_vm0, %v339_v39, 0.0 }
  0x62   : > { %4168 = vmatmul.mubr.msk.bf16.gmra.mrb[8].mxu0 %vm348_vm0, %v4764_v46  ;;  %v462_v53 = vsel %vm348_vm0, %v416_v51, 0.0 }
  0x63   : > { %790 = vadd.xlane.f32.xlu0 %v789_v47  ;;  %681 = vmatprep.mubr.bf16.mxu0 %v8062_v0  ;;  %v382_v47 = vsel %vm348_vm0, %v335_v15, 0.0 }
  0x64   : > { %433 = vadd.xlane.f32.xlu1 %v432_v63 }
  0x67   : > { %418 = vadd.xlane.f32.xlu0 %v417_v57 }
  0x68   : > { %436 = vadd.xlane.f32.xlu1 %v435_v5 }
  0x6a   : > { %4169 = vmatmul.mubr.msk.bf16.gmra.mrb[12].mxu0 %vm348_vm0, %v4784_v59 }
  0x6b   : > { %356 = vadd.xlane.f32.xlu0 %v355_v62  ;;  %691 = vmatprep.mubr.bf16.mxu0 %v8062_v0 }
  0x6c   : > { %439 = vadd.xlane.f32.xlu1 %v438_v12 }
  0x6f   : > { %359 = vadd.xlane.f32.xlu0 %v358_v4 }
  0x70   : > { %442 = vadd.xlane.f32.xlu1 %v441_v17 }
  0x72   : > { %4170 = vmatmul.mubr.msk.bf16.gmra.mrb[16].mxu0 %vm348_vm0, %v4804_v8  ;;  %v8302_v8 = vmov 0  }
  0x73   : > { %362 = vadd.xlane.f32.xlu0 %v361_v11  ;;  %701 = vmatprep.mubr.bf16.mxu0 %v8062_v0 }
  0x74   : > { %445 = vadd.xlane.f32.xlu1 %v444_v24 }
  0x77   : > { %365 = vadd.xlane.f32.xlu0 %v364_v16 }
  0x78   : > { %448 = vadd.xlane.f32.xlu1 %v447_v30 }
  0x7a   : > { %4171 = vmatmul.mubr.msk.bf16.gmra.mrb[20].mxu0 %vm348_vm0, %v4823_v19 }
  0x7b   : > { %368 = vadd.xlane.f32.xlu0 %v367_v23  ;;  %711 = vmatprep.mubr.bf16.mxu0 %v8062_v0 }
  0x7c   : > { %451 = vadd.xlane.f32.xlu1 %v450_v36 }
  0x7f   : > { %371 = vadd.xlane.f32.xlu0 %v370_v29 }
  0x80   : > { %454 = vadd.xlane.f32.xlu1 %v453_v41 }
  0x82   : > { %4172 = vmatmul.mubr.msk.bf16.gmra.mrb[24].mxu0 %vm348_vm0, %v4842_v32 }
  0x83   : > { %374 = vadd.xlane.f32.xlu0 %v373_v35  ;;  %721 = vmatprep.mubr.bf16.mxu0 %v8062_v0 }
  0x84   : > { %457 = vadd.xlane.f32.xlu1 %v456_v45 }
  0x87   : > { %377 = vadd.xlane.f32.xlu0 %v376_v40 }
  0x88   : > { %460 = vadd.xlane.f32.xlu1 %v459_v50 }
  0x8a   : > { %4173 = vmatmul.mubr.msk.bf16.gmra.mrb[28].mxu0 %vm348_vm0, %v4861_v43 }
  0x8b   : > { %380 = vadd.xlane.f32.xlu0 %v379_v44  ;;  %3815 = vmatprep.mubr.bf16.mxu0 %v8062_v0 }
  0x8c   : > { %463 = vadd.xlane.f32.xlu1 %v462_v53 }
  0x8f   : > { %383 = vadd.xlane.f32.xlu0 %v382_v47 }
  0x93   : > { %386 = vadd.xlane.f32.xlu0 %v385_v52 }
  0x97   : > { %389 = vadd.xlane.f32.xlu0 %v388_v54 }
  0x9b   : > { %392 = vadd.xlane.f32.xlu0 %v391_v55 }
  0x9f   : > { %395 = vadd.xlane.f32.xlu0 %v394_v56 }
  0xd8   : > { %v4943_v47 = vpop.xlane.xlu1 %350 }
  0xd9   : > { %8261 = vst [vmem:[#allocation17_spill] sm:$0xff] %v4943_v47 }
  0xdc   : > { %v4947_v51 = vpop.xlane.xlu1 %353 }
  0xdd   : > { %8262 = vst [vmem:[#allocation18_spill] sm:$0xff] %v4947_v51 }
  0xe0   : > { %v4951_v53 = vpop.xlane.xlu1 %421 }
  0xe1   : > { %8264 = vst [vmem:[#allocation20_spill] sm:$0xff] %v4951_v53 }
  0xe4   : > { %v4955_v55 = vpop.xlane.xlu1 %424 }
  0xe5   : > { %8266 = vst [vmem:[#allocation22_spill] sm:$0xff] %v4955_v55 }
  0xec   : > { %v748_v57 = vpop.xlane.xlu0 %747 }
  0xed   : > { %v749_v49 = vrot.slane %v748_v57, 4 }
  0xef   : > { %v750_v20 = vadd.f32 %v749_v49, %v748_v57  ;;  %v4959_v57 = vpop.xlane.xlu1 %427 }
  0xf0   : > { %v791_v58 = vpop.xlane.xlu0 %790  ;;  %8268 = vst [vmem:[#allocation24_spill] sm:$0xff] %v4959_v57 }
  0xf1   : > { %v792_v60 = vrot.slane %v791_v58, 4  ;;  %v751_v61 = vrot.slane %v750_v20, 2 }
  0xf3   : > { %v793_v62 = vadd.f32 %v792_v60, %v791_v58  ;;  %v752_v63 = vadd.f32 %v751_v61, %v750_v20  ;;  %v4964_v20 = vpop.xlane.xlu1 %430 }
  0xf4   : > { %v4949_v52 = vpop.xlane.xlu0 %418  ;;  %8270 = vst [vmem:[#allocation26_spill] sm:$0xff] %v4964_v20 }
  0xf5   : > { %v753_v1 = vrot.slane %v752_v63, 1  ;;  %v794_v2 = vrot.slane %v793_v62, 2  ;;  %8263 = vst [vmem:[#allocation19_spill] sm:$0xff] %v4949_v52 }
  0xf7   : > { %v754_v3 = vadd.f32 %v753_v1, %v752_v63  ;;  %v795_v4 = vadd.f32 %v794_v2, %v793_v62  ;;  %v4972_v62 = vpop.xlane.xlu1 %433 }
  0xf8   : > { %v4953_v54 = vpop.xlane.xlu0 %356  ;;  %8272 = vst [vmem:[#allocation28_spill] sm:$0xff] %v4972_v62 }
  0xf9   : > { %4224 = vpush %v754_v3  ;;  %v796_v5 = vrot.slane %v795_v4, 1  ;;  %8265 = vst [vmem:[#allocation21_spill] sm:$0xff] %v4953_v54 }
  0xfb   : > { %v797_v7 = vadd.f32 %v796_v5, %v795_v4 }
  0xfc   : > { %v4957_v56 = vpop.xlane.xlu0 %359 }
  0xfd   : > { %4226 = vpush %v797_v7  ;;  %8267 = vst [vmem:[#allocation23_spill] sm:$0xff] %v4957_v56  ;;  %v4985_v7 = vpop.xlane.xlu1 %436 }
  0xfe   : > { %8274 = vst [vmem:[#allocation30_spill] sm:$0xff] %v4985_v7 }
 0x100   : > { %v4961_v49 = vpop.xlane.xlu0 %362 }
 0x101   : > { %8269 = vst [vmem:[#allocation25_spill] sm:$0xff] %v4961_v49 }
 0x104   : > { %v4966_v58 = vpop.xlane.xlu0 %365 }
 0x105   : > { %8271 = vst [vmem:[#allocation27_spill] sm:$0xff] %v4966_v58 }
 0x108   : > { %v4974_v63 = vpop.xlane.xlu0 %368 }
 0x109   : > { %8273 = vst [vmem:[#allocation29_spill] sm:$0xff] %v4974_v63 }
 0x125   : > { %v4877_v9 = vpop.f32.mrb[0].mxu0 }
 0x126   : > { %v4879_v10 = vpop.f32.mrb[1].mxu0 }
 0x127   : > { %v4881_v11 = vpop.f32.mrb[2].mxu0 }
 0x128   : > { %v4883_v12 = vpop.f32.mrb[3].mxu0 }
 0x12a   : > { %s4225_s13 = spop %4224 }
 0x12b   : > { %s4885_s21 = smul.f32 6.1035156e-05, %s4225_s13 }
 0x12d   : > { %s802_s23 = smul.f32 %s4885_s21, %s4885_s21  ;;  %v4889_v13 = vpop.f32.mrb[4].mxu0 }
 0x12e   : > { %s4227_s24 = spop %4226  ;;  %v4891_v14 = vpop.f32.mrb[5].mxu0 }
 0x12f   : > { %s801_s25 = smul.f32 6.1035156e-05, %s4227_s24  ;;  %v4893_v15 = vpop.f32.mrb[6].mxu0  ;;  %s551_s24 = sld [smem:[#allocation2]] }
 0x130   : > { %v4895_v16 = vpop.f32.mrb[7].mxu0 }
 0x131   : > { %s803_s16 = ssub.f32 %s801_s25, %s802_s23  ;;  %s8220_s23 = smov 127  }
 0x133   : > { %s804_s19 = sadd.f32 1e-08, %s803_s16 }
 0x135   : > { %v805_v17 = vstv %s804_s19  ;;  %v4897_v18 = vpop.f32.mrb[8].mxu0 }
 0x136   : > { %4345 = vrsqrt.f32 %v805_v17  ;;  %v4899_v21 = vpop.f32.mrb[9].mxu0  ;;  %v4987_v17 = vpop.xlane.xlu0 %371 }
 0x137   : > { %v4901_v22 = vpop.f32.mrb[10].mxu0  ;;  %8275 = vst [vmem:[#allocation31_spill] sm:$0xff] %v4987_v17 }
 0x138   : > { %v4903_v23 = vpop.f32.mrb[11].mxu0 }
 0x13d   : > { %v4905_v24 = vpop.f32.mrb[12].mxu0 }
 0x13e   : > { %v4907_v25 = vpop.f32.mrb[13].mxu0 }
 0x13f   : > { %v4909_v28 = vpop.f32.mrb[14].mxu0 }
 0x140   : > { %v4346_v26 = vpop.eup %4345  ;;  %v4911_v29 = vpop.f32.mrb[15].mxu0 }
 0x141   : > { %4228 = vpush %v4346_v26 }
 0x145   : > { %v4913_v30 = vpop.f32.mrb[16].mxu0 }
 0x146   : > { %v4915_v31 = vpop.f32.mrb[17].mxu0 }
 0x147   : > { %v4917_v33 = vpop.f32.mrb[18].mxu0 }
 0x148   : > { %v4919_v34 = vpop.f32.mrb[19].mxu0 }
 0x14d   : > { %v4921_v35 = vpop.f32.mrb[20].mxu0 }
 0x14e   : > { %v4923_v36 = vpop.f32.mrb[21].mxu0 }
 0x14f   : > { %v4925_v37 = vpop.f32.mrb[22].mxu0 }
 0x150   : > { %v4927_v38 = vpop.f32.mrb[23].mxu0 }
 0x155   : > { %v4929_v39 = vpop.f32.mrb[24].mxu0 }
 0x156   : > { %v4931_v40 = vpop.f32.mrb[25].mxu0 }
 0x157   : > { %v4933_v41 = vpop.f32.mrb[26].mxu0 }
 0x158   : > { %v4935_v42 = vpop.f32.mrb[27].mxu0 }
 0x15d   : > { %v4937_v44 = vpop.f32.mrb[28].mxu0 }
 0x15e   : > { %v4939_v45 = vpop.f32.mrb[29].mxu0 }
 0x15f   : > { %v4941_v48 = vpop.f32.mrb[30].mxu0 }
 0x160   : > { %v4945_v50 = vpop.f32.mrb[31].mxu0 }
 0x172   : > { %s4229_s20 = spop %4228 }
 0x173   : > { %s808_s22 = smul.f32 %s4229_s20, %s4885_s21  ;;  %v4976_v1 = vstv %s4229_s20  ;;  %s4519_s21 = smov 1  }
 0x174   : > { %v843_v4 = vmul.f32 %v4976_v1, %v4877_v9  ;;  %v844_v5 = vmul.f32 %v4976_v1, %v4879_v10  ;;  %v846_v9 = vmul.f32 %v4976_v1, %v4883_v12  ;;  %v848_v12 = vmul.f32 %v4976_v1, %v4891_v14 }
 0x175   : > { %v4968_v60 = vstv %s808_s22 }
 0x176   : > { %v810_v61 = vmul.f32 %v4968_v60, %v4943_v47  ;;  %v811_v2 = vmul.f32 %v4968_v60, %v4947_v51  ;;  %v812_v26 = vmul.f32 %v4968_v60, %v4953_v54  ;;  %v813_v10 = vmul.f32 %v4968_v60, %v4957_v56  ;;  %v5003_v54 = vpop.xlane.xlu1 %439 }
 0x177   : > { %8276 = vst [vmem:[#allocation32_spill] sm:$0xff] %v5003_v54 }
 0x178   : > { %v826_v3 = vsub.f32 %v4949_v52, %v810_v61  ;;  %v827_v0 = vsub.f32 %v4951_v53, %v811_v2  ;;  %v845_v61 = vmul.f32 %v4976_v1, %v4881_v11  ;;  %v828_v52 = vsub.f32 %v4955_v55, %v812_v26  ;;  %v5005_v2 = vpop.xlane.xlu0 %374 }
 0x179   : > { %8277 = vst [vmem:[#allocation33_spill] sm:$0xff] %v5005_v2  ;;  %v847_v11 = vmul.f32 %v4976_v1, %v4889_v13 }
 0x17a   : > { %v875_v47 = vadd.f32 %v843_v4, %v826_v3  ;;  %v876_v43 = vadd.f32 %v844_v5, %v826_v3  ;;  %v877_v51 = vadd.f32 %v845_v61, %v827_v0  ;;  %v878_v3 = vadd.f32 %v846_v9, %v827_v0  ;;  %v5023_v14 = vpop.xlane.xlu1 %442 }
 0x17b   : > { %v814_v4 = vmul.f32 %v4968_v60, %v4961_v49  ;;  %v829_v5 = vsub.f32 %v4959_v57, %v813_v10  ;;  %v849_v61 = vmul.f32 %v4976_v1, %v4893_v15  ;;  %v880_v55 = vadd.f32 %v848_v12, %v828_v52  ;;  %8278 = vst [vmem:[#allocation34_spill] sm:$0xff] %v5023_v14 }
 0x17c   : > { %v4999_v32 = vmax.f32 %v875_v47, 0.0  ;;  %v5001_v19 = vmax.f32 %v876_v43, 0.0  ;;  %v879_v47 = vadd.f32 %v847_v11, %v828_v52  ;;  %v5014_v26 = vmax.f32 %v877_v51, 0.0  ;;  %v5029_v10 = vpop.xlane.xlu0 %377 }
 0x17d   : > { %v5020_v13 = vmax.f32 %v878_v3, 0.0  ;;  %v850_v9 = vmul.f32 %v4976_v1, %v4895_v16  ;;  %v815_v51 = vmul.f32 %v4968_v60, %v4966_v58  ;;  %8279 = vst [vmem:[#allocation35_spill] sm:$0xff] %v5029_v10  ;;  %v830_v11 = vsub.f32 %v4964_v20, %v814_v4 }
 0x17e   : > { %v939_v43 = vadd.f32 %v5001_v19, %v4999_v32  ;;  %v881_v57 = vadd.f32 %v849_v61, %v829_v5  ;;  %v5032_v49 = vmax.f32 %v879_v47, 0.0  ;;  %v982_v52 = vmul.f32 %v4999_v32, %v4999_v32  ;;  %v5052_v53 = vpop.xlane.xlu1 %445 }
 0x17f   : > { %v983_v3 = vmul.f32 %v5001_v19, %v5001_v19  ;;  %v851_v16 = vmul.f32 %v4976_v1, %v4897_v18  ;;  %v882_v12 = vadd.f32 %v850_v9, %v829_v5  ;;  %v852_v4 = vmul.f32 %v4976_v1, %v4899_v21  ;;  %8280 = vst [vmem:[#allocation36_spill] sm:$0xff] %v5052_v53 }
 0x180   : > { %v940_v0 = vadd.f32 %v939_v43, %v5014_v26  ;;  %v5041_v43 = vmax.f32 %v880_v55, 0.0  ;;  %v816_v47 = vmul.f32 %v4968_v60, %v4974_v63  ;;  %v831_v61 = vsub.f32 %v4972_v62, %v815_v51  ;;  %v5056_v5 = vpop.xlane.xlu0 %380 }
 0x181   : > { %v5049_v20 = vmax.f32 %v881_v57, 0.0  ;;  %v984_v18 = vmul.f32 %v5014_v26, %v5014_v26  ;;  %v1014_v55 = vadd.f32 %v983_v3, %v982_v52  ;;  %8281 = vst [vmem:[#allocation37_spill] sm:$0xff] %v5056_v5  ;;  %v853_v21 = vmul.f32 %v4976_v1, %v4901_v22 }
 0x182   : > { %v941_v15 = vadd.f32 %v940_v0, %v5020_v13  ;;  %v883_v0 = vadd.f32 %v851_v16, %v830_v11  ;;  %v884_v9 = vadd.f32 %v852_v4, %v830_v11  ;;  %v854_v57 = vmul.f32 %v4976_v1, %v4903_v23 }
 0x183   : > { %v985_v16 = vmul.f32 %v5020_v13, %v5020_v13  ;;  %v1015_v52 = vadd.f32 %v1014_v55, %v984_v18  ;;  %v832_v3 = vsub.f32 %v4985_v7, %v816_v47  ;;  %v885_v62 = vadd.f32 %v853_v21, %v831_v61  ;;  %v5080_v18 = vpop.xlane.xlu1 %448 }
 0x184   : > { %v942_v58 = vadd.f32 %v941_v15, %v5032_v49  ;;  %v5060_v15 = vmax.f32 %v882_v12, 0.0  ;;  %v5070_v63 = vmax.f32 %v883_v0, 0.0  ;;  %v855_v23 = vmul.f32 %v4976_v1, %v4905_v24  ;;  %8282 = vst [vmem:[#allocation38_spill] sm:$0xff] %v5080_v18 }
 0x185   : > { %v1016_v11 = vadd.f32 %v1015_v52, %v985_v16  ;;  %v886_v12 = vadd.f32 %v854_v57, %v831_v61  ;;  %v5077_v4 = vmax.f32 %v884_v9, 0.0  ;;  %v856_v47 = vmul.f32 %v4976_v1, %v4907_v25 }
 0x186   : > { %v943_v56 = vadd.f32 %v942_v58, %v5041_v43  ;;  %v817_v58 = vmul.f32 %v4968_v60, %v4987_v17  ;;  %v818_v0 = vmul.f32 %v4968_v60, %v5005_v2  ;;  %v987_v55 = vmul.f32 %v5041_v43, %v5041_v43 }
 0x187   : > { %v887_v61 = vadd.f32 %v855_v23, %v832_v3  ;;  %v5091_v9 = vmax.f32 %v885_v62, 0.0  ;;  %v988_v16 = vmul.f32 %v5049_v20, %v5049_v20  ;;  %v857_v52 = vmul.f32 %v4976_v1, %v4909_v28 }
 0x188   : > { %v944_v51 = vadd.f32 %v943_v56, %v5049_v20  ;;  %v986_v56 = vmul.f32 %v5032_v49, %v5032_v49  ;;  %v833_v24 = vsub.f32 %v5003_v54, %v817_v58  ;;  %v5098_v2 = vmax.f32 %v886_v12, 0.0 }
 0x189   : > { %v858_v58 = vmul.f32 %v4976_v1, %v4911_v29  ;;  %v819_v62 = vmul.f32 %v4968_v60, %v5029_v10  ;;  %v834_v23 = vsub.f32 %v5023_v14, %v818_v0  ;;  %v990_v12 = vmul.f32 %v5070_v63, %v5070_v63 }
 0x18a   : > { %v945_v22 = vadd.f32 %v944_v51, %v5060_v15  ;;  %v1017_v21 = vadd.f32 %v1016_v11, %v986_v56  ;;  %v5088_v51 = vpop.xlane.xlu0 %383 }
 0x18b   : > { %8283 = vst [vmem:[#allocation39_spill] sm:$0xff] %v5088_v51  ;;  %v890_v10 = vadd.f32 %v858_v58, %v833_v24 }
 0x18c   : > { %v946_v17 = vadd.f32 %v945_v22, %v5070_v63  ;;  %v1018_v25 = vadd.f32 %v1017_v21, %v987_v55  ;;  %v888_v22 = vadd.f32 %v856_v47, %v832_v3  ;;  %v889_v55 = vadd.f32 %v857_v52, %v833_v24  ;;  %v5111_v3 = vpop.xlane.xlu1 %451 }
 0x18d   : > { %v5108_v21 = vmax.f32 %v887_v61, 0.0  ;;  %8284 = vst [vmem:[#allocation40_spill] sm:$0xff] %v5111_v3  ;;  %v860_v61 = vmul.f32 %v4976_v1, %v4915_v31  ;;  %v991_v52 = vmul.f32 %v5077_v4, %v5077_v4  ;;  %v992_v24 = vmul.f32 %v5091_v9, %v5091_v9 }
 0x18e   : > { %v947_v57 = vadd.f32 %v946_v17, %v5077_v4  ;;  %v989_v17 = vmul.f32 %v5060_v15, %v5060_v15  ;;  %v1019_v11 = vadd.f32 %v1018_v25, %v988_v16  ;;  %v5115_v47 = vpop.xlane.xlu0 %386  ;;  %v5119_v16 = vmax.f32 %v888_v22, 0.0 }
 0x18f   : > { %8285 = vst [vmem:[#allocation41_spill] sm:$0xff] %v5115_v47  ;;  %v820_v25 = vmul.f32 %v4968_v60, %v5056_v5  ;;  %v5129_v14 = vmax.f32 %v889_v55, 0.0  ;;  %v861_v31 = vmul.f32 %v4976_v1, %v4917_v33  ;;  %v892_v58 = vadd.f32 %v860_v61, %v834_v23 }
 0x190   : > { %v948_v56 = vadd.f32 %v947_v57, %v5091_v9  ;;  %v1020_v29 = vadd.f32 %v1019_v11, %v989_v17  ;;  %v859_v57 = vmul.f32 %v4976_v1, %v4913_v30  ;;  %v835_v17 = vsub.f32 %v5052_v53, %v819_v62 }
 0x191   : > { %v862_v62 = vmul.f32 %v4976_v1, %v4919_v34  ;;  %v821_v55 = vmul.f32 %v4968_v60, %v5088_v51  ;;  %v836_v33 = vsub.f32 %v5080_v18, %v820_v25  ;;  %v5157_v51 = vmax.f32 %v892_v58, 0.0 }
 0x192   : > { %v949_v28 = vadd.f32 %v948_v56, %v5098_v2  ;;  %v1021_v56 = vadd.f32 %v1020_v29, %v990_v12  ;;  %v891_v11 = vadd.f32 %v859_v57, %v834_v23  ;;  %v5139_v12 = vpop.xlane.xlu1 %454  ;;  %v993_v29 = vmul.f32 %v5098_v2, %v5098_v2 }
 0x193   : > { %8286 = vst [vmem:[#allocation42_spill] sm:$0xff] %v5139_v12  ;;  %v864_v25 = vmul.f32 %v4976_v1, %v4923_v36  ;;  %v996_v58 = vmul.f32 %v5129_v14, %v5129_v14 }
 0x194   : > { %v950_v0 = vadd.f32 %v949_v28, %v5108_v21  ;;  %v1022_v22 = vadd.f32 %v1021_v56, %v991_v52  ;;  %v5136_v28 = vmax.f32 %v890_v10, 0.0  ;;  %v893_v10 = vadd.f32 %v861_v31, %v835_v17 }
 0x195   : > { %v5150_v23 = vmax.f32 %v891_v11, 0.0  ;;  %v994_v52 = vmul.f32 %v5108_v21, %v5108_v21  ;;  %v863_v56 = vmul.f32 %v4976_v1, %v4921_v35  ;;  %v822_v11 = vmul.f32 %v4968_v60, %v5115_v47 }
 0x196   : > { %v951_v30 = vadd.f32 %v950_v0, %v5119_v16  ;;  %v1023_v57 = vadd.f32 %v1022_v22, %v992_v24  ;;  %v5147_v0 = vpop.xlane.xlu0 %389  ;;  %v837_v31 = vsub.f32 %v5111_v3, %v821_v55  ;;  %v896_v47 = vadd.f32 %v864_v25, %v836_v33 }
 0x197   : > { %8287 = vst [vmem:[#allocation43_spill] sm:$0xff] %v5147_v0 }
 0x198   : > { %v952_v5 = vadd.f32 %v951_v30, %v5129_v14  ;;  %v1024_v34 = vadd.f32 %v1023_v57, %v993_v29  ;;  %v894_v30 = vadd.f32 %v862_v62, %v835_v17  ;;  %v895_v29 = vadd.f32 %v863_v56, %v836_v33  ;;  %v5170_v17 = vpop.xlane.xlu1 %457 }
 0x199   : > { %v5167_v57 = vmax.f32 %v893_v10, 0.0  ;;  %8288 = vst [vmem:[#allocation44_spill] sm:$0xff] %v5170_v17  ;;  %v866_v10 = vmul.f32 %v4976_v1, %v4927_v38  ;;  %v997_v56 = vmul.f32 %v5136_v28, %v5136_v28  ;;  %v998_v33 = vmul.f32 %v5150_v23, %v5150_v23 }
 0x19a   : > { %v953_v61 = vadd.f32 %v952_v5, %v5136_v28  ;;  %v995_v5 = vmul.f32 %v5119_v16, %v5119_v16  ;;  %v1025_v22 = vadd.f32 %v1024_v34, %v994_v52  ;;  %v5174_v62 = vpop.xlane.xlu0 %392  ;;  %v5178_v52 = vmax.f32 %v894_v30, 0.0 }
 0x19b   : > { %8289 = vst [vmem:[#allocation45_spill] sm:$0xff] %v5174_v62  ;;  %v823_v34 = vmul.f32 %v4968_v60, %v5147_v0  ;;  %v5188_v3 = vmax.f32 %v895_v29, 0.0  ;;  %v867_v38 = vmul.f32 %v4976_v1, %v4929_v39  ;;  %v898_v25 = vadd.f32 %v866_v10, %v837_v31 }
 0x19c   : > { %v954_v24 = vadd.f32 %v953_v61, %v5150_v23  ;;  %v1026_v36 = vadd.f32 %v1025_v22, %v995_v5  ;;  %v865_v61 = vmul.f32 %v4976_v1, %v4925_v37  ;;  %8290 = vst [vmem:[#allocation46_spill] sm:$0xff] %v5178_v52  ;;  %v838_v5 = vsub.f32 %v5139_v12, %v822_v11 }
 0x19d   : > { %v868_v11 = vmul.f32 %v4976_v1, %v4931_v40  ;;  %v824_v29 = vmul.f32 %v4968_v60, %v5174_v62  ;;  %v839_v39 = vsub.f32 %v5170_v17, %v823_v34  ;;  %v1000_v40 = vmul.f32 %v5167_v57, %v5167_v57 }
 0x19e   : > { %v955_v35 = vadd.f32 %v954_v24, %v5157_v51  ;;  %v1027_v24 = vadd.f32 %v1026_v36, %v996_v58  ;;  %v897_v22 = vadd.f32 %v865_v61, %v837_v31  ;;  %v5202_v58 = vpop.xlane.xlu1 %460  ;;  %v999_v36 = vmul.f32 %v5157_v51, %v5157_v51 }
 0x19f   : > { %8291 = vst [vmem:[#allocation47_spill] sm:$0xff] %v5202_v58  ;;  %v5216_v62 = vmax.f32 %v898_v25, 0.0  ;;  %v870_v34 = vmul.f32 %v4976_v1, %v4935_v42  ;;  %v1002_v25 = vmul.f32 %v5188_v3, %v5188_v3  ;;  %v8301_v12 = vmov 4  }
 0x1a0   : > { %v956_v55 = vadd.f32 %v955_v35, %v5167_v57  ;;  %v1028_v30 = vadd.f32 %v1027_v24, %v997_v56  ;;  %v5195_v35 = vmax.f32 %v896_v47, 0.0  ;;  %v899_v47 = vadd.f32 %v867_v38, %v838_v5 }
 0x1a1   : > { %v5209_v31 = vmax.f32 %v897_v22, 0.0  ;;  %v869_v24 = vmul.f32 %v4976_v1, %v4933_v41  ;;  %8293 = vst [vmem:[#allocation49_spill] sm:$0xff] %v5216_v62  ;;  %v840_v38 = vsub.f32 %v5202_v58, %v824_v29  ;;  %v872_v29 = vmul.f32 %v4976_v1, %v4939_v45 }
 0x1a2   : > { %v957_v37 = vadd.f32 %v956_v55, %v5178_v52  ;;  %v1029_v61 = vadd.f32 %v1028_v30, %v998_v33  ;;  %v5206_v55 = vpop.xlane.xlu0 %395 }
 0x1a3   : > { %8292 = vst [vmem:[#allocation48_spill] sm:$0xff] %v5206_v55  ;;  %v825_v22 = vmul.f32 %v4968_v60, %v5206_v55  ;;  %v871_v60 = vmul.f32 %v4976_v1, %v4937_v44  ;;  %v1004_v44 = vmul.f32 %v5209_v31, %v5209_v31 }
 0x1a4   : > { %v958_v0 = vadd.f32 %v957_v37, %v5188_v3  ;;  %v1030_v56 = vadd.f32 %v1029_v61, %v999_v36  ;;  %v900_v37 = vadd.f32 %v868_v11, %v838_v5  ;;  %v901_v36 = vadd.f32 %v869_v24, %v839_v39  ;;  %v5229_v5 = vpop.xlane.xlu1 %463 }
 0x1a5   : > { %v5226_v61 = vmax.f32 %v899_v47, 0.0  ;;  %8294 = vst [vmem:[#allocation50_spill] sm:$0xff] %v5229_v5  ;;  %v902_v11 = vadd.f32 %v870_v34, %v839_v39  ;;  %v1003_v47 = vmul.f32 %v5195_v35, %v5195_v35  ;;  %v903_v24 = vadd.f32 %v871_v60, %v840_v38 }
 0x1a6   : > { %v959_v10 = vadd.f32 %v958_v0, %v5195_v35  ;;  %v1001_v0 = vmul.f32 %v5178_v52, %v5178_v52  ;;  %v1031_v30 = vadd.f32 %v1030_v56, %v1000_v40  ;;  %v5243_v58 = vmax.f32 %v901_v36, 0.0 }
 0x1a7   : > { %v904_v34 = vadd.f32 %v872_v29, %v840_v38  ;;  %v5250_v45 = vmax.f32 %v902_v11, 0.0  ;;  %v5255_v36 = vmax.f32 %v903_v24, 0.0 }
 0x1a8   : > { %v960_v33 = vadd.f32 %v959_v10, %v5209_v31  ;;  %v1032_v42 = vadd.f32 %v1031_v30, %v1001_v0  ;;  %v5235_v10 = vmax.f32 %v900_v37, 0.0  ;;  %8295 = vst [vmem:[#allocation51_spill] sm:$0xff] %v5243_v58  ;;  %v873_v37 = vmul.f32 %v4976_v1, %v4941_v48 }
 0x1a9   : > { %8296 = vst [vmem:[#allocation52_spill] sm:$0xff] %v5250_v45  ;;  %8297 = vst [vmem:[#allocation53_spill] sm:$0xff] %v5255_v36  ;;  %v1006_v48 = vmul.f32 %v5226_v61, %v5226_v61  ;;  %v5262_v11 = vmax.f32 %v904_v34, 0.0 }
 0x1aa   : > { %v961_v41 = vadd.f32 %v960_v33, %v5216_v62  ;;  %v1033_v56 = vadd.f32 %v1032_v42, %v1002_v25  ;;  %v841_v33 = vsub.f32 %v5229_v5, %v825_v22  ;;  %v874_v25 = vmul.f32 %v4976_v1, %v4945_v50 }
 0x1ab   : > { %8298 = vst [vmem:[#allocation54_spill] sm:$0xff] %v5262_v11  ;;  %v1008_v1 = vmul.f32 %v5243_v58, %v5243_v58 }
 0x1ac   : > { %v962_v40 = vadd.f32 %v961_v41, %v5226_v61  ;;  %v1034_v39 = vadd.f32 %v1033_v56, %v1003_v47  ;;  %v1005_v41 = vmul.f32 %v5216_v62, %v5216_v62  ;;  %v905_v42 = vadd.f32 %v873_v37, %v841_v33 }
 0x1ad   : > { %v1007_v47 = vmul.f32 %v5235_v10, %v5235_v10 }
 0x1ae   : > { %v963_v0 = vadd.f32 %v962_v40, %v5235_v10  ;;  %v1035_v22 = vadd.f32 %v1034_v39, %v1004_v44  ;;  %v906_v40 = vadd.f32 %v874_v25, %v841_v33  ;;  %v5267_v24 = vmax.f32 %v905_v42, 0.0 }
 0x1af   : > { %v1009_v33 = vmul.f32 %v5250_v45, %v5250_v45 }
 0x1b0   : > { %v964_v30 = vadd.f32 %v963_v0, %v5243_v58  ;;  %v1036_v38 = vadd.f32 %v1035_v22, %v1005_v41  ;;  %8299 = vst [vmem:[#allocation55_spill] sm:$0xff] %v5267_v24  ;;  %v5272_v44 = vmax.f32 %v906_v40, 0.0  ;;  %v1011_v22 = vmul.f32 %v5262_v11, %v5262_v11 }
 0x1b1   : > { %v1012_v42 = vmul.f32 %v5267_v24, %v5267_v24 }
 0x1b2   : > { %v965_v60 = vadd.f32 %v964_v30, %v5250_v45  ;;  %v1037_v56 = vadd.f32 %v1036_v38, %v1006_v48  ;;  %8300 = vst [vmem:[#allocation56_spill] sm:$0xff] %v5272_v44  ;;  %v1010_v30 = vmul.f32 %v5255_v36, %v5255_v36  ;;  %v1013_v48 = vmul.f32 %v5272_v44, %v5272_v44 }
 0x1b4   : > { %v966_v29 = vadd.f32 %v965_v60, %v5255_v36  ;;  %v1038_v0 = vadd.f32 %v1037_v56, %v1007_v47  ;;  %v5289_v47 = vld [vmem:[%s8056_s3] sm:$0xff]  ;;  %v5295_v56 = vld [vmem:[%s8056_s3 + $0x8] sm:$0xff] }
 0x1b6   : > { %v967_v50 = vadd.f32 %v966_v29, %v5262_v11  ;;  %v1039_v37 = vadd.f32 %v1038_v0, %v1008_v1  ;;  %v4515_v29 = vmov 2   ;;  %v5304_v1 = vld [vmem:[%s8056_s3 + $0x10] sm:$0xff]  ;;  %v8092_v0 = vmov 4  }
 0x1b7   : > { %4317 = vset.pattern.permute.xlu1 %v4515_v29 }
 0x1b8   : > { %v968_v39 = vadd.f32 %v967_v50, %v5267_v24  ;;  %v1040_v41 = vadd.f32 %v1039_v37, %v1009_v33  ;;  %v4516_v50 = vmov 3   ;;  %v5322_v33 = vld [vmem:[%s8056_s3 + $0x18] sm:$0xff]  ;;  %v5329_v37 = vld [vmem:[%s8056_s3 + $0x30] sm:$0xff] }
 0x1b9   : > { %4318 = vset.pattern.permute.xlu0 %v4516_v50 }
 0x1ba   : > { %v969_v34 = vadd.f32 %v968_v39, %v5272_v44  ;;  %v1041_v25 = vadd.f32 %v1040_v41, %v1010_v30  ;;  %v5317_v39 = vld [vmem:[%s8056_s3 + $0x20] sm:$0xff]  ;;  %v5344_v30 = vld [vmem:[%s8056_s3 + $0x50] sm:$0xff]  ;;  %v5352_v41 = vld [vmem:[%s8056_s3 + $0x28] sm:$0xff] }
 0x1bc   : > { %970 = vadd.xlane.f32.xlu0 %v969_v34  ;;  %v1042_v60 = vadd.f32 %v1041_v25, %v1011_v22  ;;  %v5336_v34 = vld [vmem:[%s8056_s3 + $0x40] sm:$0xff]  ;;  %v5368_v25 = vld [vmem:[%s8056_s3 + $0x38] sm:$0xff] }
 0x1bd   : > { %v5360_v22 = vld [vmem:[%s8056_s3 + $0x60] sm:$0xff] }
 0x1be   : > { %v1043_v38 = vadd.f32 %v1042_v60, %v1012_v42  ;;  %v5374_v42 = vld [vmem:[%s8056_s3 + $0x70] sm:$0xff]  ;;  %v5386_v60 = vld [vmem:[%s8056_s3 + $0x48] sm:$0xff] }
 0x1c0   : > { %v1044_v40 = vadd.f32 %v1043_v38, %v1013_v48  ;;  %v5399_v48 = vld [vmem:[%s8056_s3 + $0x58] sm:$0xff]  ;;  %v5413_v38 = vld [vmem:[%s8056_s3 + $0x68] sm:$0xff] }
 0x1c2   : > { %1045 = vadd.xlane.f32.xlu1 %v1044_v40  ;;  %v5426_v40 = vld [vmem:[%s8056_s3 + $0x78] sm:$0xff] }
 0x1d2   : > { %1784 = vperm.xlu0 %4318, %v5289_v47  }
 0x1d3   : > { %1673 = vperm.xlu1 %4317, %v5289_v47  }
 0x1d6   : > { %1792 = vperm.xlu0 %4318, %v5304_v1  }
 0x1d7   : > { %1678 = vperm.xlu1 %4317, %v5295_v56  }
 0x1da   : > { %4322 = vset.pattern.permute.xlu0 %v8092_v0 }
 0x1db   : > { %4319 = vset.pattern.permute.xlu1 %v4516_v50  ;;  %1912 = vperm.xlu0 %4322, %v5289_v47  }
 0x1dc   : > { %1788 = vperm.xlu1 %4319, %v5295_v56  }
 0x1df   : > { %1920 = vperm.xlu0 %4322, %v5304_v1  }
 0x1e0   : > { %4320 = vset.pattern.permute.xlu1 %v8092_v0 }
 0x1e1   : > { %1916 = vperm.xlu1 %4320, %v5295_v56  }
 0x1e3   : > { %1928 = vperm.xlu0 %4322, %v5317_v39  }
 0x1e5   : > { %4321 = vset.pattern.permute.xlu1 %v4515_v29 }
 0x1e6   : > { %1683 = vperm.xlu1 %4321, %v5304_v1  }
 0x1e7   : > { %1936 = vperm.xlu0 %4322, %v5329_v37  }
 0x1ea   : > { %4323 = vset.pattern.permute.xlu1 %v4516_v50 }
 0x1eb   : > { %1796 = vperm.xlu1 %4323, %v5322_v33   ;;  %1944 = vperm.xlu0 %4322, %v5336_v34  }
 0x1ef   : > { %4324 = vset.pattern.permute.xlu1 %v8092_v0  ;;  %1952 = vperm.xlu0 %4322, %v5344_v30  }
 0x1f0   : > { %1924 = vperm.xlu1 %4324, %v5322_v33  }
 0x1f3   : > { %1960 = vperm.xlu0 %4322, %v5360_v22  }
 0x1f4   : > { %4325 = vset.pattern.permute.xlu1 %v4516_v50 }
 0x1f5   : > { %1800 = vperm.xlu1 %4325, %v5317_v39  }
 0x1f7   : > { %1968 = vperm.xlu0 %4322, %v5374_v42  }
 0x1f9   : > { %1804 = vperm.xlu1 %4325, %v5352_v41  }
 0x1fb   : > { %4336 = vset.pattern.permute.xlu0 %v4515_v29 }
 0x1fc   : > { %1688 = vperm.xlu0 %4336, %v5322_v33  }
 0x1fd   : > { %4326 = vset.pattern.permute.xlu1 %v8092_v0 }
 0x1fe   : > { %1932 = vperm.xlu1 %4326, %v5352_v41  }
 0x200   : > { %1693 = vperm.xlu0 %4336, %v5317_v39  }
 0x202   : > { %4327 = vset.pattern.permute.xlu1 %v4516_v50 }
 0x203   : > { %1808 = vperm.xlu1 %4327, %v5329_v37  }
 0x204   : > { %1698 = vperm.xlu0 %4336, %v5352_v41  }
 0x207   : > { %1812 = vperm.xlu1 %4327, %v5368_v25  }
 0x208   : > { %1703 = vperm.xlu0 %4336, %v5329_v37  }
 0x20b   : > { %4328 = vset.pattern.permute.xlu1 %v8092_v0 }
 0x20c   : > { %1940 = vperm.xlu1 %4328, %v5368_v25   ;;  %1708 = vperm.xlu0 %4336, %v5368_v25  }
 0x210   : > { %4329 = vset.pattern.permute.xlu1 %v4516_v50  ;;  %1713 = vperm.xlu0 %4336, %v5336_v34  }
 0x211   : > { %1816 = vperm.xlu1 %4329, %v5336_v34  }
 0x214   : > { %1718 = vperm.xlu0 %4336, %v5386_v60  }
 0x215   : > { %1820 = vperm.xlu1 %4329, %v5386_v60  }
 0x218   : > { %1723 = vperm.xlu0 %4336, %v5344_v30  }
 0x219   : > { %4330 = vset.pattern.permute.xlu1 %v8092_v0 }
 0x21a   : > { %1948 = vperm.xlu1 %4330, %v5386_v60  }
 0x21c   : > { %1728 = vperm.xlu0 %4336, %v5399_v48  }
 0x21e   : > { %4331 = vset.pattern.permute.xlu1 %v4516_v50 }
 0x21f   : > { %1824 = vperm.xlu1 %4331, %v5344_v30  }
 0x220   : > { %1733 = vperm.xlu0 %4336, %v5360_v22  }
 0x223   : > { %1828 = vperm.xlu1 %4331, %v5399_v48  }
 0x224   : > { %1738 = vperm.xlu0 %4336, %v5413_v38  }
 0x227   : > { %4332 = vset.pattern.permute.xlu1 %v8092_v0 }
 0x228   : > { %1956 = vperm.xlu1 %4332, %v5399_v48   ;;  %1743 = vperm.xlu0 %4336, %v5374_v42  }
 0x22c   : > { %4333 = vset.pattern.permute.xlu1 %v4516_v50  ;;  %1748 = vperm.xlu0 %4336, %v5426_v40  }
 0x22d   : > { %1832 = vperm.xlu1 %4333, %v5360_v22  }
 0x231   : > { %1836 = vperm.xlu1 %4333, %v5413_v38  }
 0x235   : > { %4334 = vset.pattern.permute.xlu1 %v8092_v0 }
 0x236   : > { %1964 = vperm.xlu1 %4334, %v5413_v38  }
 0x23a   : > { %4335 = vset.pattern.permute.xlu1 %v4516_v50 }
 0x23b   : > { %1840 = vperm.xlu1 %4335, %v5374_v42  }
 0x23f   : > { %1844 = vperm.xlu1 %4335, %v5426_v40  }
 0x243   : > { %4337 = vset.pattern.permute.xlu1 %v8301_v12 }
 0x244   : > { %1972 = vperm.xlu1 %4337, %v5426_v40  }
 0x248   : > { %4338 = vset.pattern.permute.xlu1 %v8302_v8 }
 0x249   : > { %v971_v29 = vpop.xlane.xlu0 %970 }
 0x24a   : > { %v972_v5 = vrot.slane %v971_v29, 4 }
 0x24c   : > { %v973_v0 = vadd.f32 %v972_v5, %v971_v29 }
 0x24e   : > { %v974_v55 = vrot.slane %v973_v0, 2 }
 0x24f   : > { %v1046_v50 = vpop.xlane.xlu1 %1045 }
 0x250   : > { %v975_v17 = vadd.f32 %v974_v55, %v973_v0  ;;  %v1047_v53 = vrot.slane %v1046_v50, 4 }
 0x252   : > { %v976_v18 = vrot.slane %v975_v17, 1  ;;  %v1048_v7 = vadd.f32 %v1047_v53, %v1046_v50  ;;  %v5433_v53 = vpop.permute.xlu0 %1784 }
 0x253   : > { %8303 = vst [vmem:[#allocation57_spill] sm:$0xff] %v5433_v53 }
 0x254   : > { %v977_v54 = vadd.f32 %v976_v18, %v975_v17  ;;  %v1049_v59 = vrot.slane %v1048_v7, 2 }
 0x256   : > { %4230 = vpush %v977_v54  ;;  %v1050_v46 = vadd.f32 %v1049_v59, %v1048_v7  ;;  %v5435_v18 = vpop.permute.xlu0 %1792  ;;  %v8104_v59 = vmov 1  }
 0x257   : > { %8304 = vst [vmem:[#allocation58_spill] sm:$0xff] %v5435_v18  ;;  %4339 = vset.pattern.permute.xlu0 %v8104_v59 }
 0x258   : > { %v1051_v27 = vrot.slane %v1050_v46, 1 }
 0x25a   : > { %v1052_v5 = vadd.f32 %v1051_v27, %v1050_v46  ;;  %v5437_v54 = vpop.permute.xlu0 %1912  ;;  %v5440_v27 = vpop.permute.xlu1 %1673 }
 0x25b   : > { %8305 = vst [vmem:[#allocation59_spill] sm:$0xff] %v5437_v54  ;;  %8306 = vst [vmem:[#allocation60_spill] sm:$0xff] %v5440_v27 }
 0x25c   : > { %4232 = vpush %v1052_v5 }
 0x25e   : > { %v5442_v46 = vpop.permute.xlu0 %1920  ;;  %v5446_v17 = vpop.permute.xlu1 %1678 }
 0x25f   : > { %8307 = vst [vmem:[#allocation61_spill] sm:$0xff] %v5442_v46  ;;  %8308 = vst [vmem:[#allocation62_spill] sm:$0xff] %v5446_v17 }
 0x262   : > { %v5462_v59 = vpop.permute.xlu0 %1928 }
 0x263   : > { %8310 = vst [vmem:[#allocation64_spill] sm:$0xff] %v5462_v59 }
 0x266   : > { %v5476_v18 = vpop.permute.xlu0 %1936 }
 0x267   : > { %8312 = vst [vmem:[#allocation66_spill] sm:$0xff] %v5476_v18 }
 0x26a   : > { %v5487_v54 = vpop.permute.xlu0 %1944 }
 0x26b   : > { %8314 = vst [vmem:[#allocation68_spill] sm:$0xff] %v5487_v54 }
 0x26e   : > { %v5500_v54 = vpop.permute.xlu0 %1952 }
 0x26f   : > { %8316 = vst [vmem:[#allocation70_spill] sm:$0xff] %v5500_v54 }
 0x272   : > { %v5511_v62 = vpop.permute.xlu0 %1960 }
 0x273   : > { %8318 = vst [vmem:[#allocation72_spill] sm:$0xff] %v5511_v62 }
 0x287   : > { %s4231_s16 = spop %4230 }
 0x288   : > { %s981_s19 = smul.f32 3.0517578e-05, %s4231_s16 }
 0x28a   : > { %s1057_s20 = smul.f32 %s981_s19, %s981_s19  ;;  %v5450_v29 = vstv %s981_s19 }
 0x28d   : > { %s4233_s22 = spop %4232 }
 0x28e   : > { %s1056_s30 = smul.f32 3.0517578e-05, %s4233_s22 }
 0x290   : > { %s1058_s9 = ssub.f32 %s1056_s30, %s1057_s20 }
 0x292   : > { %s1059_s17 = sadd.f32 1e-08, %s1058_s9 }
 0x294   : > { %v1060_v12 = vstv %s1059_s17 }
 0x295   : > { %4347 = vrsqrt.f32 %v1060_v12  ;;  %v5455_v12 = vpop.permute.xlu1 %1788 }
 0x296   : > { %8309 = vst [vmem:[#allocation63_spill] sm:$0xff] %v5455_v12 }
 0x299   : > { %v5471_v46 = vpop.permute.xlu1 %1916 }
 0x29a   : > { %8311 = vst [vmem:[#allocation65_spill] sm:$0xff] %v5471_v46 }
 0x29d   : > { %v5484_v46 = vpop.permute.xlu1 %1683 }
 0x29e   : > { %8313 = vst [vmem:[#allocation67_spill] sm:$0xff] %v5484_v46 }
 0x29f   : > { %v4348_v55 = vpop.eup %4347 }
 0x2a0   : > { %4234 = vpush %v4348_v55 }
 0x2a1   : > { %v5495_v53 = vpop.permute.xlu1 %1796 }
 0x2a2   : > { %8315 = vst [vmem:[#allocation69_spill] sm:$0xff] %v5495_v53 }
 0x2a5   : > { %v5506_v27 = vpop.permute.xlu1 %1924 }
 0x2a6   : > { %8317 = vst [vmem:[#allocation71_spill] sm:$0xff] %v5506_v27 }
 0x2d1   : > { %s4235_s13 = spop %4234 }
 0x2d2   : > { %v5444_v7 = vstv %s4235_s13 }
 0x2d3   : > { %v1064_v0 = vmul.f32 %v5444_v7, %v5289_v47  ;;  %v1068_v5 = vmul.f32 %v5444_v7, %v5317_v39  ;;  %v5460_v55 = vmul.f32 %v5444_v7, %v5295_v56  ;;  %v1066_v44 = vmul.f32 %v5444_v7, %v5304_v1 }
 0x2d4   : > { %v1072_v59 = vmul.f32 %v5444_v7, %v5336_v34  ;;  %v1067_v12 = vmul.f32 %v5444_v7, %v5322_v33  ;;  %v1074_v17 = vmul.f32 %v5444_v7, %v5344_v30  ;;  %v1069_v45 = vmul.f32 %v5444_v7, %v5352_v41 }
 0x2d5   : > { %1082 = vperm.xlu1 %4338, %v1064_v0   ;;  %v1193_v50 = vmul.f32 %v5450_v29, %v1064_v0  ;;  %v1197_v6 = vmul.f32 %v5450_v29, %v1068_v5  ;;  %v1070_v0 = vmul.f32 %v5444_v7, %v5329_v37  ;;  %v1071_v53 = vmul.f32 %v5444_v7, %v5368_v25 }
 0x2d6   : > { %v1203_v18 = vmul.f32 %v5450_v29, %v1074_v17  ;;  %v1073_v27 = vmul.f32 %v5444_v7, %v5386_v60  ;;  %v1075_v24 = vmul.f32 %v5444_v7, %v5399_v48 }
 0x2d7   : > { %1225 = vrot.lane.b32.xlu0 %v1193_v50, %s4519_s21  ;;  %v1199_v50 = vmul.f32 %v5450_v29, %v1070_v0 }
 0x2d9   : > { %1087 = vperm.xlu1 %4338, %v5460_v55  }
 0x2db   : > { %1233 = vrot.lane.b32.xlu0 %v1197_v6, %s4519_s21  ;;  %v1201_v6 = vmul.f32 %v5450_v29, %v1072_v59 }
 0x2dd   : > { %1092 = vperm.xlu1 %4338, %v1066_v44  }
 0x2df   : > { %1237 = vrot.lane.b32.xlu0 %v1199_v50, %s4519_s21  ;;  %v1076_v50 = vmul.f32 %v5444_v7, %v5360_v22 }
 0x2e1   : > { %1097 = vperm.xlu1 %4338, %v1067_v12   ;;  %v1205_v46 = vmul.f32 %v5450_v29, %v1076_v50 }
 0x2e3   : > { %1241 = vrot.lane.b32.xlu0 %v1201_v6, %s4519_s21  ;;  %v1078_v6 = vmul.f32 %v5444_v7, %v5374_v42 }
 0x2e5   : > { %1102 = vperm.xlu1 %4338, %v1068_v5   ;;  %v1207_v5 = vmul.f32 %v5450_v29, %v1078_v6 }
 0x2e7   : > { %1245 = vrot.lane.b32.xlu0 %v1203_v18, %s4519_s21  ;;  %v1079_v18 = vmul.f32 %v5444_v7, %v5426_v40 }
 0x2e9   : > { %1107 = vperm.xlu1 %4338, %v1069_v45   ;;  %v1208_v54 = vmul.f32 %v5450_v29, %v1079_v18 }
 0x2eb   : > { %1249 = vrot.lane.b32.xlu0 %v1205_v46, %s4519_s21  ;;  %v5515_v46 = vpop.permute.xlu1 %1800 }
 0x2ec   : > { %8319 = vst [vmem:[#allocation73_spill] sm:$0xff] %v5515_v46 }
 0x2ed   : > { %1112 = vperm.xlu1 %4338, %v1070_v0   ;;  %v5517_v0 = vpop.permute.xlu0 %1968 }
 0x2ee   : > { %8320 = vst [vmem:[#allocation74_spill] sm:$0xff] %v5517_v0  ;;  %v1077_v0 = vmul.f32 %v5444_v7, %v5413_v38  ;;  %v8332_v7 = vmov 1  }
 0x2ef   : > { %1253 = vrot.lane.b32.xlu0 %v1207_v5, %s4519_s21  ;;  %v5521_v5 = vpop.permute.xlu1 %1804 }
 0x2f0   : > { %8321 = vst [vmem:[#allocation75_spill] sm:$0xff] %v5521_v5 }
 0x2f1   : > { %1117 = vperm.xlu1 %4338, %v1071_v53   ;;  %v5523_v52 = vpop.permute.xlu0 %1688 }
 0x2f2   : > { %8322 = vst [vmem:[#allocation76_spill] sm:$0xff] %v5523_v52 }
 0x2f3   : > { %1255 = vrot.lane.b32.xlu0 %v1208_v54, %s4519_s21  ;;  %v5525_v62 = vpop.permute.xlu1 %1932 }
 0x2f4   : > { %8323 = vst [vmem:[#allocation77_spill] sm:$0xff] %v5525_v62 }
 0x2f5   : > { %1122 = vperm.xlu1 %4338, %v1072_v59   ;;  %v5529_v54 = vpop.permute.xlu0 %1693 }
 0x2f6   : > { %8324 = vst [vmem:[#allocation78_spill] sm:$0xff] %v5529_v54  ;;  %v1194_v54 = vmul.f32 %v5450_v29, %v5460_v55 }
 0x2f7   : > { %v5531_v59 = vpop.permute.xlu1 %1808 }
 0x2f8   : > { %8325 = vst [vmem:[#allocation79_spill] sm:$0xff] %v5531_v59  ;;  %v1195_v59 = vmul.f32 %v5450_v29, %v1066_v44  ;;  %v1200_v44 = vmul.f32 %v5450_v29, %v1071_v53  ;;  %v1206_v53 = vmul.f32 %v5450_v29, %v1077_v0 }
 0x2f9   : > { %1127 = vperm.xlu1 %4338, %v1073_v27   ;;  %v5535_v46 = vpop.permute.xlu0 %1698 }
 0x2fa   : > { %8326 = vst [vmem:[#allocation80_spill] sm:$0xff] %v5535_v46 }
 0x2fb   : > { %v5537_v5 = vpop.permute.xlu1 %1812 }
 0x2fc   : > { %8327 = vst [vmem:[#allocation81_spill] sm:$0xff] %v5537_v5 }
 0x2fd   : > { %1132 = vperm.xlu1 %4338, %v1074_v17   ;;  %v5539_v17 = vpop.permute.xlu0 %1703 }
 0x2fe   : > { %8328 = vst [vmem:[#allocation82_spill] sm:$0xff] %v5539_v17 }
 0x2ff   : > { %v5541_v62 = vpop.permute.xlu1 %1940 }
 0x300   : > { %8329 = vst [vmem:[#allocation83_spill] sm:$0xff] %v5541_v62 }
 0x301   : > { %1137 = vperm.xlu1 %4338, %v1075_v24   ;;  %v5545_v52 = vpop.permute.xlu0 %1708 }
 0x302   : > { %8330 = vst [vmem:[#allocation84_spill] sm:$0xff] %v5545_v52 }
 0x305   : > { %1142 = vperm.xlu1 %4338, %v1076_v50   ;;  %v5547_v50 = vpop.permute.xlu1 %1816 }
 0x306   : > { %8331 = vst [vmem:[#allocation85_spill] sm:$0xff] %v5547_v50  ;;  %v1198_v50 = vmul.f32 %v5450_v29, %v1069_v45  ;;  %v1204_v45 = vmul.f32 %v5450_v29, %v1075_v24 }
 0x309   : > { %1147 = vperm.xlu1 %4338, %v1077_v0   ;;  %v5555_v5 = vpop.permute.xlu1 %1820 }
 0x30a   : > { %8334 = vst [vmem:[#allocation87_spill] sm:$0xff] %v5555_v5 }
 0x30d   : > { %1152 = vperm.xlu1 %4338, %v1078_v6   ;;  %v5553_v6 = vpop.permute.xlu0 %1713  ;;  %v5559_v55 = vpop.permute.xlu1 %1948 }
 0x30e   : > { %8333 = vst [vmem:[#allocation86_spill] sm:$0xff] %v5553_v6  ;;  %8335 = vst [vmem:[#allocation88_spill] sm:$0xff] %v5559_v55 }
 0x311   : > { %1157 = vperm.xlu1 %4338, %v1079_v18   ;;  %v1196_v18 = vmul.f32 %v5450_v29, %v1067_v12  ;;  %v5562_v62 = vpop.permute.xlu0 %1718  ;;  %v1202_v12 = vmul.f32 %v5450_v29, %v1073_v27 }
 0x312   : > { %8336 = vst [vmem:[#allocation89_spill] sm:$0xff] %v5562_v62 }
 0x315   : > { %1227 = vrot.lane.b32.xlu1 %v1194_v54, %s4519_s21  ;;  %v5566_v54 = vpop.permute.xlu1 %1824 }
 0x316   : > { %4340 = vset.pattern.permute.xlu1 %v8332_v7  ;;  %8337 = vst [vmem:[#allocation90_spill] sm:$0xff] %v5566_v54 }
 0x319   : > { %1229 = vrot.lane.b32.xlu1 %v1195_v59, %s4519_s21  ;;  %v5569_v59 = vpop.permute.xlu0 %1723 }
 0x31a   : > { %8338 = vst [vmem:[#allocation91_spill] sm:$0xff] %v5569_v59 }
 0x31d   : > { %1231 = vrot.lane.b32.xlu1 %v1196_v18, %s4519_s21  ;;  %v5573_v18 = vpop.permute.xlu1 %1828  ;;  %v5576_v7 = vpop.permute.xlu0 %1728 }
 0x31e   : > { %8339 = vst [vmem:[#allocation92_spill] sm:$0xff] %v5573_v18  ;;  %8340 = vst [vmem:[#allocation93_spill] sm:$0xff] %v5576_v7 }
 0x321   : > { %1235 = vrot.lane.b32.xlu1 %v1198_v50, %s4519_s21  ;;  %v5579_v50 = vpop.permute.xlu1 %1956 }
 0x322   : > { %8341 = vst [vmem:[#allocation94_spill] sm:$0xff] %v5579_v50 }
 0x325   : > { %1239 = vrot.lane.b32.xlu1 %v1200_v44, %s4519_s21  ;;  %v5583_v44 = vpop.permute.xlu0 %1733  ;;  %v5585_v59 = vpop.permute.xlu1 %1832 }
 0x326   : > { %8342 = vst [vmem:[#allocation95_spill] sm:$0xff] %v5583_v44  ;;  %8343 = vst [vmem:[#allocation96_spill] sm:$0xff] %v5585_v59 }
 0x329   : > { %1243 = vrot.lane.b32.xlu1 %v1202_v12, %s4519_s21  ;;  %v5587_v27 = vpop.permute.xlu0 %1738  ;;  %v5589_v12 = vpop.permute.xlu1 %1836 }
 0x32a   : > { %8344 = vst [vmem:[#allocation97_spill] sm:$0xff] %v5587_v27  ;;  %8345 = vst [vmem:[#allocation98_spill] sm:$0xff] %v5589_v12 }
 0x32d   : > { %1247 = vrot.lane.b32.xlu1 %v1204_v45, %s4519_s21  ;;  %v5591_v18 = vpop.permute.xlu0 %1743  ;;  %v5593_v24 = vpop.permute.xlu1 %1964 }
 0x32e   : > { %8346 = vst [vmem:[#allocation99_spill] sm:$0xff] %v5591_v18  ;;  %8347 = vst [vmem:[#allocation100_spill] sm:$0xff] %v5593_v24 }
 0x331   : > { %1251 = vrot.lane.b32.xlu1 %v1206_v53, %s4519_s21  ;;  %v5595_v7 = vpop.permute.xlu0 %1748  ;;  %v5597_v45 = vpop.permute.xlu1 %1840 }
 0x332   : > { %8348 = vst [vmem:[#allocation101_spill] sm:$0xff] %v5595_v7  ;;  %8349 = vst [vmem:[#allocation102_spill] sm:$0xff] %v5597_v45 }
 0x335   : > { %v5599_v29 = vpop.permute.xlu1 %1844 }
 0x336   : > { %8350 = vst [vmem:[#allocation103_spill] sm:$0xff] %v5599_v29 }
 0x339   : > { %v5602_v53 = vpop.permute.xlu1 %1972 }
 0x33a   : > { %8351 = vst [vmem:[#allocation104_spill] sm:$0xff] %v5602_v53 }
 0x349   : > { %v1226_v50 = vpop.permute.xlu0 %1225 }
 0x34a   : > { %v1273_v0 = vsub.f32 %v5289_v47, %v1226_v50 }
 0x34c   : > { %1291 = vperm.xlu0 %4339, %v1273_v0  }
 0x34d   : > { %v1234_v11 = vpop.permute.xlu0 %1233 }
 0x351   : > { %v1238_v58 = vpop.permute.xlu0 %1237 }
 0x354   : > { %v5604_v44 = vpop.permute.xlu1 %1082 }
 0x358   : > { %v5606_v27 = vpop.permute.xlu1 %1087 }
 0x35c   : > { %v5608_v12 = vpop.permute.xlu1 %1092 }
 0x360   : > { %v5610_v18 = vpop.permute.xlu1 %1097 }
 0x364   : > { %v5612_v24 = vpop.permute.xlu1 %1102 }
 0x368   : > { %v5614_v7 = vpop.permute.xlu1 %1107 }
 0x36c   : > { %v5616_v45 = vpop.permute.xlu1 %1112 }
 0x370   : > { %v5618_v29 = vpop.permute.xlu1 %1117 }
 0x374   : > { %v5620_v47 = vpop.permute.xlu1 %1122 }
 0x378   : > { %v5622_v50 = vpop.permute.xlu1 %1127 }
 0x37c   : > { %v5624_v0 = vpop.permute.xlu1 %1132 }
 0x380   : > { %v5626_v53 = vpop.permute.xlu1 %1137 }
 0x384   : > { %v5628_v59 = vpop.permute.xlu1 %1142 }
 0x388   : > { %v5630_v54 = vpop.permute.xlu1 %1147 }
 0x389   : > { %8352 = vst [vmem:[#allocation105_spill] sm:$0xff] %v5630_v54  ;;  %v1277_v54 = vsub.f32 %v5317_v39, %v1234_v11 }
 0x38c   : > { %v5632_v55 = vpop.permute.xlu1 %1152 }
 0x38d   : > { %8353 = vst [vmem:[#allocation106_spill] sm:$0xff] %v5632_v55 }
 0x390   : > { %v5634_v5 = vpop.permute.xlu1 %1157 }
 0x391   : > { %8354 = vst [vmem:[#allocation107_spill] sm:$0xff] %v5634_v5 }
 0x394   : > { %v1228_v62 = vpop.permute.xlu1 %1227 }
 0x395   : > { %v1274_v6 = vsub.f32 %v5295_v56, %v1228_v62  ;;  %v1279_v62 = vsub.f32 %v5329_v37, %v1238_v58 }
 0x397   : > { %1296 = vperm.xlu1 %4340, %v1274_v6  }
 0x398   : > { %v1230_v52 = vpop.permute.xlu1 %1229 }
 0x399   : > { %v1275_v17 = vsub.f32 %v5304_v1, %v1230_v52  ;;  %v1242_v1 = vpop.permute.xlu0 %1241 }
 0x39b   : > { %1301 = vperm.xlu0 %4339, %v1275_v17   ;;  %4342 = vset.pattern.permute.xlu1 %v8302_v8 }
 0x39c   : > { %v1232_v46 = vpop.permute.xlu1 %1231 }
 0x39d   : > { %v1276_v36 = vsub.f32 %v5322_v33, %v1232_v46  ;;  %v1281_v33 = vsub.f32 %v5336_v34, %v1242_v1 }
 0x39f   : > { %1306 = vperm.xlu0 %4339, %v1276_v36   ;;  %v1246_v36 = vpop.permute.xlu0 %1245 }
 0x3a0   : > { %v1236_v55 = vpop.permute.xlu1 %1235  ;;  %v1283_v39 = vsub.f32 %v5344_v30, %v1246_v36  ;;  %v1160_v30 = vmul.f32 %v5604_v44, %v4999_v32  ;;  %v1162_v32 = vmul.f32 %v5606_v27, %v5014_v26  ;;  %v1164_v26 = vmul.f32 %v5608_v12, %v5032_v49 }
 0x3a1   : > { %v1278_v5 = vsub.f32 %v5352_v41, %v1236_v55 }
 0x3a3   : > { %1311 = vperm.xlu0 %4339, %v1277_v54  }
 0x3a4   : > { %v1240_v56 = vpop.permute.xlu1 %1239 }
 0x3a5   : > { %v1280_v52 = vsub.f32 %v5368_v25, %v1240_v56 }
 0x3a7   : > { %1316 = vperm.xlu0 %4339, %v1278_v5   ;;  %v1250_v5 = vpop.permute.xlu0 %1249 }
 0x3a8   : > { %v1244_v46 = vpop.permute.xlu1 %1243  ;;  %v1285_v37 = vsub.f32 %v5360_v22, %v1250_v5  ;;  %v1161_v22 = vmul.f32 %v5604_v44, %v5001_v19  ;;  %v1163_v19 = vmul.f32 %v5606_v27, %v5020_v13  ;;  %v1165_v44 = vmul.f32 %v5608_v12, %v5041_v43 }
 0x3a9   : > { %v1282_v11 = vsub.f32 %v5386_v60, %v1244_v46  ;;  %v1166_v43 = vmul.f32 %v5610_v18, %v5049_v20  ;;  %v1169_v12 = vmul.f32 %v5612_v24, %v5077_v4  ;;  %v1168_v20 = vmul.f32 %v5612_v24, %v5070_v63 }
 0x3aa   : > { %v1170_v4 = vmul.f32 %v5614_v7, %v5091_v9  ;;  %v1167_v24 = vmul.f32 %v5610_v18, %v5060_v15  ;;  %v1172_v5 = vmul.f32 %v5616_v45, %v5108_v21  ;;  %v1174_v18 = vmul.f32 %v5618_v29, %v5129_v14 }
 0x3ab   : > { %1321 = vperm.xlu0 %4339, %v1279_v62   ;;  %v1254_v25 = vpop.permute.xlu0 %1253  ;;  %v1176_v14 = vmul.f32 %v5620_v47, %v5150_v23 }
 0x3ac   : > { %v1248_v41 = vpop.permute.xlu1 %1247  ;;  %v1287_v60 = vsub.f32 %v5374_v42, %v1254_v25 }
 0x3ad   : > { %v1284_v58 = vsub.f32 %v5399_v48, %v1248_v41 }
 0x3af   : > { %1326 = vperm.xlu0 %4339, %v1280_v52   ;;  %v1256_v6 = vpop.permute.xlu0 %1255 }
 0x3b0   : > { %v1252_v17 = vpop.permute.xlu1 %1251  ;;  %v1288_v48 = vsub.f32 %v5426_v40, %v1256_v6 }
 0x3b1   : > { %v1286_v34 = vsub.f32 %v5413_v38, %v1252_v17 }
 0x3b3   : > { %1331 = vperm.xlu0 %4339, %v1281_v33  }
 0x3b7   : > { %1336 = vperm.xlu0 %4339, %v1282_v11  }
 0x3bb   : > { %1341 = vperm.xlu0 %4339, %v1283_v39   ;;  %v1173_v39 = vmul.f32 %v5616_v45, %v5119_v16  ;;  %v1177_v45 = vmul.f32 %v5620_v47, %v5157_v51  ;;  %v1171_v51 = vmul.f32 %v5614_v7, %v5098_v2 }
 0x3bf   : > { %1346 = vperm.xlu0 %4339, %v1284_v58  }
 0x3c3   : > { %1351 = vperm.xlu0 %4339, %v1285_v37  }
 0x3c7   : > { %1356 = vperm.xlu0 %4339, %v1286_v34   ;;  %v1178_v34 = vmul.f32 %v5622_v50, %v5167_v57  ;;  %v1180_v57 = vmul.f32 %v5624_v0, %v5188_v3 }
 0x3cb   : > { %1361 = vperm.xlu0 %4339, %v1287_v60   ;;  %v1292_v55 = vpop.permute.xlu0 %1291  ;;  %v1181_v60 = vmul.f32 %v5624_v0, %v5195_v35  ;;  %v1182_v35 = vmul.f32 %v5626_v53, %v5209_v31  ;;  %v1185_v0 = vmul.f32 %v5628_v59, %v5235_v10  ;;  %v1175_v31 = vmul.f32 %v5618_v29, %v5136_v28  ;;  %v8358_v29 = vld [vmem:[#allocation106_spill] sm:$0xff] }
 0x3cc   : > { %v5653_v54 = vadd.f32 %v1292_v55, %v1160_v30  ;;  %v5660_v38 = vadd.f32 %v1292_v55, %v1161_v22  ;;  %v1184_v22 = vmul.f32 %v5628_v59, %v5226_v61  ;;  %v8357_v59 = vld [vmem:[#allocation54_spill] sm:$0xff] }
 0x3ce   : > { %1403 = vrot.lane.b32.xlu1 %v5653_v54, %s4519_s21 }
 0x3cf   : > { %1366 = vperm.xlu0 %4339, %v1288_v48  }
 0x3d3   : > { %1435 = vrot.lane.b32.xlu0 %v5660_v38, %s4519_s21 }
 0x3d4   : > { %4341 = vset.pattern.permute.xlu0 %v8302_v8 }
 0x3d7   : > { %1538 = vrot.lane.b32.xlu0 %v5653_v54, %s8220_s23 }
 0x416   : > { %v1297_v42 = vpop.permute.xlu1 %1296 }
 0x417   : > { %v5669_v40 = vadd.f32 %v1297_v42, %v1162_v32  ;;  %v5677_v56 = vadd.f32 %v1297_v42, %v1163_v19  ;;  %v8355_v19 = vld [vmem:[#allocation51_spill] sm:$0xff] }
 0x419   : > { %1405 = vrot.lane.b32.xlu1 %v5669_v40, %s4519_s21 }
 0x41a   : > { %v1302_v62 = vpop.permute.xlu0 %1301 }
 0x41b   : > { %v5679_v52 = vadd.f32 %v1302_v62, %v1165_v44  ;;  %v5687_v27 = vadd.f32 %v1302_v62, %v1164_v26  ;;  %v8356_v44 = vld [vmem:[#allocation105_spill] sm:$0xff]  ;;  %v1189_v26 = vmul.f32 %v8358_v29, %v8357_v59 }
 0x41c   : > { %v1186_v62 = vmul.f32 %v8356_v44, %v8355_v19 }
 0x41d   : > { %1437 = vrot.lane.b32.xlu1 %v5677_v56, %s4519_s21  ;;  %1439 = vrot.lane.b32.xlu0 %v5679_v52, %s4519_s21 }
 0x41e   : > { %v1307_v13 = vpop.permute.xlu0 %1306 }
 0x41f   : > { %v5695_v1 = vadd.f32 %v1307_v13, %v1166_v43  ;;  %v5729_v9 = vadd.f32 %v1307_v13, %v1167_v24  ;;  %v8359_v43 = vld [vmem:[#allocation53_spill] sm:$0xff] }
 0x421   : > { %1570 = vrot.lane.b32.xlu1 %v5660_v38, %s8220_s23  ;;  %1542 = vrot.lane.b32.xlu0 %v5687_v27, %s8220_s23 }
 0x422   : > { %v1312_v49 = vpop.permute.xlu0 %1311 }
 0x423   : > { %v5703_v33 = vadd.f32 %v1312_v49, %v1169_v12  ;;  %v5711_v36 = vadd.f32 %v1312_v49, %v1168_v20  ;;  %v1188_v49 = vmul.f32 %v8358_v29, %v8359_v43 }
 0x425   : > { %1540 = vrot.lane.b32.xlu1 %v5669_v40, %s8220_s23  ;;  %1409 = vrot.lane.b32.xlu0 %v5695_v1, %s4519_s21 }
 0x426   : > { %v1317_v46 = vpop.permute.xlu0 %1316 }
 0x427   : > { %v5719_v11 = vadd.f32 %v1317_v46, %v1170_v4  ;;  %v5773_v23 = vadd.f32 %v1317_v46, %v1171_v51  ;;  %v8360_v46 = vld [vmem:[#allocation55_spill] sm:$0xff] }
 0x428   : > { %v8361_v4 = vld [vmem:[#allocation107_spill] sm:$0xff] }
 0x429   : > { %1572 = vrot.lane.b32.xlu1 %v5677_v56, %s8220_s23  ;;  %1443 = vrot.lane.b32.xlu0 %v5703_v33, %s4519_s21 }
 0x42a   : > { %v1322_v63 = vpop.permute.xlu0 %1321 }
 0x42b   : > { %v5731_v41 = vadd.f32 %v1322_v63, %v1173_v39  ;;  %v5739_v16 = vadd.f32 %v1322_v63, %v1172_v5  ;;  %v1190_v63 = vmul.f32 %v8361_v4, %v8360_v46  ;;  %v8362_v39 = vld [vmem:[#allocation46_spill] sm:$0xff] }
 0x42c   : > { %v1179_v5 = vmul.f32 %v5622_v50, %v8362_v39  ;;  %v552_v50 = vlaneseq  ;;  %v8369_v39 = vld [vmem:[#allocation59_spill] sm:$0xff] }
 0x42d   : > { %1407 = vrot.lane.b32.xlu1 %v5687_v27, %s4519_s21  ;;  %1546 = vrot.lane.b32.xlu0 %v5711_v36, %s8220_s23 }
 0x42e   : > { %v1327_v15 = vpop.permute.xlu0 %1326 }
 0x42f   : > { %v5747_v58 = vadd.f32 %v1327_v15, %v1174_v18  ;;  %v5819_v32 = vadd.f32 %v1327_v15, %v1175_v31  ;;  %v8363_v18 = vld [vmem:[#allocation49_spill] sm:$0xff] }
 0x431   : > { %1574 = vrot.lane.b32.xlu1 %v5679_v52, %s8220_s23  ;;  %1413 = vrot.lane.b32.xlu0 %v5719_v11, %s4519_s21 }
 0x432   : > { %v1332_v21 = vpop.permute.xlu0 %1331 }
 0x433   : > { %v5755_v37 = vadd.f32 %v1332_v21, %v1177_v45  ;;  %v5763_v17 = vadd.f32 %v1332_v21, %v1176_v14  ;;  %v1183_v21 = vmul.f32 %v5626_v53, %v8363_v18  ;;  %v5883_v14 = vand.u32 127, %v552_v50 }
 0x434   : > { %v5928_v18 = vstv %s551_s24 }
 0x435   : > { %1441 = vrot.lane.b32.xlu1 %v5729_v9, %s4519_s21  ;;  %1447 = vrot.lane.b32.xlu0 %v5731_v41, %s4519_s21  ;;  %8364 = vst [vmem:[#allocation51_spill] sm:$0xff] %v5883_v14  ;;  %vm1467_vm1 = vcmp.lt.s32.totalorder %v5883_v14, 1  ;;  %vm1401_vm2 = vcmp.ge.s32.totalorder %v5883_v14, 1  ;;  %vm1602_vm3 = vcmp.lt.s32.totalorder %v5883_v14, 127  ;;  %8370 = vst [vmem:[#allocation54_spill] sm:$0xff] %v5928_v18 }
 0x436   : > { %v1337_v25 = vpop.permute.xlu0 %1336 }
 0x437   : > { %v5775_v47 = vadd.f32 %v1337_v25, %v1178_v34  ;;  %v5865_v15 = vadd.f32 %v1337_v25, %v1179_v5 }
 0x439   : > { %1544 = vrot.lane.b32.xlu1 %v5695_v1, %s8220_s23  ;;  %1550 = vrot.lane.b32.xlu0 %v5739_v16, %s8220_s23 }
 0x43a   : > { %v1342_v6 = vpop.permute.xlu0 %1341 }
 0x43b   : > { %v5783_v2 = vadd.f32 %v1342_v6, %v1181_v60  ;;  %v5791_v30 = vadd.f32 %v1342_v6, %v1180_v57  ;;  %v5898_v60 = vadd.s32 128, %v5883_v14 }
 0x43d   : > { %1576 = vrot.lane.b32.xlu1 %v5729_v9, %s8220_s23  ;;  %1417 = vrot.lane.b32.xlu0 %v5747_v58, %s4519_s21  ;;  %8365 = vst [vmem:[#allocation105_spill] sm:$0xff] %v5898_v60  ;;  %vm1537_vm4 = vcmp.le.s32.totalorder %v5898_v60, 254 }
 0x43e   : > { %v1347_v7 = vpop.permute.xlu0 %1346 }
 0x43f   : > { %v5799_v55 = vadd.f32 %v1347_v7, %v1182_v35  ;;  %v5881_v45 = vadd.f32 %v1347_v7, %v1183_v21  ;;  %v8366_v35 = vld [vmem:[#allocation60_spill] sm:$0xff] }
 0x440   : > { %v1404_v25 = vpop.permute.xlu1 %1403 }
 0x441   : > { %1411 = vrot.lane.b32.xlu1 %v5711_v36, %s4519_s21  ;;  %1451 = vrot.lane.b32.xlu0 %v5755_v37, %s4519_s21 }
 0x442   : > { %v1352_v3 = vpop.permute.xlu0 %1351 }
 0x443   : > { %v5807_v48 = vadd.f32 %v1352_v3, %v1185_v0  ;;  %v5821_v42 = vadd.f32 %v1352_v3, %v1184_v22  ;;  %v8367_v22 = vld [vmem:[#allocation57_spill] sm:$0xff] }
 0x444   : > { %v1847_v19 = vmul.f32 %v8367_v22, %v5653_v54  ;;  %v1848_v59 = vmul.f32 %v8367_v22, %v5660_v38 }
 0x445   : > { %1578 = vrot.lane.b32.xlu1 %v5703_v33, %s8220_s23  ;;  %1554 = vrot.lane.b32.xlu0 %v5763_v17, %s8220_s23 }
 0x446   : > { %v5817_v10 = vpop.permute.xlu0 %1356 }
 0x447   : > { %v5830_v28 = vadd.f32 %v5817_v10, %v1186_v62 }
 0x449   : > { %1445 = vrot.lane.b32.xlu1 %v5773_v23, %s4519_s21  ;;  %1421 = vrot.lane.b32.xlu0 %v5775_v47, %s4519_s21 }
 0x44a   : > { %v1362_v61 = vpop.permute.xlu0 %1361 }
 0x44b   : > { %v5838_v13 = vadd.f32 %v1362_v61, %v1189_v26  ;;  %v5846_v12 = vadd.f32 %v1362_v61, %v1188_v49  ;;  %v8368_v49 = vld [vmem:[#allocation52_spill] sm:$0xff] }
 0x44c   : > { %v1187_v46 = vmul.f32 %v8356_v44, %v8368_v49 }
 0x44d   : > { %1548 = vrot.lane.b32.xlu1 %v5719_v11, %s8220_s23  ;;  %1455 = vrot.lane.b32.xlu0 %v5783_v2, %s4519_s21 }
 0x44e   : > { %v5848_v20 = vpop.permute.xlu0 %1366  ;;  %v5931_v21 = vadd.f32 %v5817_v10, %v1187_v46  ;;  %v8373_v46 = vld [vmem:[#allocation65_spill] sm:$0xff] }
 0x44f   : > { %v5857_v24 = vadd.f32 %v5848_v20, %v1190_v63 }
 0x451   : > { %1580 = vrot.lane.b32.xlu1 %v5773_v23, %s8220_s23  ;;  %1558 = vrot.lane.b32.xlu0 %v5791_v30, %s8220_s23 }
 0x452   : > { %v1436_v51 = vpop.permute.xlu0 %1435 }
 0x453   : > { %v1484_v53 = vsel %vm1467_vm1, %v1436_v51, %v1404_v25  ;;  %v1468_v57 = vsel %vm1467_vm1, %v1404_v25, %v1436_v51  ;;  %v8371_v25 = vld [vmem:[#allocation62_spill] sm:$0xff] }
 0x454   : > { %v1504_v6 = vsel %vm1401_vm2, %v1484_v53, 0.0  ;;  %v1752_v31 = vmul.f32 %v8366_v35, %v1468_v57 }
 0x455   : > { %1415 = vrot.lane.b32.xlu1 %v5739_v16, %s4519_s21  ;;  %1425 = vrot.lane.b32.xlu0 %v5799_v55, %s4519_s21  ;;  %v1751_v3 = vmul.f32 %v8366_v35, %v1504_v6 }
 0x456   : > { %v1539_v62 = vpop.permute.xlu0 %1538  ;;  %v1880_v38 = vadd.f32 %v1848_v59, %v1752_v31 }
 0x457   : > { %v1879_v63 = vadd.f32 %v1847_v19, %v1751_v3  ;;  %v8372_v3 = vld [vmem:[#allocation63_spill] sm:$0xff] }
 0x459   : > { %1582 = vrot.lane.b32.xlu1 %v5731_v41, %s8220_s23  ;;  %1459 = vrot.lane.b32.xlu0 %v5807_v48, %s4519_s21 }
 0x45d   : > { %1449 = vrot.lane.b32.xlu1 %v5819_v32, %s4519_s21  ;;  %1562 = vrot.lane.b32.xlu0 %v5821_v42, %s8220_s23 }
 0x461   : > { %1552 = vrot.lane.b32.xlu1 %v5747_v58, %s8220_s23  ;;  %1429 = vrot.lane.b32.xlu0 %v5830_v28, %s4519_s21 }
 0x465   : > { %1584 = vrot.lane.b32.xlu1 %v5819_v32, %s8220_s23  ;;  %1463 = vrot.lane.b32.xlu0 %v5838_v13, %s4519_s21 }
 0x469   : > { %1419 = vrot.lane.b32.xlu1 %v5763_v17, %s4519_s21  ;;  %1566 = vrot.lane.b32.xlu0 %v5846_v12, %s8220_s23 }
 0x46d   : > { %1586 = vrot.lane.b32.xlu1 %v5755_v37, %s8220_s23  ;;  %1433 = vrot.lane.b32.xlu0 %v5857_v24, %s4519_s21 }
 0x471   : > { %1453 = vrot.lane.b32.xlu1 %v5865_v15, %s4519_s21  ;;  %1568 = vrot.lane.b32.xlu0 %v5857_v24, %s8220_s23 }
 0x475   : > { %1556 = vrot.lane.b32.xlu1 %v5775_v47, %s8220_s23 }
 0x479   : > { %1588 = vrot.lane.b32.xlu1 %v5865_v15, %s8220_s23 }
 0x47d   : > { %1423 = vrot.lane.b32.xlu1 %v5791_v30, %s4519_s21 }
 0x481   : > { %1590 = vrot.lane.b32.xlu1 %v5783_v2, %s8220_s23 }
 0x485   : > { %1457 = vrot.lane.b32.xlu1 %v5881_v45, %s4519_s21 }
 0x489   : > { %1560 = vrot.lane.b32.xlu1 %v5799_v55, %s8220_s23 }
 0x48b   : > { %v1406_v34 = vpop.permute.xlu1 %1405 }
 0x48d   : > { %1592 = vrot.lane.b32.xlu1 %v5881_v45, %s8220_s23 }
 0x48f   : > { %v1438_v7 = vpop.permute.xlu1 %1437 }
 0x490   : > { %v1485_v0 = vsel %vm1467_vm1, %v1438_v7, %v1406_v34  ;;  %v1469_v44 = vsel %vm1467_vm1, %v1406_v34, %v1438_v7  ;;  %v1850_v34 = vmul.f32 %v8372_v3, %v5677_v56 }
 0x491   : > { %1427 = vrot.lane.b32.xlu1 %v5821_v42, %s4519_s21  ;;  %v1506_v29 = vsel %vm1401_vm2, %v1485_v0, 0.0  ;;  %v1849_v0 = vmul.f32 %v8372_v3, %v5669_v40  ;;  %v1754_v10 = vmul.f32 %v8371_v25, %v1469_v44 }
 0x492   : > { %v1753_v51 = vmul.f32 %v8371_v25, %v1506_v29 }
 0x493   : > { %v1571_v61 = vpop.permute.xlu1 %1570 }
 0x494   : > { %v1603_v26 = vsel %vm1602_vm3, %v1539_v62, %v1571_v61  ;;  %v1619_v43 = vsel %vm1602_vm3, %v1571_v61, %v1539_v62  ;;  %v1881_v7 = vadd.f32 %v1849_v0, %v1753_v51  ;;  %v1440_v62 = vpop.permute.xlu0 %1439 }
 0x495   : > { %v1640_v54 = vsel %vm1537_vm4, %v1619_v43, 0.0  ;;  %v1975_v5 = vmul.f32 %v8369_v39, %v1603_v26  ;;  %1594 = vrot.lane.b32.xlu1 %v5807_v48, %s8220_s23 }
 0x496   : > { %v1976_v50 = vmul.f32 %v8369_v39, %v1640_v54 }
 0x497   : > { %v2007_v53 = vadd.f32 %v1975_v5, %v1879_v63  ;;  %v1541_v6 = vpop.permute.xlu1 %1540  ;;  %v1882_v5 = vadd.f32 %v1850_v34, %v1754_v10  ;;  %v8375_v34 = vld [vmem:[#allocation58_spill] sm:$0xff] }
 0x498   : > { %v2008_v57 = vadd.f32 %v1976_v50, %v1880_v38  ;;  %v1543_v0 = vpop.permute.xlu0 %1542 }
 0x499   : > { %1461 = vrot.lane.b32.xlu1 %v5931_v21, %s4519_s21  ;;  %vm2039_vm5 = vcmp.ge.f32.partialorder %v2007_v53, 0.0  ;;  %v2072_v31 = vmul.f32 %v5928_v18, %v2007_v53 }
 0x49a   : > { %vm2040_vm6 = vcmp.ge.f32.partialorder %v2008_v57, 0.0  ;;  %v2073_v19 = vmul.f32 %v5928_v18, %v2008_v57 }
 0x49b   : > { %v1573_v61 = vpop.permute.xlu1 %1572  ;;  %v2104_v59 = vsel %vm2039_vm5, %v2007_v53, %v2072_v31 }
 0x49c   : > { %v1604_v40 = vsel %vm1602_vm3, %v1541_v6, %v1573_v61  ;;  %v1620_v29 = vsel %vm1602_vm3, %v1573_v61, %v1541_v6  ;;  %v2105_v26 = vsel %vm2040_vm6, %v2008_v57, %v2073_v19  ;;  %v2268_v43 = vmul.f32 %v2104_v59, %v2104_v59  ;;  %v8374_v19 = vld [vmem:[#allocation67_spill] sm:$0xff] }
 0x49d   : > { %v1642_v49 = vsel %vm1537_vm4, %v1620_v29, 0.0  ;;  %v1977_v63 = vmul.f32 %v8373_v46, %v1604_v40  ;;  %1564 = vrot.lane.b32.xlu1 %v5830_v28, %s8220_s23  ;;  %v2269_v56 = vmul.f32 %v2105_v26, %v2105_v26  ;;  %v2225_v54 = vadd.f32 %v2105_v26, %v2104_v59 }
 0x49e   : > { %v1978_v38 = vmul.f32 %v8373_v46, %v1642_v49  ;;  %v1852_v29 = vmul.f32 %v8375_v34, %v5679_v52 }
 0x49f   : > { %v2009_v50 = vadd.f32 %v1977_v63, %v1881_v7  ;;  %v1408_v44 = vpop.permute.xlu1 %1407  ;;  %v2300_v51 = vadd.f32 %v2269_v56, %v2268_v43  ;;  %v1851_v7 = vmul.f32 %v8375_v34, %v5687_v27 }
 0x4a0   : > { %v1470_v53 = vsel %vm1467_vm1, %v1408_v44, %v1440_v62  ;;  %v1486_v6 = vsel %vm1467_vm1, %v1440_v62, %v1408_v44  ;;  %v2010_v57 = vadd.f32 %v1978_v38, %v1882_v5 }
 0x4a1   : > { %v1508_v31 = vsel %vm1401_vm2, %v1486_v6, 0.0  ;;  %v1756_v61 = vmul.f32 %v8374_v19, %v1470_v53  ;;  %1596 = vrot.lane.b32.xlu1 %v5931_v21, %s8220_s23  ;;  %vm2041_vm7 = vcmp.ge.f32.partialorder %v2009_v50, 0.0  ;;  %v2074_v10 = vmul.f32 %v5928_v18, %v2009_v50  ;;  %v8376_v53 = vld [vmem:[#allocation61_spill] sm:$0xff] }
 0x4a2   : > { %v1755_v40 = vmul.f32 %v8374_v19, %v1508_v31  ;;  %vm2042_vm8 = vcmp.ge.f32.partialorder %v2010_v57, 0.0  ;;  %v2075_v62 = vmul.f32 %v5928_v18, %v2010_v57 }
 0x4a3   : > { %v1575_v43 = vpop.permute.xlu1 %1574  ;;  %v2106_v49 = vsel %vm2041_vm7, %v2009_v50, %v2074_v10  ;;  %v1884_v44 = vadd.f32 %v1852_v29, %v1756_v61  ;;  %v8377_v29 = vld [vmem:[#allocation56_spill] sm:$0xff] }
 0x4a4   : > { %v1883_v63 = vadd.f32 %v1851_v7, %v1755_v40  ;;  %v1605_v56 = vsel %vm1602_vm3, %v1543_v0, %v1575_v43  ;;  %v1621_v5 = vsel %vm1602_vm3, %v1575_v43, %v1543_v0  ;;  %v2107_v38 = vsel %vm2042_vm8, %v2010_v57, %v2075_v62  ;;  %v1410_v40 = vpop.permute.xlu0 %1409 }
 0x4a5   : > { %v1644_v27 = vsel %vm1537_vm4, %v1621_v5, 0.0  ;;  %v1979_v6 = vmul.f32 %v8376_v53, %v1605_v56  ;;  %1431 = vrot.lane.b32.xlu1 %v5846_v12, %s4519_s21  ;;  %v2137_v52 = vpack.c.bf16 %v2107_v38, %v2105_v26  ;;  %v2136_v31 = vpack.c.bf16 %v2106_v49, %v2104_v59 }
 0x4a6   : > { %v1980_v50 = vmul.f32 %v8376_v53, %v1644_v27  ;;  %v2226_v10 = vadd.f32 %v2225_v54, %v2106_v49  ;;  %v2270_v7 = vmul.f32 %v2106_v49, %v2106_v49  ;;  %v2271_v57 = vmul.f32 %v2107_v38, %v2107_v38  ;;  %v6988_v53 = vld [vmem:[%s8056_s3 + $0x38] sm:$0xff] }
 0x4a7   : > { %v2011_v34 = vadd.f32 %v1979_v6, %v1883_v63  ;;  %v1442_v46 = vpop.permute.xlu1 %1441  ;;  %2152 = vmatprep.subr.bf16.mxu1 %v2137_v52  ;;  %v1191_v43 = vmul.f32 %v8361_v4, %v8377_v29 }
 0x4a8   : > { %v2012_v0 = vadd.f32 %v1980_v50, %v1884_v44  ;;  %v1487_v61 = vsel %vm1467_vm1, %v1442_v46, %v1410_v40  ;;  %2153 = vmatpush1.bf16.msra.mxu1 %v2136_v31  ;;  %v2227_v62 = vadd.f32 %v2226_v10, %v2107_v38  ;;  %v2301_v26 = vadd.f32 %v2300_v51, %v2270_v7  ;;  %v8378_v44 = vld [vmem:[#allocation76_spill] sm:$0xff]  ;;  %v1444_v7 = vpop.permute.xlu0 %1443 }
 0x4a9   : > { %1598 = vrot.lane.b32.xlu1 %v5838_v13, %s8220_s23  ;;  %vm2043_vm9 = vcmp.ge.f32.partialorder %v2011_v34, 0.0  ;;  %v1510_v59 = vsel %vm1401_vm2, %v1487_v61, 0.0  ;;  %v2076_v49 = vmul.f32 %v5928_v18, %v2011_v34  ;;  %v5992_v63 = vadd.f32 %v5848_v20, %v1191_v43  ;;  %v8379_v20 = vld [vmem:[#allocation69_spill] sm:$0xff]  ;;  %v8380_v43 = vld [vmem:[#allocation71_spill] sm:$0xff] }
 0x4aa   : > { %vm2044_vm10 = vcmp.ge.f32.partialorder %v2012_v0, 0.0  ;;  %v2077_v54 = vmul.f32 %v5928_v18, %v2012_v0  ;;  %v1471_v56 = vsel %vm1467_vm1, %v1410_v40, %v1442_v46  ;;  %v2302_v4 = vadd.f32 %v2301_v26, %v2271_v57 }
 0x4ab   : > { %v1545_v51 = vpop.permute.xlu1 %1544  ;;  %v2108_v38 = vsel %vm2043_vm9, %v2011_v34, %v2076_v49  ;;  %v1757_v27 = vmul.f32 %v8378_v44, %v1510_v59  ;;  %v1758_v31 = vmul.f32 %v8378_v44, %v1471_v56  ;;  %v1853_v10 = vmul.f32 %v8379_v20, %v5695_v1 }
 0x4ac   : > { %v2109_v5 = vsel %vm2044_vm10, %v2012_v0, %v2077_v54  ;;  %v2228_v52 = vadd.f32 %v2227_v62, %v2108_v38  ;;  %v2272_v50 = vmul.f32 %v2108_v38, %v2108_v38  ;;  %v1854_v34 = vmul.f32 %v8379_v20, %v5729_v9 }
 0x4ad   : > { %1465 = vrot.lane.b32.xlu1 %v5992_v63, %s4519_s21  ;;  %v2273_v6 = vmul.f32 %v2109_v5, %v2109_v5  ;;  %v1885_v62 = vadd.f32 %v1853_v10, %v1757_v27  ;;  %v1547_v27 = vpop.permute.xlu0 %1546  ;;  %v8493_v20 = vmov 1  }
 0x4ae   : > { %v2229_v46 = vadd.f32 %v2228_v52, %v2109_v5  ;;  %v2303_v40 = vadd.f32 %v2302_v4, %v2272_v50  ;;  %v1886_v59 = vadd.f32 %v1854_v34, %v1758_v31  ;;  %v8381_v50 = vld [vmem:[#allocation78_spill] sm:$0xff]  ;;  %v8382_v31 = vld [vmem:[#allocation73_spill] sm:$0xff] }
 0x4af   : > { %v1577_v61 = vpop.permute.xlu1 %1576 }
 0x4b0   : > { %v1606_v57 = vsel %vm1602_vm3, %v1545_v51, %v1577_v61  ;;  %v1622_v0 = vsel %vm1602_vm3, %v1577_v61, %v1545_v51  ;;  %v2304_v1 = vadd.f32 %v2303_v40, %v2273_v6  ;;  %v1855_v61 = vmul.f32 %v8382_v31, %v5711_v36 }
 0x4b1   : > { %v1646_v29 = vsel %vm1537_vm4, %v1622_v0, 0.0  ;;  %v1981_v26 = vmul.f32 %v8380_v43, %v1606_v57  ;;  %1600 = vrot.lane.b32.xlu1 %v5992_v63, %s8220_s23 }
 0x4b2   : > { %v1982_v54 = vmul.f32 %v8380_v43, %v1646_v29 }
 0x4b3   : > { %v2013_v9 = vadd.f32 %v1981_v26, %v1885_v62  ;;  %v1412_v49 = vpop.permute.xlu1 %1411 }
 0x4b4   : > { %v2014_v56 = vadd.f32 %v1982_v54, %v1886_v59  ;;  %v1472_v4 = vsel %vm1467_vm1, %v1412_v49, %v1444_v7  ;;  %v1488_v51 = vsel %vm1467_vm1, %v1444_v7, %v1412_v49  ;;  %v1856_v7 = vmul.f32 %v8382_v31, %v5703_v33  ;;  %v8383_v49 = vld [vmem:[#allocation64_spill] sm:$0xff] }
 0x4b5   : > { %v1512_v52 = vsel %vm1401_vm2, %v1488_v51, 0.0  ;;  %v1760_v10 = vmul.f32 %v8381_v50, %v1472_v4  ;;  %vm2045_vm11 = vcmp.ge.f32.partialorder %v2013_v9, 0.0  ;;  %v2078_v6 = vmul.f32 %v5928_v18, %v2013_v9 }
 0x4b6   : > { %v1759_v40 = vmul.f32 %v8381_v50, %v1512_v52  ;;  %vm2046_vm12 = vcmp.ge.f32.partialorder %v2014_v56, 0.0  ;;  %v2079_v34 = vmul.f32 %v5928_v18, %v2014_v56 }
 0x4b7   : > { %v1579_v57 = vpop.permute.xlu1 %1578  ;;  %v2110_v0 = vsel %vm2045_vm11, %v2013_v9, %v2078_v6  ;;  %v1888_v54 = vadd.f32 %v1856_v7, %v1760_v10  ;;  %v1414_v6 = vpop.permute.xlu0 %1413 }
 0x4b8   : > { %v1887_v62 = vadd.f32 %v1855_v61, %v1759_v40  ;;  %v1607_v29 = vsel %vm1602_vm3, %v1547_v27, %v1579_v57  ;;  %v1623_v26 = vsel %vm1602_vm3, %v1579_v57, %v1547_v27  ;;  %v2111_v59 = vsel %vm2046_vm12, %v2014_v56, %v2079_v34 }
 0x4b9   : > { %v1648_v36 = vsel %vm1537_vm4, %v1623_v26, 0.0  ;;  %v1983_v4 = vmul.f32 %v8383_v49, %v1607_v29  ;;  %v2139_v51 = vpack.c.bf16 %v2111_v59, %v2109_v5  ;;  %v2138_v33 = vpack.c.bf16 %v2110_v0, %v2108_v38 }
 0x4ba   : > { %v1984_v52 = vmul.f32 %v8383_v49, %v1648_v36  ;;  %v2230_v31 = vadd.f32 %v2229_v46, %v2110_v0  ;;  %v2274_v9 = vmul.f32 %v2110_v0, %v2110_v0  ;;  %v2275_v43 = vmul.f32 %v2111_v59, %v2111_v59 }
 0x4bb   : > { %v2015_v61 = vadd.f32 %v1983_v4, %v1887_v62  ;;  %v1446_v40 = vpop.permute.xlu1 %1445  ;;  %2154 = vmatprep.subr.bf16.mxu1 %v2139_v51 }
 0x4bc   : > { %v2016_v50 = vadd.f32 %v1984_v52, %v1888_v54  ;;  %v1489_v56 = vsel %vm1467_vm1, %v1446_v40, %v1414_v6  ;;  %2155 = vmatpush1.bf16.msra.mxu1 %v2138_v33  ;;  %v2305_v27 = vadd.f32 %v2304_v1, %v2274_v9  ;;  %v2231_v46 = vadd.f32 %v2230_v31, %v2111_v59  ;;  %v8384_v1 = vld [vmem:[#allocation80_spill] sm:$0xff]  ;;  %v8385_v33 = vld [vmem:[#allocation75_spill] sm:$0xff]  ;;  %v1448_v31 = vpop.permute.xlu0 %1447 }
 0x4bd   : > { %vm2047_vm13 = vcmp.ge.f32.partialorder %v2015_v61, 0.0  ;;  %v2080_v10 = vmul.f32 %v5928_v18, %v2015_v61  ;;  %v1514_v5 = vsel %vm1401_vm2, %v1489_v56, 0.0  ;;  %v1473_v34 = vsel %vm1467_vm1, %v1414_v6, %v1446_v40 }
 0x4be   : > { %vm2048_vm14 = vcmp.ge.f32.partialorder %v2016_v50, 0.0  ;;  %v2081_v38 = vmul.f32 %v5928_v18, %v2016_v50  ;;  %v2306_v0 = vadd.f32 %v2305_v27, %v2275_v43  ;;  %v1761_v54 = vmul.f32 %v8384_v1, %v1514_v5  ;;  %v8386_v27 = vld [vmem:[#allocation77_spill] sm:$0xff] }
 0x4bf   : > { %v1549_v7 = vpop.permute.xlu1 %1548  ;;  %v2112_v57 = vsel %vm2047_vm13, %v2015_v61, %v2080_v10  ;;  %v1762_v4 = vmul.f32 %v8384_v1, %v1473_v34  ;;  %v1857_v9 = vmul.f32 %v8385_v33, %v5719_v11  ;;  %v1858_v6 = vmul.f32 %v8385_v33, %v5773_v23 }
 0x4c0   : > { %v2113_v62 = vsel %vm2048_vm14, %v2016_v50, %v2081_v38  ;;  %v2232_v29 = vadd.f32 %v2231_v46, %v2112_v57  ;;  %v2276_v26 = vmul.f32 %v2112_v57, %v2112_v57 }
 0x4c1   : > { %v2277_v36 = vmul.f32 %v2113_v62, %v2113_v62  ;;  %v1889_v40 = vadd.f32 %v1857_v9, %v1761_v54  ;;  %v1890_v5 = vadd.f32 %v1858_v6, %v1762_v4  ;;  %v8388_v4 = vld [vmem:[#allocation79_spill] sm:$0xff] }
 0x4c2   : > { %v2233_v51 = vadd.f32 %v2232_v29, %v2113_v62  ;;  %v2307_v52 = vadd.f32 %v2306_v0, %v2276_v26  ;;  %v8387_v26 = vld [vmem:[#allocation82_spill] sm:$0xff] }
 0x4c3   : > { %v1581_v59 = vpop.permute.xlu1 %1580 }
 0x4c4   : > { %v1608_v43 = vsel %vm1602_vm3, %v1549_v7, %v1581_v59  ;;  %v1624_v50 = vsel %vm1602_vm3, %v1581_v59, %v1549_v7  ;;  %v2308_v61 = vadd.f32 %v2307_v52, %v2277_v36  ;;  %v1551_v7 = vpop.permute.xlu0 %1550  ;;  %v1859_v52 = vmul.f32 %v8388_v4, %v5739_v16 }
 0x4c5   : > { %v1650_v56 = vsel %vm1537_vm4, %v1624_v50, 0.0  ;;  %v1985_v10 = vmul.f32 %v8386_v27, %v1608_v43 }
 0x4c6   : > { %v1986_v11 = vmul.f32 %v8386_v27, %v1650_v56 }
 0x4c7   : > { %v2017_v38 = vadd.f32 %v1985_v10, %v1889_v40  ;;  %v1416_v46 = vpop.permute.xlu1 %1415 }
 0x4c8   : > { %v2018_v34 = vadd.f32 %v1986_v11, %v1890_v5  ;;  %v1474_v23 = vsel %vm1467_vm1, %v1416_v46, %v1448_v31  ;;  %v1490_v0 = vsel %vm1467_vm1, %v1448_v31, %v1416_v46  ;;  %v1860_v31 = vmul.f32 %v8388_v4, %v5731_v41  ;;  %v8389_v11 = vld [vmem:[#allocation66_spill] sm:$0xff] }
 0x4c9   : > { %v1516_v29 = vsel %vm1401_vm2, %v1490_v0, 0.0  ;;  %v1764_v54 = vmul.f32 %v8387_v26, %v1474_v23  ;;  %vm2049_vm15 = vcmp.ge.f32.partialorder %v2017_v38, 0.0  ;;  %v2082_v36 = vmul.f32 %v5928_v18, %v2017_v38 }
 0x4ca   : > { %v1763_v9 = vmul.f32 %v8387_v26, %v1516_v29  ;;  %vm2050_vm5 = vcmp.ge.f32.partialorder %v2018_v34, 0.0  ;;  %v2083_v59 = vmul.f32 %v5928_v18, %v2018_v34  ;;  %v8411_v26 = vld [vmem:[#allocation97_spill] sm:$0xff] }
 0x4cb   : > { %v1583_v6 = vpop.permute.xlu1 %1582  ;;  %v2114_v43 = vsel %vm2049_vm15, %v2017_v38, %v2082_v36  ;;  %v1892_v5 = vadd.f32 %v1860_v31, %v1764_v54  ;;  %v1418_v36 = vpop.permute.xlu0 %1417 }
 0x4cc   : > { %v1891_v50 = vadd.f32 %v1859_v52, %v1763_v9  ;;  %v1609_v40 = vsel %vm1602_vm3, %v1551_v7, %v1583_v6  ;;  %v1625_v56 = vsel %vm1602_vm3, %v1583_v6, %v1551_v7  ;;  %v2115_v10 = vsel %vm2050_vm5, %v2018_v34, %v2083_v59 }
 0x4cd   : > { %v1652_v16 = vsel %vm1537_vm4, %v1625_v56, 0.0  ;;  %v1987_v46 = vmul.f32 %v8389_v11, %v1609_v40  ;;  %v2141_v23 = vpack.c.bf16 %v2115_v10, %v2113_v62  ;;  %v2140_v41 = vpack.c.bf16 %v2114_v43, %v2112_v57 }
 0x4ce   : > { %v1988_v0 = vmul.f32 %v8389_v11, %v1652_v16  ;;  %v2234_v29 = vadd.f32 %v2233_v51, %v2114_v43  ;;  %v2278_v38 = vmul.f32 %v2114_v43, %v2114_v43  ;;  %v2279_v4 = vmul.f32 %v2115_v10, %v2115_v10 }
 0x4cf   : > { %v2019_v52 = vadd.f32 %v1987_v46, %v1891_v50  ;;  %v1450_v9 = vpop.permute.xlu1 %1449  ;;  %2156 = vmatprep.subr.bf16.mxu1 %v2141_v23 }
 0x4d0   : > { %v2020_v27 = vadd.f32 %v1988_v0, %v1892_v5  ;;  %v1491_v34 = vsel %vm1467_vm1, %v1450_v9, %v1418_v36  ;;  %2157 = vmatpush1.bf16.msra.mxu1 %v2140_v41  ;;  %v2309_v7 = vadd.f32 %v2308_v61, %v2278_v38  ;;  %v2235_v51 = vadd.f32 %v2234_v29, %v2115_v10  ;;  %v8390_v61 = vld [vmem:[#allocation84_spill] sm:$0xff]  ;;  %v8391_v41 = vld [vmem:[#allocation81_spill] sm:$0xff]  ;;  %v1452_v10 = vpop.permute.xlu0 %1451 }
 0x4d1   : > { %vm2051_vm6 = vcmp.ge.f32.partialorder %v2019_v52, 0.0  ;;  %v2084_v54 = vmul.f32 %v5928_v18, %v2019_v52  ;;  %v1518_v62 = vsel %vm1401_vm2, %v1491_v34, 0.0  ;;  %v1475_v59 = vsel %vm1467_vm1, %v1418_v36, %v1450_v9 }
 0x4d2   : > { %vm2052_vm7 = vcmp.ge.f32.partialorder %v2020_v27, 0.0  ;;  %v2085_v57 = vmul.f32 %v5928_v18, %v2020_v27  ;;  %v2310_v43 = vadd.f32 %v2309_v7, %v2279_v4  ;;  %v1765_v5 = vmul.f32 %v8390_v61, %v1518_v62  ;;  %v8392_v7 = vld [vmem:[#allocation83_spill] sm:$0xff] }
 0x4d3   : > { %v1553_v31 = vpop.permute.xlu1 %1552  ;;  %v2116_v6 = vsel %vm2051_vm6, %v2019_v52, %v2084_v54  ;;  %v1766_v46 = vmul.f32 %v8390_v61, %v1475_v59  ;;  %v1861_v38 = vmul.f32 %v8391_v41, %v5747_v58  ;;  %v1862_v36 = vmul.f32 %v8391_v41, %v5819_v32 }
 0x4d4   : > { %v2117_v50 = vsel %vm2052_vm7, %v2020_v27, %v2085_v57  ;;  %v2236_v40 = vadd.f32 %v2235_v51, %v2116_v6  ;;  %v2280_v56 = vmul.f32 %v2116_v6, %v2116_v6 }
 0x4d5   : > { %v2281_v16 = vmul.f32 %v2117_v50, %v2117_v50  ;;  %v1893_v9 = vadd.f32 %v1861_v38, %v1765_v5  ;;  %v1894_v62 = vadd.f32 %v1862_v36, %v1766_v46  ;;  %v8394_v46 = vld [vmem:[#allocation85_spill] sm:$0xff] }
 0x4d6   : > { %v2237_v23 = vadd.f32 %v2236_v40, %v2117_v50  ;;  %v2311_v0 = vadd.f32 %v2310_v43, %v2280_v56  ;;  %v8393_v56 = vld [vmem:[#allocation86_spill] sm:$0xff] }
 0x4d7   : > { %v1585_v29 = vpop.permute.xlu1 %1584 }
 0x4d8   : > { %v1610_v27 = vsel %vm1602_vm3, %v1553_v31, %v1585_v29  ;;  %v1626_v4 = vsel %vm1602_vm3, %v1585_v29, %v1553_v31  ;;  %v2312_v52 = vadd.f32 %v2311_v0, %v2281_v16  ;;  %v1555_v31 = vpop.permute.xlu0 %1554  ;;  %v1863_v0 = vmul.f32 %v8394_v46, %v5763_v17 }
 0x4d9   : > { %v1654_v34 = vsel %vm1537_vm4, %v1626_v4, 0.0  ;;  %v1989_v54 = vmul.f32 %v8392_v7, %v1610_v27 }
 0x4da   : > { %v1990_v58 = vmul.f32 %v8392_v7, %v1654_v34 }
 0x4db   : > { %v2021_v57 = vadd.f32 %v1989_v54, %v1893_v9  ;;  %v1420_v51 = vpop.permute.xlu1 %1419 }
 0x4dc   : > { %v2022_v59 = vadd.f32 %v1990_v58, %v1894_v62  ;;  %v1476_v32 = vsel %vm1467_vm1, %v1420_v51, %v1452_v10  ;;  %v1492_v43 = vsel %vm1467_vm1, %v1452_v10, %v1420_v51  ;;  %v1864_v10 = vmul.f32 %v8394_v46, %v5755_v37  ;;  %v8395_v58 = vld [vmem:[#allocation68_spill] sm:$0xff] }
 0x4dd   : > { %v1520_v40 = vsel %vm1401_vm2, %v1492_v43, 0.0  ;;  %v1768_v5 = vmul.f32 %v8393_v56, %v1476_v32  ;;  %vm2053_vm8 = vcmp.ge.f32.partialorder %v2021_v57, 0.0  ;;  %v2086_v16 = vmul.f32 %v5928_v18, %v2021_v57 }
 0x4de   : > { %v1767_v38 = vmul.f32 %v8393_v56, %v1520_v40  ;;  %vm2054_vm9 = vcmp.ge.f32.partialorder %v2022_v59, 0.0  ;;  %v2087_v29 = vmul.f32 %v5928_v18, %v2022_v59 }
 0x4df   : > { %v1587_v36 = vpop.permute.xlu1 %1586  ;;  %v2118_v27 = vsel %vm2053_vm8, %v2021_v57, %v2086_v16  ;;  %v1896_v54 = vadd.f32 %v1864_v10, %v1768_v5  ;;  %v4175_v16 = vld [vmem:[%s4677_s18 + $0x88] sm:$0xff] }
 0x4e0   : > { %v1895_v4 = vadd.f32 %v1863_v0, %v1767_v38  ;;  %v1611_v9 = vsel %vm1602_vm3, %v1555_v31, %v1587_v36  ;;  %v1627_v34 = vsel %vm1602_vm3, %v1587_v36, %v1555_v31  ;;  %v2119_v17 = vsel %vm2054_vm9, %v2022_v59, %v2087_v29  ;;  %v4174_v0 = vld [vmem:[%s4677_s18 + $0x80] sm:$0xff]  ;;  %v1422_v38 = vpop.permute.xlu0 %1421 }
 0x4e1   : > { %v1656_v62 = vsel %vm1537_vm4, %v1627_v34, 0.0  ;;  %v1991_v51 = vmul.f32 %v8395_v58, %v1611_v9  ;;  %v2143_v32 = vpack.c.bf16 %v2119_v17, %v2117_v50  ;;  %v2142_v43 = vpack.c.bf16 %v2118_v27, %v2116_v6 }
 0x4e2   : > { %v1992_v37 = vmul.f32 %v8395_v58, %v1656_v62  ;;  %v2238_v40 = vadd.f32 %v2237_v23, %v2118_v27  ;;  %v2282_v57 = vmul.f32 %v2118_v27, %v2118_v27  ;;  %v2283_v59 = vmul.f32 %v2119_v17, %v2119_v17 }
 0x4e3   : > { %v2023_v46 = vadd.f32 %v1991_v51, %v1895_v4  ;;  %v1454_v7 = vpop.permute.xlu1 %1453  ;;  %2158 = vmatprep.subr.bf16.mxu1 %v2143_v32  ;;  %v6129_v6 = vmax.f32 %v4175_v16, 0.0  ;;  %v6131_v23 = vmax.f32 %v4174_v0, 0.0  ;;  %v4176_v4 = vld [vmem:[%s4677_s18 + $0x90] sm:$0xff]  ;;  %v4177_v16 = vld [vmem:[%s4677_s18 + $0x98] sm:$0xff] }
 0x4e4   : > { %v2024_v31 = vadd.f32 %v1992_v37, %v1896_v54  ;;  %v1493_v5 = vsel %vm1467_vm1, %v1454_v7, %v1422_v38  ;;  %2159 = vmatpush1.bf16.msra.mxu1 %v2142_v43  ;;  %v2313_v29 = vadd.f32 %v2312_v52, %v2282_v57  ;;  %v2239_v27 = vadd.f32 %v2238_v40, %v2119_v17  ;;  %v8396_v37 = vld [vmem:[#allocation89_spill] sm:$0xff] }
 0x4e5   : > { %vm2055_vm10 = vcmp.ge.f32.partialorder %v2023_v46, 0.0  ;;  %v2088_v50 = vmul.f32 %v5928_v18, %v2023_v46  ;;  %v1522_v10 = vsel %vm1401_vm2, %v1493_v5, 0.0  ;;  %v1477_v9 = vsel %vm1467_vm1, %v1422_v38, %v1454_v7  ;;  %v8397_v38 = vld [vmem:[#allocation87_spill] sm:$0xff]  ;;  %v1456_v5 = vpop.permute.xlu0 %1455 }
 0x4e6   : > { %vm2056_vm11 = vcmp.ge.f32.partialorder %v2024_v31, 0.0  ;;  %v2089_v36 = vmul.f32 %v5928_v18, %v2024_v31  ;;  %v2314_v54 = vadd.f32 %v2313_v29, %v2283_v59  ;;  %v1769_v43 = vmul.f32 %v8396_v37, %v1522_v10 }
 0x4e7   : > { %v1557_v52 = vpop.permute.xlu1 %1556  ;;  %v6139_v34 = vsel %vm2055_vm10, %v2023_v46, %v2088_v50  ;;  %v6146_v0 = vmax.f32 %v4176_v4, 0.0  ;;  %v2586_v7 = vadd.f32 %v6129_v6, %v6131_v23  ;;  %v1770_v46 = vmul.f32 %v8396_v37, %v1477_v9 }
 0x4e8   : > { %v2121_v62 = vsel %vm2056_vm11, %v2024_v31, %v2089_v36  ;;  %v2240_v51 = vadd.f32 %v2239_v27, %v6139_v34  ;;  %v2284_v32 = vmul.f32 %v6139_v34, %v6139_v34  ;;  %v1865_v59 = vmul.f32 %v8397_v38, %v5775_v47  ;;  %v8398_v47 = vld [vmem:[#allocation88_spill] sm:$0xff] }
 0x4e9   : > { %v2285_v57 = vmul.f32 %v2121_v62, %v2121_v62  ;;  %v1866_v31 = vmul.f32 %v8397_v38, %v5865_v15  ;;  %v6159_v27 = vmax.f32 %v4177_v16, 0.0  ;;  %v2587_v15 = vadd.f32 %v2586_v7, %v6146_v0 }
 0x4ea   : > { %v2241_v17 = vadd.f32 %v2240_v51, %v2121_v62  ;;  %v2315_v40 = vadd.f32 %v2314_v54, %v2284_v32  ;;  %v1897_v4 = vadd.f32 %v1865_v59, %v1769_v43  ;;  %v4178_v51 = vld [vmem:[%s4677_s18 + $0xa0] sm:$0xff]  ;;  %v1559_v43 = vpop.permute.xlu0 %1558 }
 0x4eb   : > { %v1589_v29 = vpop.permute.xlu1 %1588  ;;  %v1898_v32 = vadd.f32 %v1866_v31, %v1770_v46  ;;  %v6170_v16 = vmax.f32 %v4178_v51, 0.0  ;;  %v2588_v7 = vadd.f32 %v2587_v15, %v6159_v27  ;;  %v8399_v46 = vld [vmem:[#allocation90_spill] sm:$0xff] }
 0x4ec   : > { %v1612_v50 = vsel %vm1602_vm3, %v1557_v52, %v1589_v29  ;;  %v1628_v10 = vsel %vm1602_vm3, %v1589_v29, %v1557_v52  ;;  %v2316_v36 = vadd.f32 %v2315_v40, %v2285_v57  ;;  %v4179_v57 = vld [vmem:[%s4677_s18 + $0xa8] sm:$0xff]  ;;  %v1867_v31 = vmul.f32 %v8399_v46, %v5791_v30  ;;  %v8400_v29 = vld [vmem:[#allocation91_spill] sm:$0xff] }
 0x4ed   : > { %v1658_v9 = vsel %vm1537_vm4, %v1628_v10, 0.0  ;;  %v1993_v54 = vmul.f32 %v8398_v47, %v1612_v50  ;;  %v2613_v30 = vmul.f32 %v6131_v23, %v6131_v23 }
 0x4ee   : > { %v1994_v37 = vmul.f32 %v8398_v47, %v1658_v9  ;;  %v2614_v9 = vmul.f32 %v6129_v6, %v6129_v6 }
 0x4ef   : > { %v2025_v38 = vadd.f32 %v1993_v54, %v1897_v4  ;;  %v1424_v58 = vpop.permute.xlu1 %1423  ;;  %v6182_v54 = vmax.f32 %v4179_v57, 0.0 }
 0x4f0   : > { %v2026_v56 = vadd.f32 %v1994_v37, %v1898_v32  ;;  %v1494_v52 = vsel %vm1467_vm1, %v1456_v5, %v1424_v58  ;;  %v1478_v57 = vsel %vm1467_vm1, %v1424_v58, %v1456_v5 }
 0x4f1   : > { %v1524_v40 = vsel %vm1401_vm2, %v1494_v52, 0.0  ;;  %vm2057_vm12 = vcmp.ge.f32.partialorder %v2025_v38, 0.0  ;;  %v2090_v59 = vmul.f32 %v5928_v18, %v2025_v38  ;;  %v1772_v5 = vmul.f32 %v8400_v29, %v1478_v57 }
 0x4f2   : > { %v1771_v37 = vmul.f32 %v8400_v29, %v1524_v40  ;;  %vm2058_vm13 = vcmp.ge.f32.partialorder %v2026_v56, 0.0  ;;  %v2091_v50 = vmul.f32 %v5928_v18, %v2026_v56  ;;  %v8401_v40 = vld [vmem:[#allocation70_spill] sm:$0xff] }
 0x4f3   : > { %v1591_v10 = vpop.permute.xlu1 %1590  ;;  %v2122_v4 = vsel %vm2057_vm12, %v2025_v38, %v2090_v59  ;;  %v2589_v59 = vadd.f32 %v2588_v7, %v6170_v16 }
 0x4f4   : > { %v1899_v51 = vadd.f32 %v1867_v31, %v1771_v37  ;;  %v1613_v32 = vsel %vm1602_vm3, %v1559_v43, %v1591_v10  ;;  %v2123_v15 = vsel %vm2058_vm13, %v2026_v56, %v2091_v50  ;;  %v1629_v52 = vsel %vm1602_vm3, %v1591_v10, %v1559_v43  ;;  %v1426_v56 = vpop.permute.xlu0 %1425  ;;  %v4180_v10 = vld [vmem:[%s4677_s18 + $0xb0] sm:$0xff] }
 0x4f5   : > { %v1995_v47 = vmul.f32 %v8401_v40, %v1613_v32  ;;  %v2145_v38 = vpack.c.bf16 %v2123_v15, %v2121_v62  ;;  %v2144_v31 = vpack.c.bf16 %v2122_v4, %v6139_v34  ;;  %v2242_v37 = vadd.f32 %v2241_v17, %v2122_v4 }
 0x4f6   : > { %v2286_v61 = vmul.f32 %v2122_v4, %v2122_v4  ;;  %v2287_v11 = vmul.f32 %v2123_v15, %v2123_v15  ;;  %v2615_v43 = vmul.f32 %v6146_v0, %v6146_v0  ;;  %v1660_v62 = vsel %vm1537_vm4, %v1629_v52, 0.0 }
 0x4f7   : > { %v2027_v50 = vadd.f32 %v1995_v47, %v1899_v51  ;;  %v1458_v41 = vpop.permute.xlu1 %1457  ;;  %2160 = vmatprep.subr.bf16.mxu1 %v2145_v38  ;;  %v2629_v34 = vadd.f32 %v2614_v9, %v2613_v30  ;;  %v1868_v17 = vmul.f32 %v8399_v46, %v5783_v2  ;;  %v2243_v51 = vadd.f32 %v2242_v37, %v2123_v15  ;;  %v8407_v46 = vld [vmem:[#allocation98_spill] sm:$0xff] }
 0x4f8   : > { %v1495_v7 = vsel %vm1467_vm1, %v1458_v41, %v1426_v56  ;;  %2161 = vmatpush1.bf16.msra.mxu1 %v2144_v31  ;;  %v2317_v58 = vadd.f32 %v2316_v36, %v2286_v61  ;;  %v2590_v32 = vadd.f32 %v2589_v59, %v6182_v54  ;;  %v6209_v52 = vmax.f32 %v4180_v10, 0.0  ;;  %v4181_v31 = vld [vmem:[%s4677_s18 + $0xb8] sm:$0xff]  ;;  %v8402_v10 = vld [vmem:[#allocation93_spill] sm:$0xff] }
 0x4f9   : > { %vm2059_vm14 = vcmp.ge.f32.partialorder %v2027_v50, 0.0  ;;  %v2092_v47 = vmul.f32 %v5928_v18, %v2027_v50  ;;  %v1526_v4 = vsel %vm1401_vm2, %v1495_v7, 0.0  ;;  %v1996_v61 = vmul.f32 %v8401_v40, %v1660_v62 }
 0x4fa   : > { %v1479_v36 = vsel %vm1467_vm1, %v1426_v56, %v1458_v41  ;;  %v2318_v30 = vadd.f32 %v2317_v58, %v2287_v11  ;;  %v2616_v15 = vmul.f32 %v6159_v27, %v6159_v27  ;;  %v2630_v59 = vadd.f32 %v2629_v34, %v2615_v43  ;;  %v8403_v41 = vld [vmem:[#allocation92_spill] sm:$0xff]  ;;  %v1460_v58 = vpop.permute.xlu0 %1459 }
 0x4fb   : > { %v1561_v2 = vpop.permute.xlu1 %1560  ;;  %v6214_v9 = vsel %vm2059_vm14, %v2027_v50, %v2092_v47  ;;  %v1900_v37 = vadd.f32 %v1868_v17, %v1772_v5  ;;  %v1773_v62 = vmul.f32 %v8402_v10, %v1526_v4  ;;  %v1869_v56 = vmul.f32 %v8403_v41, %v5799_v55 }
 0x4fc   : > { %v6217_v38 = vadd.f32 %v2243_v51, %v6214_v9  ;;  %v2288_v57 = vmul.f32 %v6214_v9, %v6214_v9  ;;  %v1774_v11 = vmul.f32 %v8402_v10, %v1479_v36  ;;  %v1870_v7 = vmul.f32 %v8403_v41, %v5881_v45  ;;  %v4182_v36 = vld [vmem:[%s4677_s18 + $0xc0] sm:$0xff] }
 0x4fd   : > { %v2028_v47 = vadd.f32 %v1996_v61, %v1900_v37  ;;  %v6232_v43 = vmax.f32 %v4181_v31, 0.0  ;;  %v2591_v34 = vadd.f32 %v2590_v32, %v6209_v52  ;;  %v2617_v5 = vmul.f32 %v6170_v16, %v6170_v16  ;;  %v8405_v31 = vld [vmem:[#allocation96_spill] sm:$0xff] }
 0x4fe   : > { %v6228_v50 = vadd.f32 %v2318_v30, %v2288_v57  ;;  %v2631_v4 = vadd.f32 %v2630_v59, %v2616_v15  ;;  %v1901_v45 = vadd.f32 %v1869_v56, %v1773_v62  ;;  %v8404_v30 = vld [vmem:[#allocation94_spill] sm:$0xff]  ;;  %v1871_v32 = vmul.f32 %v8405_v31, %v5821_v42 }
 0x4ff   : > { %v1593_v51 = vpop.permute.xlu1 %1592  ;;  %v1872_v37 = vmul.f32 %v8405_v31, %v5807_v48  ;;  %v1902_v10 = vadd.f32 %v1870_v7, %v1774_v11  ;;  %v2093_v15 = vmul.f32 %v5928_v18, %v2028_v47  ;;  %v6252_v59 = vmax.f32 %v4182_v36, 0.0  ;;  %v8406_v36 = vld [vmem:[#allocation95_spill] sm:$0xff] }
 0x500   : > { %v1614_v17 = vsel %vm1602_vm3, %v1561_v2, %v1593_v51  ;;  %v1630_v55 = vsel %vm1602_vm3, %v1593_v51, %v1561_v2  ;;  %v4183_v51 = vld [vmem:[%s4677_s18 + $0xc8] sm:$0xff]  ;;  %v2592_v62 = vadd.f32 %v2591_v34, %v6232_v43  ;;  %vm2060_vm15 = vcmp.ge.f32.partialorder %v2028_v47, 0.0 }
 0x501   : > { %v1662_v61 = vsel %vm1537_vm4, %v1630_v55, 0.0  ;;  %v1997_v57 = vmul.f32 %v8404_v30, %v1614_v17  ;;  %v2632_v42 = vadd.f32 %v2631_v4, %v2617_v5  ;;  %v1563_v55 = vpop.permute.xlu0 %1562  ;;  %v6260_v7 = vmax.f32 %v4183_v51, 0.0 }
 0x502   : > { %v1998_v2 = vmul.f32 %v8404_v30, %v1662_v61  ;;  %v2618_v34 = vmul.f32 %v6182_v54, %v6182_v54  ;;  %v2125_v61 = vsel %vm2060_vm15, %v2028_v47, %v2093_v15  ;;  %v4184_v30 = vld [vmem:[%s4677_s18 + $0xd0] sm:$0xff]  ;;  %v1873_v29 = vmul.f32 %v8407_v46, %v5830_v28 }
 0x503   : > { %v2029_v41 = vadd.f32 %v1997_v57, %v1901_v45  ;;  %v1428_v40 = vpop.permute.xlu1 %1427  ;;  %v1874_v28 = vmul.f32 %v8407_v46, %v5931_v21 }
 0x504   : > { %v2030_v56 = vadd.f32 %v1998_v2, %v1902_v10  ;;  %v1496_v17 = vsel %vm1467_vm1, %v1460_v58, %v1428_v40  ;;  %v1480_v5 = vsel %vm1467_vm1, %v1428_v40, %v1460_v58  ;;  %v2593_v2 = vadd.f32 %v2592_v62, %v6252_v59  ;;  %v8408_v58 = vld [vmem:[#allocation72_spill] sm:$0xff] }
 0x505   : > { %v1528_v48 = vsel %vm1401_vm2, %v1496_v17, 0.0  ;;  %vm2061_vm5 = vcmp.ge.f32.partialorder %v2029_v41, 0.0  ;;  %v2094_v11 = vmul.f32 %v5928_v18, %v2029_v41  ;;  %v4185_v62 = vld [vmem:[%s4677_s18 + $0xd8] sm:$0xff] }
 0x506   : > { %v1775_v45 = vmul.f32 %v8406_v36, %v1528_v48  ;;  %vm2062_vm6 = vcmp.ge.f32.partialorder %v2030_v56, 0.0  ;;  %v2095_v10 = vmul.f32 %v5928_v18, %v2030_v56 }
 0x507   : > { %v1595_v4 = vpop.permute.xlu1 %1594  ;;  %v2126_v57 = vsel %vm2061_vm5, %v2029_v41, %v2094_v11  ;;  %v8409_v11 = vld [vmem:[#allocation102_spill] sm:$0xff] }
 0x508   : > { %v1903_v17 = vadd.f32 %v1871_v32, %v1775_v45  ;;  %v1615_v51 = vsel %vm1602_vm3, %v1563_v55, %v1595_v4  ;;  %v1631_v48 = vsel %vm1602_vm3, %v1595_v4, %v1563_v55  ;;  %v6273_v31 = vsel %vm2062_vm6, %v2030_v56, %v2095_v10  ;;  %v1430_v10 = vpop.permute.xlu0 %1429 }
 0x509   : > { %v1664_v40 = vsel %vm1537_vm4, %v1631_v48, 0.0  ;;  %v1999_v41 = vmul.f32 %v8408_v58, %v1615_v51  ;;  %v2147_v47 = vpack.c.bf16 %v6273_v31, %v2125_v61  ;;  %v1776_v32 = vmul.f32 %v8406_v36, %v1480_v5  ;;  %v8410_v48 = vld [vmem:[#allocation103_spill] sm:$0xff] }
 0x50a   : > { %v2146_v15 = vpack.c.bf16 %v2126_v57, %v6214_v9  ;;  %v2619_v56 = vmul.f32 %v6209_v52, %v6209_v52  ;;  %v2633_v55 = vadd.f32 %v2632_v42, %v2618_v34  ;;  %v6291_v45 = vmul.f32 %v8409_v11, %v5846_v12  ;;  %v4186_v12 = vld [vmem:[%s4677_s18 + $0xe0] sm:$0xff] }
 0x50b   : > { %v1462_v4 = vpop.permute.xlu1 %1461  ;;  %2162 = vmatprep.subr.bf16.mxu1 %v2147_v47  ;;  %v6293_v5 = vmax.f32 %v4184_v30, 0.0  ;;  %v2594_v9 = vadd.f32 %v2593_v2, %v6260_v7  ;;  %v6298_v51 = vmul.f32 %v8409_v11, %v5838_v13  ;;  %v2000_v42 = vmul.f32 %v8408_v58, %v1664_v40  ;;  %v4187_v47 = vld [vmem:[%s4677_s18 + $0xe8] sm:$0xff] }
 0x50c   : > { %v2031_v34 = vadd.f32 %v1999_v41, %v1903_v17  ;;  %v1497_v21 = vsel %vm1467_vm1, %v1462_v4, %v1430_v10  ;;  %2163 = vmatpush1.bf16.msra.mxu1 %v2146_v15  ;;  %v6306_v46 = vmul.f32 %v8410_v48, %v5857_v24  ;;  %v6310_v30 = vmul.f32 %v8410_v48, %v5992_v63 }
 0x50d   : > { %v2289_v2 = vmul.f32 %v2125_v61, %v2125_v61  ;;  %v6313_v13 = vmax.f32 %v4185_v62, 0.0  ;;  %v1904_v11 = vadd.f32 %v1872_v37, %v1776_v32  ;;  %v1530_v17 = vsel %vm1401_vm2, %v1497_v21, 0.0  ;;  %v1464_v21 = vpop.permute.xlu0 %1463 }
 0x50e   : > { %v2620_v40 = vmul.f32 %v6232_v43, %v6232_v43  ;;  %v2634_v41 = vadd.f32 %v2633_v55, %v2619_v56  ;;  %v1481_v24 = vsel %vm1467_vm1, %v1430_v10, %v1462_v4  ;;  %v2290_v15 = vmul.f32 %v2126_v57, %v2126_v57 }
 0x50f   : > { %v1565_v58 = vpop.permute.xlu1 %1564  ;;  %v6321_v36 = vmax.f32 %v4186_v12, 0.0  ;;  %v2595_v63 = vadd.f32 %v2594_v9, %v6293_v5  ;;  %v2032_v48 = vadd.f32 %v2000_v42, %v1904_v11  ;;  %v2096_v62 = vmul.f32 %v5928_v18, %v2031_v34 }
 0x510   : > { %v6325_v37 = vmax.f32 %v4187_v47, 0.0  ;;  %v2621_v32 = vmul.f32 %v6252_v59, %v6252_v59  ;;  %v1777_v56 = vmul.f32 %v8411_v26, %v1530_v17  ;;  %v2245_v55 = vadd.f32 %v6217_v38, %v2125_v61 }
 0x511   : > { %v2320_v10 = vadd.f32 %v6228_v50, %v2289_v2  ;;  %vm2063_vm7 = vcmp.ge.f32.partialorder %v2031_v34, 0.0  ;;  %v1778_v4 = vmul.f32 %v8411_v26, %v1481_v24  ;;  %v2622_v11 = vmul.f32 %v6260_v7, %v6260_v7  ;;  %v1567_v33 = vpop.permute.xlu0 %1566 }
 0x512   : > { %v2623_v9 = vmul.f32 %v6293_v5, %v6293_v5  ;;  %v2635_v42 = vadd.f32 %v2634_v41, %v2620_v40  ;;  %v2291_v12 = vmul.f32 %v6273_v31, %v6273_v31  ;;  %v2246_v47 = vadd.f32 %v2245_v55, %v2126_v57  ;;  %v8412_v41 = vld [vmem:[#allocation100_spill] sm:$0xff] }
 0x513   : > { %v2321_v1 = vadd.f32 %v2320_v10, %v2290_v15  ;;  %v1597_v17 = vpop.permute.xlu1 %1596  ;;  %v6340_v38 = vadd.f32 %v2595_v63, %v6313_v13  ;;  %v2097_v2 = vmul.f32 %v5928_v18, %v2032_v48  ;;  %v2128_v24 = vsel %vm2063_vm7, %v2031_v34, %v2096_v62 }
 0x514   : > { %v1616_v50 = vsel %vm1602_vm3, %v1565_v58, %v1597_v17  ;;  %v1632_v61 = vsel %vm1602_vm3, %v1597_v17, %v1565_v58  ;;  %v1905_v26 = vadd.f32 %v1873_v29, %v1777_v56  ;;  %vm2064_vm8 = vcmp.ge.f32.partialorder %v2032_v48, 0.0 }
 0x515   : > { %v1666_v40 = vsel %vm1537_vm4, %v1632_v61, 0.0  ;;  %v2001_v57 = vmul.f32 %v8412_v41, %v1616_v50  ;;  %v1906_v15 = vadd.f32 %v1874_v28, %v1778_v4  ;;  %v2624_v55 = vmul.f32 %v6313_v13, %v6313_v13 }
 0x516   : > { %v2002_v63 = vmul.f32 %v8412_v41, %v1666_v40  ;;  %v2636_v10 = vadd.f32 %v2635_v42, %v2621_v32  ;;  %v2247_v17 = vadd.f32 %v2246_v47, %v6273_v31  ;;  %v2292_v34 = vmul.f32 %v2128_v24, %v2128_v24  ;;  %v8413_v42 = vld [vmem:[#allocation99_spill] sm:$0xff] }
 0x517   : > { %v2033_v49 = vadd.f32 %v2001_v57, %v1905_v26  ;;  %v1432_v58 = vpop.permute.xlu1 %1431  ;;  %v2322_v29 = vadd.f32 %v2321_v1, %v2291_v12  ;;  %v2129_v4 = vsel %vm2064_vm8, %v2032_v48, %v2097_v2 }
 0x518   : > { %v2034_v62 = vadd.f32 %v2002_v63, %v1906_v15  ;;  %v1482_v56 = vsel %vm1467_vm1, %v1432_v58, %v1464_v21  ;;  %v1498_v28 = vsel %vm1467_vm1, %v1464_v21, %v1432_v58  ;;  %v2248_v26 = vadd.f32 %v2247_v17, %v2128_v24  ;;  %v1434_v58 = vpop.permute.xlu0 %1433 }
 0x519   : > { %v1532_v50 = vsel %vm1401_vm2, %v1498_v28, 0.0  ;;  %vm2065_vm9 = vcmp.ge.f32.partialorder %v2033_v49, 0.0  ;;  %v2098_v32 = vmul.f32 %v5928_v18, %v2033_v49  ;;  %v1780_v31 = vmul.f32 %v8413_v42, %v1482_v56  ;;  %v8414_v56 = vld [vmem:[#allocation74_spill] sm:$0xff] }
 0x51a   : > { %v1779_v61 = vmul.f32 %v8413_v42, %v1532_v50  ;;  %vm2066_vm10 = vcmp.ge.f32.partialorder %v2034_v62, 0.0  ;;  %v2099_v1 = vmul.f32 %v5928_v18, %v2034_v62  ;;  %v2293_v47 = vmul.f32 %v2129_v4, %v2129_v4 }
 0x51b   : > { %v1599_v12 = vpop.permute.xlu1 %1598  ;;  %v2130_v40 = vsel %vm2065_vm9, %v2033_v49, %v2098_v32  ;;  %v2323_v57 = vadd.f32 %v2322_v29, %v2292_v34  ;;  %v2637_v21 = vadd.f32 %v2636_v10, %v2622_v11  ;;  %v2249_v41 = vadd.f32 %v2248_v26, %v2129_v4  ;;  %v8415_v26 = vld [vmem:[#allocation101_spill] sm:$0xff] }
 0x51c   : > { %v1907_v48 = vadd.f32 %v6291_v45, %v1779_v61  ;;  %v1617_v2 = vsel %vm1602_vm3, %v1567_v33, %v1599_v12  ;;  %v1633_v15 = vsel %vm1602_vm3, %v1599_v12, %v1567_v33  ;;  %v2131_v63 = vsel %vm2066_vm10, %v2034_v62, %v2099_v1 }
 0x51d   : > { %v1668_v17 = vsel %vm1537_vm4, %v1633_v15, 0.0  ;;  %v2003_v28 = vmul.f32 %v8414_v56, %v1617_v2  ;;  %v2149_v50 = vpack.c.bf16 %v2131_v63, %v2129_v4  ;;  %v1908_v49 = vadd.f32 %v6298_v51, %v1780_v31 }
 0x51e   : > { %v2004_v11 = vmul.f32 %v8414_v56, %v1668_v17  ;;  %v2148_v45 = vpack.c.bf16 %v2130_v40, %v2128_v24  ;;  %v2294_v10 = vmul.f32 %v2130_v40, %v2130_v40  ;;  %v2295_v32 = vmul.f32 %v2131_v63, %v2131_v63 }
 0x51f   : > { %v2035_v34 = vadd.f32 %v2003_v28, %v1907_v48  ;;  %v1466_v29 = vpop.permute.xlu1 %1465  ;;  %2164 = vmatprep.subr.bf16.mxu1 %v2149_v50  ;;  %v2324_v33 = vadd.f32 %v2323_v57, %v2293_v47  ;;  %v2638_v62 = vadd.f32 %v2637_v21, %v2623_v9  ;;  %v2250_v4 = vadd.f32 %v2249_v41, %v2130_v40  ;;  %v1569_v21 = vpop.permute.xlu0 %1568 }
 0x520   : > { %v2036_v61 = vadd.f32 %v2004_v11, %v1908_v49  ;;  %v1483_v1 = vsel %vm1467_vm1, %v1434_v58, %v1466_v29  ;;  %v1499_v12 = vsel %vm1467_vm1, %v1466_v29, %v1434_v58  ;;  %2165 = vmatpush1.bf16.msra.mxu1 %v2148_v45  ;;  %v2597_v41 = vadd.f32 %v6340_v38, %v6321_v36  ;;  %v6396_v49 = vld [vmem:[%s8057_s4] ss:$0 sm:$0xff]  ;;  %v4188_v11 = vld [vmem:[%s4677_s18 + $0xf0] sm:$0xff] }
 0x521   : > { %vm2067_vm11 = vcmp.ge.f32.partialorder %v2035_v34, 0.0  ;;  %v2100_v51 = vmul.f32 %v5928_v18, %v2035_v34  ;;  %v1534_v24 = vsel %vm1401_vm2, %v1499_v12, 0.0  ;;  %v1782_v31 = vmul.f32 %v8415_v26, %v1483_v1  ;;  %v483_v38 = vld [vmem:[%s8058_s5] sm:$0xff]  ;;  %v484_v12 = vld [vmem:[%s8058_s5 + $0x8] sm:$0xff] }
 0x522   : > { %v1781_v47 = vmul.f32 %v8415_v26, %v1534_v24  ;;  %v2325_v9 = vadd.f32 %v2324_v33, %v2294_v10  ;;  %vm2068_vm12 = vcmp.ge.f32.partialorder %v2036_v61, 0.0  ;;  %v2101_v57 = vmul.f32 %v5928_v18, %v2036_v61 }
 0x523   : > { %v2132_v48 = vsel %vm2067_vm11, %v2035_v34, %v2100_v51  ;;  %v1601_v2 = vpop.permute.xlu1 %1600  ;;  %v2625_v40 = vmul.f32 %v6321_v36, %v6321_v36  ;;  %v2639_v15 = vadd.f32 %v2638_v62, %v2624_v55  ;;  %v2251_v17 = vadd.f32 %v2250_v4, %v2131_v63  ;;  %v8416_v63 = vld [vmem:[#allocation104_spill] sm:$0xff] }
 0x524   : > { %v1909_v58 = vadd.f32 %v6306_v46, %v1781_v47  ;;  %v1618_v28 = vsel %vm1602_vm3, %v1569_v21, %v1601_v2  ;;  %v1634_v50 = vsel %vm1602_vm3, %v1601_v2, %v1569_v21  ;;  %v1910_v46 = vadd.f32 %v6310_v30, %v1782_v31  ;;  %v4189_v47 = vld [vmem:[%s4677_s18 + $0xf8] sm:$0xff] }
 0x525   : > { %v1670_v55 = vsel %vm1537_vm4, %v1634_v50, 0.0  ;;  %v2005_v45 = vmul.f32 %v8416_v63, %v1618_v28  ;;  %v2133_v10 = vsel %vm2068_vm12, %v2036_v61, %v2101_v57  ;;  %v2252_v29 = vadd.f32 %v2251_v17, %v2132_v48 }
 0x526   : > { %v2006_v34 = vmul.f32 %v8416_v63, %v1670_v55  ;;  %v2296_v33 = vmul.f32 %v2132_v48, %v2132_v48  ;;  %v2326_v62 = vadd.f32 %v2325_v9, %v2295_v32  ;;  %v6412_v4 = vmul.f32 %v6396_v49, %v483_v38 }
 0x527   : > { %v2037_v1 = vadd.f32 %v2005_v45, %v1909_v58  ;;  %v6414_v30 = vmax.f32 %v4188_v11, 0.0  ;;  %v2297_v24 = vmul.f32 %v2133_v10, %v2133_v10  ;;  %v2626_v61 = vmul.f32 %v6325_v37, %v6325_v37 }
 0x528   : > { %8417 = vst [vmem:[#allocation106_spill] sm:$0xff] %v6412_v4  ;;  %v2038_v51 = vadd.f32 %v2006_v34, %v1910_v46  ;;  %v2327_v31 = vadd.f32 %v2326_v62, %v2296_v33  ;;  %v2598_v32 = vadd.f32 %v2597_v41, %v6325_v37  ;;  %v2640_v9 = vadd.f32 %v2639_v15, %v2625_v40 }
 0x529   : > { %v2102_v57 = vmul.f32 %v5928_v18, %v2037_v1  ;;  %vm2069_vm13 = vcmp.ge.f32.partialorder %v2037_v1, 0.0  ;;  %v2253_v2 = vadd.f32 %v2252_v29, %v2133_v10  ;;  %v6423_v58 = vmul.f32 %v6396_v49, %v484_v12 }
 0x52a   : > { %vm2070_vm14 = vcmp.ge.f32.partialorder %v2038_v51, 0.0  ;;  %v2103_v21 = vmul.f32 %v5928_v18, %v2038_v51  ;;  %v2466_v28 = vpack.c.bf16 %v6159_v27, %v6129_v6  ;;  %v2464_v50 = vmax.f32 %v4189_v47, 0.0  ;;  %v7027_v18 = vld [vmem:[%s8056_s3 + $0x70] sm:$0xff] }
 0x52b   : > { %8418 = vst [vmem:[#allocation53_spill] sm:$0xff] %v6423_v58  ;;  %v2134_v17 = vsel %vm2069_vm13, %v2037_v1, %v2102_v57  ;;  %v2627_v38 = vmul.f32 %v6414_v30, %v6414_v30  ;;  %v2328_v41 = vadd.f32 %v2327_v31, %v2297_v24  ;;  %v2599_v45 = vadd.f32 %v2598_v32, %v6414_v30  ;;  %v485_v1 = vld [vmem:[%s8058_s5 + $0x10] sm:$0xff]  ;;  %v487_v57 = vld [vmem:[%s8058_s5 + $0x20] sm:$0xff]  ;;  %v488_v32 = vld [vmem:[%s8058_s5 + $0x28] sm:$0xff] }
 0x52c   : > { %v2135_v11 = vsel %vm2070_vm14, %v2038_v51, %v2103_v21  ;;  %v2254_v46 = vadd.f32 %v2253_v2, %v2134_v17  ;;  %v2298_v55 = vmul.f32 %v2134_v17, %v2134_v17  ;;  %v2641_v34 = vadd.f32 %v2640_v9, %v2626_v61  ;;  %v8429_v2 = vld [vmem:[#allocation9_spill] sm:$0xff] }
 0x52d   : > { %v2151_v40 = vpack.c.bf16 %v2135_v11, %v2133_v10  ;;  %v2299_v15 = vmul.f32 %v2135_v11, %v2135_v11  ;;  %v2150_v33 = vpack.c.bf16 %v2134_v17, %v2132_v48  ;;  %v6432_v6 = vpack.c.bf16 %v6423_v58, %v6412_v4  ;;  %v486_v10 = vld [vmem:[%s8058_s5 + $0x18] sm:$0xff]  ;;  %v8430_v17 = vld [vmem:[#allocation10_spill] sm:$0xff] }
 0x52e   : > { %v2255_v29 = vadd.f32 %v2254_v46, %v2135_v11  ;;  %v2329_v62 = vadd.f32 %v2328_v41, %v2298_v55  ;;  %v2465_v48 = vpack.c.bf16 %v6146_v0, %v6131_v23  ;;  %v2600_v12 = vadd.f32 %v2599_v45, %v2464_v50  ;;  %v8435_v11 = vld [vmem:[#allocation15_spill] sm:$0xff]  ;;  %v8436_v46 = vld [vmem:[#allocation16_spill] sm:$0xff] }
 0x52f   : > { %2166 = vmatprep.subr.bf16.mxu1 %v2151_v40  ;;  %8419 = vst [vmem:[#allocation55_spill] sm:$0xff] %v6432_v6  ;;  %v2468_v51 = vpack.c.bf16 %v6232_v43, %v6182_v54  ;;  %v2628_v24 = vmul.f32 %v2464_v50, %v2464_v50  ;;  %v2642_v31 = vadd.f32 %v2641_v34, %v2627_v38  ;;  %v8434_v38 = vld [vmem:[#allocation14_spill] sm:$0xff] }
 0x530   : > { %2256 = vadd.xlane.f32.xlu0 %v2255_v29  ;;  %2167 = vmatpush1.bf16.msra.mxu1 %v2150_v33  ;;  %v2330_v27 = vadd.f32 %v2329_v62, %v2299_v15  ;;  %v6446_v47 = vmul.f32 %v6396_v49, %v485_v1  ;;  %v6449_v61 = vmul.f32 %v6396_v49, %v486_v10 }
 0x531   : > { %2473 = vmatprep.subr.bf16.mxu1 %v2466_v28  ;;  %v2467_v23 = vpack.c.bf16 %v6209_v52, %v6170_v16  ;;  %v2643_v0 = vadd.f32 %v2642_v31, %v2628_v24  ;;  %v2470_v54 = vpack.c.bf16 %v6313_v13, %v6260_v7  ;;  %v2469_v16 = vpack.c.bf16 %v6293_v5, %v6252_v59  ;;  %v489_v5 = vld [vmem:[%s8058_s5 + $0x30] sm:$0xff]  ;;  %v8432_v28 = vld [vmem:[#allocation12_spill] sm:$0xff] }
 0x532   : > { %2331 = vadd.xlane.f32.xlu1 %v2330_v27  ;;  %8420 = vst [vmem:[#allocation107_spill] sm:$0xff] %v6446_v47  ;;  %8421 = vst [vmem:[#allocation46_spill] sm:$0xff] %v6449_v61  ;;  %v6458_v43 = vpack.c.bf16 %v6449_v61, %v6446_v47  ;;  %v2472_v52 = vpack.c.bf16 %v2464_v50, %v6325_v37  ;;  %v6471_v7 = vmul.f32 %v6396_v49, %v487_v57  ;;  %v490_v37 = vld [vmem:[%s8058_s5 + $0x38] sm:$0xff]  ;;  %v8433_v50 = vld [vmem:[#allocation13_spill] sm:$0xff] }
 0x533   : > { %2185 = vmatmul.mubr.bf16.vlgmr.msra.gmra.mrb[0].mxu1 %v6432_v6  ;;  %v6474_v13 = vmul.f32 %v6396_v49, %v488_v32  ;;  %v2471_v9 = vpack.c.bf16 %v6414_v30, %v6321_v36  ;;  %v6491_v21 = vmul.f32 %v6396_v49, %v489_v5  ;;  %v6494_v36 = vmul.f32 %v6396_v49, %v490_v37  ;;  %v8431_v49 = vld [vmem:[#allocation11_spill] sm:$0xff]  ;;  %v8457_v61 = vld [vmem:[#allocation20_spill] sm:$0xff] }
 0x534   : > { %2194 = vmatprep.mubr.bf16.mxu1 %v8302_v8  ;;  %2474 = vmatpush1.bf16.msra.mxu1 %v2465_v48  ;;  %8422 = vst [vmem:[#allocation49_spill] sm:$0xff] %v6458_v43  ;;  %8423 = vst [vmem:[#allocation52_spill] sm:$0xff] %v6471_v7 }
 0x535   : > { %2601 = vadd.xlane.f32.xlu0 %v2600_v12  ;;  %2475 = vmatprep.subr.bf16.mxu1 %v2468_v51  ;;  %8424 = vst [vmem:[#allocation56_spill] sm:$0xff] %v6474_v13  ;;  %v6481_v59 = vpack.c.bf16 %v6474_v13, %v6471_v7  ;;  %8426 = vst [vmem:[#allocation109_spill] sm:$0xff] %v6491_v21  ;;  %v6499_v30 = vpack.c.bf16 %v6494_v36, %v6491_v21  ;;  %v8456_v13 = vld [vmem:[#allocation21_spill] sm:$0xff] }
 0x536   : > { %8427 = vst [vmem:[#allocation110_spill] sm:$0xff] %v6494_v36 }
 0x537   : > { %8425 = vst [vmem:[#allocation108_spill] sm:$0xff] %v6481_v59  ;;  %8428 = vst [vmem:[#allocation111_spill] sm:$0xff] %v6499_v30 }
 0x538   : > { %2476 = vmatpush1.bf16.msra.mxu1 %v2467_v23 }
 0x539   : > { %2644 = vadd.xlane.f32.xlu0 %v2643_v0  ;;  %2477 = vmatprep.subr.bf16.mxu1 %v2470_v54 }
 0x53b   : > { %2195 = vmatmul.mubr.bf16.gmra.mrb[4].mxu1 %v6458_v43 }
 0x53c   : > { %2204 = vmatprep.mubr.bf16.mxu1 %v8302_v8  ;;  %2478 = vmatpush1.bf16.msra.mxu1 %v2469_v16 }
 0x53d   : > { %2479 = vmatprep.subr.bf16.mxu1 %v2472_v52 }
 0x540   : > { %2480 = vmatpush1.bf16.msra.mxu1 %v2471_v9 }
 0x543   : > { %2205 = vmatmul.mubr.bf16.gmra.mrb[8].mxu1 %v6481_v59 }
 0x544   : > { %2214 = vmatprep.mubr.bf16.mxu1 %v8302_v8 }
 0x54b   : > { %2215 = vmatmul.mubr.bf16.gmra.mrb[12].mxu1 %v6499_v30 }
 0x54c   : > { %2505 = vmatprep.mubr.bf16.mxu1 %v8302_v8 }
 0x553   : > { %4190 = vmatmul.mubr.msk.bf16.vlgmr.msra.gmra.mrb[16].mxu1 %vm348_vm0, %v8429_v2 }
 0x554   : > { %2515 = vmatprep.mubr.bf16.mxu1 %v8302_v8 }
 0x55b   : > { %4191 = vmatmul.mubr.msk.bf16.gmra.mrb[20].mxu1 %vm348_vm0, %v8430_v17 }
 0x55c   : > { %2525 = vmatprep.mubr.bf16.mxu1 %v8302_v8 }
 0x563   : > { %4192 = vmatmul.mubr.msk.bf16.gmra.mrb[24].mxu1 %vm348_vm0, %v8431_v49 }
 0x564   : > { %2535 = vmatprep.mubr.bf16.mxu1 %v8302_v8 }
 0x56b   : > { %4193 = vmatmul.mubr.msk.bf16.gmra.mrb[28].mxu1 %vm348_vm0, %v8432_v28 }
 0x56c   : > { %2545 = vmatprep.mubr.bf16.mxu1 %v8302_v8 }
 0x573   : > { %4194 = vmatmul.mubr.msk.bf16.gmra.mrb[32].mxu1 %vm348_vm0, %v8433_v50 }
 0x574   : > { %2555 = vmatprep.mubr.bf16.mxu1 %v8302_v8 }
 0x57b   : > { %4195 = vmatmul.mubr.msk.bf16.gmra.mrb[36].mxu1 %vm348_vm0, %v8434_v38 }
 0x57c   : > { %2565 = vmatprep.mubr.bf16.mxu1 %v8302_v8 }
 0x583   : > { %4196 = vmatmul.mubr.msk.bf16.gmra.mrb[40].mxu1 %vm348_vm0, %v8435_v11 }
 0x584   : > { %2575 = vmatprep.mubr.bf16.mxu1 %v8302_v8 }
 0x58b   : > { %4197 = vmatmul.mubr.msk.bf16.gmra.mrb[44].mxu1 %vm348_vm0, %v8436_v46 }
 0x5bd   : > { %v2257_v55 = vpop.xlane.xlu0 %2256 }
 0x5be   : > { %v2258_v41 = vrot.slane %v2257_v55, 4 }
 0x5bf   : > { %v2332_v40 = vpop.xlane.xlu1 %2331 }
 0x5c0   : > { %v2259_v15 = vadd.f32 %v2258_v41, %v2257_v55  ;;  %v2333_v45 = vrot.slane %v2332_v40, 4 }
 0x5c2   : > { %v2334_v34 = vadd.f32 %v2333_v45, %v2332_v40  ;;  %v2260_v29 = vrot.slane %v2259_v15, 2  ;;  %v2602_v51 = vpop.xlane.xlu0 %2601 }
 0x5c3   : > { %v2603_v31 = vrot.slane %v2602_v51, 4 }
 0x5c4   : > { %v2261_v33 = vadd.f32 %v2260_v29, %v2259_v15  ;;  %v2335_v62 = vrot.slane %v2334_v34, 2 }
 0x5c5   : > { %v2604_v0 = vadd.f32 %v2603_v31, %v2602_v51 }
 0x5c6   : > { %v2262_v27 = vrot.slane %v2261_v33, 1  ;;  %v2336_v1 = vadd.f32 %v2335_v62, %v2334_v34  ;;  %v2645_v24 = vpop.xlane.xlu0 %2644 }
 0x5c7   : > { %v2646_v23 = vrot.slane %v2645_v24, 4  ;;  %v2605_v57 = vrot.slane %v2604_v0, 2 }
 0x5c8   : > { %v2263_v10 = vadd.f32 %v2262_v27, %v2261_v33  ;;  %v2337_v48 = vrot.slane %v2336_v1, 1 }
 0x5c9   : > { %v2647_v54 = vadd.f32 %v2646_v23, %v2645_v24  ;;  %v2606_v5 = vadd.f32 %v2605_v57, %v2604_v0 }
 0x5ca   : > { %4236 = vpush %v2263_v10  ;;  %v2338_v12 = vadd.f32 %v2337_v48, %v2336_v1 }
 0x5cb   : > { %v2648_v16 = vrot.slane %v2647_v54, 2  ;;  %v2607_v49 = vrot.slane %v2606_v5, 1 }
 0x5cc   : > { %4238 = vpush %v2338_v12 }
 0x5cd   : > { %v2649_v2 = vadd.f32 %v2648_v16, %v2647_v54  ;;  %v2608_v46 = vadd.f32 %v2607_v49, %v2606_v5 }
 0x5cf   : > { %v2650_v28 = vrot.slane %v2649_v2, 1 }
 0x5d1   : > { %v2651_v41 = vadd.f32 %v2650_v28, %v2649_v2 }
 0x5fb   : > { %s4237_s13 = spop %4236 }
 0x5fc   : > { %s6526_s24 = smul.f32 3.0517578e-05, %s4237_s13 }
 0x5fd   : > { %s4239_s25 = spop %4238 }
 0x5fe   : > { %s2343_s16 = smul.f32 %s6526_s24, %s6526_s24 }
 0x5ff   : > { %s2342_s19 = smul.f32 3.0517578e-05, %s4239_s25 }
 0x601   : > { %s2344_s20 = ssub.f32 %s2342_s19, %s2343_s16 }
 0x603   : > { %s2345_s22 = sadd.f32 1e-08, %s2344_s20 }
 0x605   : > { %v2346_v32 = vstv %s2345_s22 }
 0x606   : > { %4349 = vrsqrt.f32 %v2346_v32  ;;  %v2186_v52 = vpop.f32.mrb[0].mxu1 }
 0x607   : > { %v2188_v9 = vpop.f32.mrb[1].mxu1 }
 0x608   : > { %v2190_v37 = vpop.f32.mrb[2].mxu1 }
 0x609   : > { %v2192_v17 = vpop.f32.mrb[3].mxu1 }
 0x60e   : > { %v2196_v50 = vpop.f32.mrb[4].mxu1 }
 0x60f   : > { %v2198_v38 = vpop.f32.mrb[5].mxu1 }
 0x610   : > { %v4350_v11 = vpop.eup %4349  ;;  %v2200_v55 = vpop.f32.mrb[6].mxu1 }
 0x611   : > { %4240 = vpush %v4350_v11  ;;  %v2202_v40 = vpop.f32.mrb[7].mxu1 }
 0x612   : > { %4242 = vpush %v2608_v46 }
 0x613   : > { %4244 = vpush %v2651_v41 }
 0x616   : > { %v2206_v15 = vpop.f32.mrb[8].mxu1 }
 0x617   : > { %v2208_v45 = vpop.f32.mrb[9].mxu1 }
 0x618   : > { %v2210_v34 = vpop.f32.mrb[10].mxu1 }
 0x619   : > { %v2212_v29 = vpop.f32.mrb[11].mxu1 }
 0x61e   : > { %v2216_v33 = vpop.f32.mrb[12].mxu1 }
 0x61f   : > { %v2218_v62 = vpop.f32.mrb[13].mxu1 }
 0x620   : > { %v2220_v27 = vpop.f32.mrb[14].mxu1 }
 0x621   : > { %v2222_v1 = vpop.f32.mrb[15].mxu1 }
 0x626   : > { %v6530_v10 = vpop.f32.mrb[16].mxu1 }
 0x627   : > { %v6532_v48 = vpop.f32.mrb[17].mxu1 }
 0x628   : > { %v6534_v12 = vpop.f32.mrb[18].mxu1 }
 0x629   : > { %v6536_v51 = vpop.f32.mrb[19].mxu1 }
 0x62e   : > { %v6538_v24 = vpop.f32.mrb[20].mxu1 }
 0x62f   : > { %v6540_v31 = vpop.f32.mrb[21].mxu1 }
 0x630   : > { %v6542_v23 = vpop.f32.mrb[22].mxu1 }
 0x631   : > { %v6544_v0 = vpop.f32.mrb[23].mxu1 }
 0x636   : > { %v6546_v54 = vpop.f32.mrb[24].mxu1 }
 0x637   : > { %v6548_v57 = vpop.f32.mrb[25].mxu1 }
 0x638   : > { %v6550_v32 = vpop.f32.mrb[26].mxu1 }
 0x639   : > { %v6552_v16 = vpop.f32.mrb[27].mxu1 }
 0x63e   : > { %v6554_v5 = vpop.f32.mrb[28].mxu1 }
 0x63f   : > { %v6556_v2 = vpop.f32.mrb[29].mxu1 }
 0x640   : > { %v6558_v49 = vpop.f32.mrb[30].mxu1 }
 0x641   : > { %v6560_v28 = vpop.f32.mrb[31].mxu1 }
 0x642   : > { %s6562_s30 = spop %4240 }
 0x643   : > { %v2367_v11 = vstv %s6562_s30  ;;  %s4243_s9 = spop %4242 }
 0x644   : > { %s6565_s17 = smul.f32 6.1035156e-05, %s4243_s9  ;;  %s4245_s13 = spop %4244  ;;  %v6567_v46 = vmul.f32 %v2367_v11, %v2222_v1  ;;  %v6569_v41 = vmul.f32 %v2367_v11, %v2190_v37  ;;  %v6571_v30 = vmul.f32 %v2367_v11, %v2192_v17  ;;  %v6573_v21 = vmul.f32 %v2367_v11, %v2200_v55 }
 0x645   : > { %s2655_s25 = smul.f32 6.1035156e-05, %s4245_s13  ;;  %v6575_v59 = vmul.f32 %v2367_v11, %v2202_v40  ;;  %v6577_v7 = vmul.f32 %v2367_v11, %v2186_v52  ;;  %v6579_v36 = vmul.f32 %v2367_v11, %v2188_v9  ;;  %v6585_v43 = vmul.f32 %v2367_v11, %v2210_v34 }
 0x646   : > { %8437 = vst [vmem:[#allocation9_spill] sm:$0xff] %v6567_v46  ;;  %8438 = vst [vmem:[#allocation10_spill] sm:$0xff] %v6569_v41  ;;  %s2656_s16 = smul.f32 %s6565_s17, %s6565_s17  ;;  %v6583_v47 = vpop.f32.mrb[32].mxu1  ;;  %v6587_v1 = vmul.f32 %v2367_v11, %v2212_v29  ;;  %v6589_v37 = vmul.f32 %v2367_v11, %v2196_v50  ;;  %v6591_v17 = vmul.f32 %v2367_v11, %v2198_v38 }
 0x647   : > { %8439 = vst [vmem:[#allocation11_spill] sm:$0xff] %v6571_v30  ;;  %8440 = vst [vmem:[#allocation12_spill] sm:$0xff] %v6573_v21  ;;  %v6593_v55 = vpop.f32.mrb[33].mxu1  ;;  %v6595_v40 = vmul.f32 %v2367_v11, %v2220_v27  ;;  %v6597_v52 = vmul.f32 %v2367_v11, %v2206_v15  ;;  %v6599_v9 = vmul.f32 %v2367_v11, %v2208_v45 }
 0x648   : > { %8441 = vst [vmem:[#allocation13_spill] sm:$0xff] %v6575_v59  ;;  %8442 = vst [vmem:[#allocation14_spill] sm:$0xff] %v6577_v7  ;;  %v6601_v46 = vmul.f32 %v2367_v11, %v2216_v33  ;;  %s2657_s19 = ssub.f32 %s2655_s25, %s2656_s16  ;;  %v6605_v34 = vmul.f32 %v2367_v11, %v2218_v62  ;;  %v8455_v59 = vld [vmem:[#allocation19_spill] sm:$0xff] }
 0x649   : > { %8443 = vst [vmem:[#allocation15_spill] sm:$0xff] %v6579_v36  ;;  %8444 = vst [vmem:[#allocation16_spill] sm:$0xff] %v6585_v43  ;;  %v6603_v36 = vpop.f32.mrb[34].mxu1  ;;  %v8454_v43 = vld [vmem:[#allocation18_spill] sm:$0xff] }
 0x64a   : > { %8445 = vst [vmem:[#allocation112_spill] sm:$0xff] %v6587_v1  ;;  %8446 = vst [vmem:[#allocation113_spill] sm:$0xff] %v6589_v37  ;;  %v6607_v29 = vpop.f32.mrb[35].mxu1  ;;  %s2658_s20 = sadd.f32 1e-08, %s2657_s19  ;;  %v8453_v37 = vld [vmem:[#allocation17_spill] sm:$0xff] }
 0x64b   : > { %8447 = vst [vmem:[#allocation114_spill] sm:$0xff] %v6591_v17  ;;  %8448 = vst [vmem:[#allocation115_spill] sm:$0xff] %v6595_v40 }
 0x64c   : > { %8449 = vst [vmem:[#allocation116_spill] sm:$0xff] %v6597_v52  ;;  %8450 = vst [vmem:[#allocation117_spill] sm:$0xff] %v6599_v9  ;;  %v2659_v50 = vstv %s2658_s20 }
 0x64d   : > { %8451 = vst [vmem:[#allocation118_spill] sm:$0xff] %v6601_v46  ;;  %8452 = vst [vmem:[#allocation119_spill] sm:$0xff] %v6605_v34  ;;  %4351 = vrsqrt.f32 %v2659_v50 }
 0x64e   : > { %v6609_v38 = vpop.f32.mrb[36].mxu1 }
 0x64f   : > { %v6611_v27 = vpop.f32.mrb[37].mxu1 }
 0x650   : > { %v6613_v15 = vpop.f32.mrb[38].mxu1 }
 0x651   : > { %v6615_v45 = vpop.f32.mrb[39].mxu1 }
 0x656   : > { %v6617_v33 = vpop.f32.mrb[40].mxu1 }
 0x657   : > { %v4352_v46 = vpop.eup %4351  ;;  %v6619_v9 = vpop.f32.mrb[41].mxu1 }
 0x658   : > { %4246 = vpush %v4352_v46  ;;  %v6621_v62 = vpop.f32.mrb[42].mxu1 }
 0x659   : > { %v6623_v11 = vpop.f32.mrb[43].mxu1 }
 0x65e   : > { %v6625_v50 = vpop.f32.mrb[44].mxu1 }
 0x65f   : > { %v6627_v34 = vpop.f32.mrb[45].mxu1 }
 0x660   : > { %v6629_v52 = vpop.f32.mrb[46].mxu1 }
 0x661   : > { %v6631_v40 = vpop.f32.mrb[47].mxu1 }
 0x689   : > { %s4247_s22 = spop %4246 }
 0x68a   : > { %s2662_s9 = smul.f32 %s4247_s22, %s6565_s17  ;;  %v6638_v46 = vstv %s4247_s22 }
 0x68b   : > { %v2697_v30 = vmul.f32 %v6638_v46, %v6530_v10  ;;  %v2698_v41 = vmul.f32 %v6638_v46, %v6532_v48  ;;  %v2699_v6 = vmul.f32 %v6638_v46, %v6534_v12  ;;  %v8459_v10 = vld [vmem:[#allocation22_spill] sm:$0xff]  ;;  %v8461_v12 = vld [vmem:[#allocation24_spill] sm:$0xff] }
 0x68c   : > { %v6634_v17 = vstv %s2662_s9 }
 0x68d   : > { %v2664_v1 = vmul.f32 %v6634_v17, %v8453_v37  ;;  %v2665_v7 = vmul.f32 %v6634_v17, %v8454_v43  ;;  %v2666_v58 = vmul.f32 %v6634_v17, %v8456_v13  ;;  %v2700_v43 = vmul.f32 %v6638_v46, %v6536_v51 }
 0x68e   : > { %v2702_v13 = vmul.f32 %v6638_v46, %v6540_v31  ;;  %v2704_v31 = vmul.f32 %v6638_v46, %v6544_v0 }
 0x68f   : > { %v2680_v21 = vsub.f32 %v8455_v59, %v2664_v1  ;;  %v2681_v8 = vsub.f32 %v8457_v61, %v2665_v7  ;;  %v8458_v59 = vld [vmem:[#allocation23_spill] sm:$0xff]  ;;  %v2682_v63 = vsub.f32 %v8459_v10, %v2666_v58  ;;  %v2701_v61 = vmul.f32 %v6638_v46, %v6538_v24 }
 0x690   : > { %v2667_v1 = vmul.f32 %v6634_v17, %v8458_v59  ;;  %v2703_v58 = vmul.f32 %v6638_v46, %v6542_v23 }
 0x691   : > { %v2729_v4 = vadd.f32 %v2697_v30, %v2680_v21  ;;  %v2730_v37 = vadd.f32 %v2698_v41, %v2680_v21  ;;  %v2731_v26 = vadd.f32 %v2699_v6, %v2681_v8  ;;  %v2732_v7 = vadd.f32 %v2700_v43, %v2681_v8  ;;  %v8460_v21 = vld [vmem:[#allocation25_spill] sm:$0xff] }
 0x692   : > { %v2668_v30 = vmul.f32 %v6634_v17, %v8460_v21  ;;  %v2683_v51 = vsub.f32 %v8461_v12, %v2667_v1  ;;  %v2733_v41 = vadd.f32 %v2701_v61, %v2682_v63  ;;  %v2734_v6 = vadd.f32 %v2702_v13, %v2682_v63  ;;  %v8463_v1 = vld [vmem:[#allocation26_spill] sm:$0xff] }
 0x693   : > { %v6657_v48 = vmax.f32 %v2729_v4, 0.0  ;;  %v6659_v56 = vmax.f32 %v2730_v37, 0.0  ;;  %v6668_v59 = vmax.f32 %v2731_v26, 0.0  ;;  %v6674_v24 = vmax.f32 %v2732_v7, 0.0  ;;  %v8462_v37 = vld [vmem:[#allocation27_spill] sm:$0xff] }
 0x694   : > { %v2669_v43 = vmul.f32 %v6634_v17, %v8462_v37  ;;  %v2684_v26 = vsub.f32 %v8463_v1, %v2668_v30  ;;  %v2735_v10 = vadd.f32 %v2703_v58, %v2683_v51  ;;  %v6682_v61 = vmax.f32 %v2733_v41, 0.0  ;;  %v8464_v41 = vld [vmem:[#allocation29_spill] sm:$0xff]  ;;  %v8465_v58 = vld [vmem:[#allocation28_spill] sm:$0xff] }
 0x695   : > { %v2793_v4 = vadd.f32 %v6659_v56, %v6657_v48  ;;  %v2836_v63 = vmul.f32 %v6657_v48, %v6657_v48  ;;  %v2837_v23 = vmul.f32 %v6659_v56, %v6659_v56  ;;  %v2705_v7 = vmul.f32 %v6638_v46, %v6546_v54 }
 0x696   : > { %v2736_v0 = vadd.f32 %v2704_v31, %v2683_v51  ;;  %v6691_v13 = vmax.f32 %v2734_v6, 0.0  ;;  %v2706_v30 = vmul.f32 %v6638_v46, %v6548_v57  ;;  %v6699_v1 = vmax.f32 %v2735_v10, 0.0 }
 0x697   : > { %v2794_v8 = vadd.f32 %v2793_v4, %v6668_v59  ;;  %v2670_v4 = vmul.f32 %v6634_v17, %v8464_v41  ;;  %v2737_v37 = vadd.f32 %v2705_v7, %v2684_v26  ;;  %v2838_v54 = vmul.f32 %v6668_v59, %v6668_v59  ;;  %v8466_v7 = vld [vmem:[#allocation31_spill] sm:$0xff] }
 0x698   : > { %v2868_v51 = vadd.f32 %v2837_v23, %v2836_v63  ;;  %v2707_v6 = vmul.f32 %v6638_v46, %v6550_v32  ;;  %v2738_v31 = vadd.f32 %v2706_v30, %v2684_v26  ;;  %v2671_v10 = vmul.f32 %v6634_v17, %v8466_v7 }
 0x699   : > { %v2795_v21 = vadd.f32 %v2794_v8, %v6674_v24  ;;  %v2685_v8 = vsub.f32 %v8465_v58, %v2669_v43  ;;  %v2708_v43 = vmul.f32 %v6638_v46, %v6552_v16  ;;  %v8467_v58 = vld [vmem:[#allocation30_spill] sm:$0xff]  ;;  %v6716_v44 = vmax.f32 %v2737_v37, 0.0 }
 0x69a   : > { %v2869_v41 = vadd.f32 %v2868_v51, %v2838_v54  ;;  %v2686_v63 = vsub.f32 %v8467_v58, %v2670_v4  ;;  %v2709_v16 = vmul.f32 %v6638_v46, %v6554_v5  ;;  %v6723_v30 = vmax.f32 %v2738_v31, 0.0  ;;  %v8468_v54 = vld [vmem:[#allocation33_spill] sm:$0xff] }
 0x69b   : > { %v2796_v12 = vadd.f32 %v2795_v21, %v6682_v61  ;;  %v6706_v21 = vmax.f32 %v2736_v0, 0.0  ;;  %v2739_v23 = vadd.f32 %v2707_v6, %v2685_v8  ;;  %v2740_v0 = vadd.f32 %v2708_v43, %v2685_v8 }
 0x69c   : > { %v2710_v4 = vmul.f32 %v6638_v46, %v6556_v2  ;;  %v2672_v37 = vmul.f32 %v6634_v17, %v8468_v54  ;;  %v2841_v51 = vmul.f32 %v6691_v13, %v6691_v13  ;;  %v2842_v8 = vmul.f32 %v6699_v1, %v6699_v1 }
 0x69d   : > { %v2797_v42 = vadd.f32 %v2796_v12, %v6691_v13  ;;  %v2839_v12 = vmul.f32 %v6674_v24, %v6674_v24  ;;  %v6733_v58 = vmax.f32 %v2739_v23, 0.0  ;;  %v2711_v2 = vmul.f32 %v6638_v46, %v6558_v49 }
 0x69e   : > { %v2742_v43 = vadd.f32 %v2710_v4, %v2686_v63 }
 0x69f   : > { %v2798_v57 = vadd.f32 %v2797_v42, %v6699_v1  ;;  %v2840_v42 = vmul.f32 %v6682_v61, %v6682_v61  ;;  %v2870_v26 = vadd.f32 %v2869_v41, %v2839_v12  ;;  %v2741_v41 = vadd.f32 %v2709_v16, %v2686_v63 }
 0x6a0   : > { %v2844_v63 = vmul.f32 %v6716_v44, %v6716_v44 }
 0x6a1   : > { %v2799_v32 = vadd.f32 %v2798_v57, %v6706_v21  ;;  %v2871_v6 = vadd.f32 %v2870_v26, %v2840_v42  ;;  %v8469_v57 = vld [vmem:[#allocation32_spill] sm:$0xff]  ;;  %v8470_v42 = vld [vmem:[#allocation35_spill] sm:$0xff]  ;;  %v2843_v26 = vmul.f32 %v6706_v21, %v6706_v21 }
 0x6a2   : > { %v2687_v12 = vsub.f32 %v8469_v57, %v2671_v10  ;;  %v2712_v10 = vmul.f32 %v6638_v46, %v6560_v28  ;;  %v2673_v23 = vmul.f32 %v6634_v17, %v8470_v42  ;;  %v6750_v57 = vmax.f32 %v2741_v41, 0.0 }
 0x6a3   : > { %v2800_v7 = vadd.f32 %v2799_v32, %v6716_v44  ;;  %v2872_v31 = vadd.f32 %v2871_v6, %v2841_v51  ;;  %v6740_v32 = vmax.f32 %v2740_v0, 0.0  ;;  %v2713_v28 = vmul.f32 %v6638_v46, %v6583_v47 }
 0x6a4   : > { %v2743_v6 = vadd.f32 %v2711_v2, %v2687_v12  ;;  %v2744_v4 = vadd.f32 %v2712_v10, %v2687_v12  ;;  %v2846_v12 = vmul.f32 %v6733_v58, %v6733_v58 }
 0x6a5   : > { %v2801_v5 = vadd.f32 %v2800_v7, %v6723_v30  ;;  %v2873_v16 = vadd.f32 %v2872_v31, %v2842_v8  ;;  %v8471_v7 = vld [vmem:[#allocation34_spill] sm:$0xff]  ;;  %v8472_v8 = vld [vmem:[#allocation37_spill] sm:$0xff]  ;;  %v2845_v31 = vmul.f32 %v6723_v30, %v6723_v30 }
 0x6a6   : > { %v2688_v51 = vsub.f32 %v8471_v7, %v2672_v37  ;;  %v2714_v37 = vmul.f32 %v6638_v46, %v6593_v55  ;;  %v2674_v41 = vmul.f32 %v6634_v17, %v8472_v8  ;;  %v6767_v7 = vmax.f32 %v2743_v6, 0.0 }
 0x6a7   : > { %v2802_v54 = vadd.f32 %v2801_v5, %v6733_v58  ;;  %v2874_v0 = vadd.f32 %v2873_v16, %v2843_v26  ;;  %v6757_v5 = vmax.f32 %v2742_v43, 0.0  ;;  %v2715_v55 = vmul.f32 %v6638_v46, %v6603_v36 }
 0x6a8   : > { %v2745_v16 = vadd.f32 %v2713_v28, %v2688_v51  ;;  %v2746_v10 = vadd.f32 %v2714_v37, %v2688_v51  ;;  %v2848_v51 = vmul.f32 %v6750_v57, %v6750_v57 }
 0x6a9   : > { %v2803_v49 = vadd.f32 %v2802_v54, %v6740_v32  ;;  %v2875_v2 = vadd.f32 %v2874_v0, %v2844_v63  ;;  %v8473_v54 = vld [vmem:[#allocation36_spill] sm:$0xff]  ;;  %v8474_v63 = vld [vmem:[#allocation39_spill] sm:$0xff]  ;;  %v2847_v0 = vmul.f32 %v6740_v32, %v6740_v32 }
 0x6aa   : > { %v2689_v26 = vsub.f32 %v8473_v54, %v2673_v23  ;;  %v2716_v23 = vmul.f32 %v6638_v46, %v6607_v29  ;;  %v2675_v6 = vmul.f32 %v6634_v17, %v8474_v63  ;;  %v6784_v54 = vmax.f32 %v2745_v16, 0.0 }
 0x6ab   : > { %v2804_v42 = vadd.f32 %v2803_v49, %v6750_v57  ;;  %v2876_v43 = vadd.f32 %v2875_v2, %v2845_v31  ;;  %v6774_v49 = vmax.f32 %v2744_v4, 0.0  ;;  %v2717_v29 = vmul.f32 %v6638_v46, %v6609_v38 }
 0x6ac   : > { %v2747_v2 = vadd.f32 %v2715_v55, %v2689_v26  ;;  %v2748_v37 = vadd.f32 %v2716_v23, %v2689_v26  ;;  %v2850_v26 = vmul.f32 %v6767_v7, %v6767_v7 }
 0x6ad   : > { %v2805_v47 = vadd.f32 %v2804_v42, %v6757_v5  ;;  %v2877_v28 = vadd.f32 %v2876_v43, %v2846_v12  ;;  %v8475_v42 = vld [vmem:[#allocation38_spill] sm:$0xff]  ;;  %v8476_v12 = vld [vmem:[#allocation41_spill] sm:$0xff]  ;;  %v2849_v43 = vmul.f32 %v6757_v5, %v6757_v5 }
 0x6ae   : > { %v2690_v31 = vsub.f32 %v8475_v42, %v2674_v41  ;;  %v2718_v41 = vmul.f32 %v6638_v46, %v6611_v27  ;;  %v2676_v16 = vmul.f32 %v6634_v17, %v8476_v12  ;;  %v6801_v42 = vmax.f32 %v2747_v2, 0.0 }
 0x6af   : > { %v2806_v8 = vadd.f32 %v2805_v47, %v6767_v7  ;;  %v2878_v4 = vadd.f32 %v2877_v28, %v2847_v0  ;;  %v6791_v47 = vmax.f32 %v2746_v10, 0.0  ;;  %v2719_v27 = vmul.f32 %v6638_v46, %v6613_v15 }
 0x6b0   : > { %v2749_v28 = vadd.f32 %v2717_v29, %v2690_v31  ;;  %v2750_v23 = vadd.f32 %v2718_v41, %v2690_v31  ;;  %v2852_v31 = vmul.f32 %v6784_v54, %v6784_v54 }
 0x6b1   : > { %v2807_v36 = vadd.f32 %v2806_v8, %v6774_v49  ;;  %v2879_v55 = vadd.f32 %v2878_v4, %v2848_v51  ;;  %v8477_v8 = vld [vmem:[#allocation40_spill] sm:$0xff]  ;;  %v8478_v51 = vld [vmem:[#allocation43_spill] sm:$0xff]  ;;  %v2851_v4 = vmul.f32 %v6774_v49, %v6774_v49 }
 0x6b2   : > { %v2691_v0 = vsub.f32 %v8477_v8, %v2675_v6  ;;  %v2720_v6 = vmul.f32 %v6638_v46, %v6615_v45  ;;  %v2677_v2 = vmul.f32 %v6634_v17, %v8478_v51  ;;  %v6818_v8 = vmax.f32 %v2749_v28, 0.0 }
 0x6b3   : > { %v2808_v63 = vadd.f32 %v2807_v36, %v6784_v54  ;;  %v2880_v10 = vadd.f32 %v2879_v55, %v2849_v43  ;;  %v6808_v36 = vmax.f32 %v2748_v37, 0.0  ;;  %v2721_v45 = vmul.f32 %v6638_v46, %v6617_v33 }
 0x6b4   : > { %v2751_v55 = vadd.f32 %v2719_v27, %v2691_v0  ;;  %v2752_v41 = vadd.f32 %v2720_v6, %v2691_v0  ;;  %v2854_v0 = vmul.f32 %v6801_v42, %v6801_v42 }
 0x6b5   : > { %v2809_v38 = vadd.f32 %v2808_v63, %v6791_v47  ;;  %v2881_v29 = vadd.f32 %v2880_v10, %v2850_v26  ;;  %v8479_v63 = vld [vmem:[#allocation42_spill] sm:$0xff]  ;;  %v8480_v26 = vld [vmem:[#allocation45_spill] sm:$0xff]  ;;  %v2853_v10 = vmul.f32 %v6791_v47, %v6791_v47 }
 0x6b6   : > { %v2692_v43 = vsub.f32 %v8479_v63, %v2676_v16  ;;  %v2722_v16 = vmul.f32 %v6638_v46, %v6619_v9  ;;  %v2678_v28 = vmul.f32 %v6634_v17, %v8480_v26  ;;  %v6835_v63 = vmax.f32 %v2751_v55, 0.0 }
 0x6b7   : > { %v2810_v12 = vadd.f32 %v2809_v38, %v6801_v42  ;;  %v2882_v37 = vadd.f32 %v2881_v29, %v2851_v4  ;;  %v6825_v38 = vmax.f32 %v2750_v23, 0.0  ;;  %v2723_v9 = vmul.f32 %v6638_v46, %v6621_v62 }
 0x6b8   : > { %v2753_v29 = vadd.f32 %v2721_v45, %v2692_v43  ;;  %v2754_v6 = vadd.f32 %v2722_v16, %v2692_v43  ;;  %v2856_v43 = vmul.f32 %v6818_v8, %v6818_v8 }
 0x6b9   : > { %v2811_v15 = vadd.f32 %v2810_v12, %v6808_v36  ;;  %v2883_v27 = vadd.f32 %v2882_v37, %v2852_v31  ;;  %v8481_v12 = vld [vmem:[#allocation44_spill] sm:$0xff]  ;;  %v2855_v37 = vmul.f32 %v6808_v36, %v6808_v36 }
 0x6ba   : > { %v2693_v4 = vsub.f32 %v8481_v12, %v2677_v2  ;;  %v2724_v2 = vmul.f32 %v6638_v46, %v6623_v11  ;;  %v8482_v31 = vld [vmem:[#allocation48_spill] sm:$0xff]  ;;  %v6852_v12 = vmax.f32 %v2753_v29, 0.0  ;;  %v2725_v11 = vmul.f32 %v6638_v46, %v6625_v50 }
 0x6bb   : > { %v2812_v51 = vadd.f32 %v2811_v15, %v6818_v8  ;;  %v2884_v23 = vadd.f32 %v2883_v27, %v2853_v10  ;;  %v6842_v15 = vmax.f32 %v2752_v41, 0.0  ;;  %v2679_v55 = vmul.f32 %v6634_v17, %v8482_v31 }
 0x6bc   : > { %v2755_v27 = vadd.f32 %v2723_v9, %v2693_v4  ;;  %8484 = vst [vmem:[#allocation17_spill] sm:$0xff] %v6852_v12  ;;  %v2756_v16 = vadd.f32 %v2724_v2, %v2693_v4  ;;  %v6859_v17 = vmax.f32 %v2754_v6, 0.0  ;;  %v2857_v29 = vmul.f32 %v6825_v38, %v6825_v38 }
 0x6bd   : > { %v2813_v33 = vadd.f32 %v2812_v51, %v6825_v38  ;;  %v2885_v45 = vadd.f32 %v2884_v23, %v2854_v0  ;;  %v8483_v51 = vld [vmem:[#allocation47_spill] sm:$0xff]  ;;  %v8486_v23 = vld [vmem:[#allocation50_spill] sm:$0xff]  ;;  %v2858_v50 = vmul.f32 %v6835_v63, %v6835_v63  ;;  %v2727_v6 = vmul.f32 %v6638_v46, %v6629_v52 }
 0x6be   : > { %v2694_v10 = vsub.f32 %v8483_v51, %v2678_v28  ;;  %8485 = vst [vmem:[#allocation18_spill] sm:$0xff] %v6859_v17  ;;  %v2726_v28 = vmul.f32 %v6638_v46, %v6627_v34  ;;  %v2695_v9 = vsub.f32 %v8486_v23, %v2679_v55  ;;  %v6867_v31 = vmax.f32 %v2755_v27, 0.0 }
 0x6bf   : > { %v2814_v26 = vadd.f32 %v2813_v33, %v6835_v63  ;;  %v2886_v41 = vadd.f32 %v2885_v45, %v2855_v37  ;;  %v6874_v34 = vmax.f32 %v2756_v16, 0.0  ;;  %v2859_v55 = vmul.f32 %v6842_v15, %v6842_v15 }
 0x6c0   : > { %8487 = vst [vmem:[#allocation19_spill] sm:$0xff] %v6867_v31  ;;  %v2758_v2 = vadd.f32 %v2726_v28, %v2694_v10  ;;  %v2728_v27 = vmul.f32 %v6638_v46, %v6631_v40  ;;  %v2860_v52 = vmul.f32 %v6852_v12, %v6852_v12  ;;  %v2861_v28 = vmul.f32 %v6859_v17, %v6859_v17 }
 0x6c1   : > { %v2815_v62 = vadd.f32 %v2814_v26, %v6842_v15  ;;  %v2887_v0 = vadd.f32 %v2886_v41, %v2856_v43  ;;  %v2757_v26 = vadd.f32 %v2725_v11, %v2694_v10  ;;  %8488 = vst [vmem:[#allocation21_spill] sm:$0xff] %v6874_v34  ;;  %v2862_v46 = vmul.f32 %v6867_v31, %v6867_v31 }
 0x6c2   : > { %v2760_v11 = vadd.f32 %v2728_v27, %v2695_v9  ;;  %v6886_v16 = vmax.f32 %v2758_v2, 0.0 }
 0x6c3   : > { %v2816_v33 = vadd.f32 %v2815_v62, %v6852_v12  ;;  %v2888_v4 = vadd.f32 %v2887_v0, %v2857_v29  ;;  %v2759_v62 = vadd.f32 %v2727_v6, %v2695_v9  ;;  %v6881_v43 = vmax.f32 %v2757_v26, 0.0 }
 0x6c4   : > { %8490 = vst [vmem:[#allocation23_spill] sm:$0xff] %v6886_v16  ;;  %v6896_v26 = vmax.f32 %v2760_v11, 0.0 }
 0x6c5   : > { %v2817_v37 = vadd.f32 %v2816_v33, %v6859_v17  ;;  %v2889_v51 = vadd.f32 %v2888_v4, %v2858_v50  ;;  %8489 = vst [vmem:[#allocation20_spill] sm:$0xff] %v6881_v43  ;;  %v6891_v0 = vmax.f32 %v2759_v62, 0.0  ;;  %v2864_v6 = vmul.f32 %v6881_v43, %v6881_v43 }
 0x6c6   : > { %8492 = vst [vmem:[#allocation25_spill] sm:$0xff] %v6896_v26  ;;  %v2867_v62 = vmul.f32 %v6896_v26, %v6896_v26 }
 0x6c7   : > { %v2818_v45 = vadd.f32 %v2817_v37, %v6867_v31  ;;  %v2890_v10 = vadd.f32 %v2889_v51, %v2859_v55  ;;  %8491 = vst [vmem:[#allocation22_spill] sm:$0xff] %v6891_v0  ;;  %v2863_v37 = vmul.f32 %v6874_v34, %v6874_v34  ;;  %v2866_v51 = vmul.f32 %v6891_v0, %v6891_v0 }
 0x6c9   : > { %v2819_v41 = vadd.f32 %v2818_v45, %v6874_v34  ;;  %v2891_v29 = vadd.f32 %v2890_v10, %v2860_v52  ;;  %v2865_v45 = vmul.f32 %v6886_v16, %v6886_v16 }
 0x6cb   : > { %v2820_v33 = vadd.f32 %v2819_v41, %v6881_v43  ;;  %v2892_v23 = vadd.f32 %v2891_v29, %v2861_v28  ;;  %v7036_v43 = vld [vmem:[%s8056_s3 + $0x78] sm:$0xff] }
 0x6cd   : > { %v2821_v40 = vadd.f32 %v2820_v33, %v6886_v16  ;;  %v2893_v50 = vadd.f32 %v2892_v23, %v2862_v46  ;;  %v7020_v16 = vld [vmem:[%s8056_s3 + $0x68] sm:$0xff] }
 0x6cf   : > { %v2822_v9 = vadd.f32 %v2821_v40, %v6891_v0  ;;  %v2894_v2 = vadd.f32 %v2893_v50, %v2863_v37  ;;  %v7012_v0 = vld [vmem:[%s8056_s3 + $0x58] sm:$0xff] }
 0x6d1   : > { %v2823_v4 = vadd.f32 %v2822_v9, %v6896_v26  ;;  %v2895_v55 = vadd.f32 %v2894_v2, %v2864_v6  ;;  %v7004_v26 = vld [vmem:[%s8056_s3 + $0x50] sm:$0xff] }
 0x6d3   : > { %2824 = vadd.xlane.f32.xlu0 %v2823_v4  ;;  %v2896_v27 = vadd.f32 %v2895_v55, %v2865_v45 }
 0x6d5   : > { %v2897_v41 = vadd.f32 %v2896_v27, %v2866_v51  ;;  %v6919_v27 = vld [vmem:[%s8056_s3 + $0x8] sm:$0xff] }
 0x6d7   : > { %v2898_v52 = vadd.f32 %v2897_v41, %v2867_v62  ;;  %v6928_v41 = vld [vmem:[%s8056_s3] sm:$0xff] }
 0x6d9   : > { %2899 = vadd.xlane.f32.xlu1 %v2898_v52 }
 0x760   : > { %v2825_v10 = vpop.xlane.xlu0 %2824 }
 0x761   : > { %v2826_v11 = vrot.slane %v2825_v10, 4 }
 0x763   : > { %v2827_v33 = vadd.f32 %v2826_v11, %v2825_v10  ;;  %v6936_v10 = vld [vmem:[%s8056_s3 + $0x10] sm:$0xff] }
 0x765   : > { %v2828_v28 = vrot.slane %v2827_v33, 2 }
 0x766   : > { %v2900_v40 = vpop.xlane.xlu1 %2899 }
 0x767   : > { %v2829_v29 = vadd.f32 %v2828_v28, %v2827_v33  ;;  %v2901_v23 = vrot.slane %v2900_v40, 4  ;;  %v6943_v33 = vld [vmem:[%s8056_s3 + $0x20] sm:$0xff] }
 0x769   : > { %v2830_v46 = vrot.slane %v2829_v29, 1  ;;  %v2902_v37 = vadd.f32 %v2901_v23, %v2900_v40 }
 0x76b   : > { %v2831_v9 = vadd.f32 %v2830_v46, %v2829_v29  ;;  %v2903_v50 = vrot.slane %v2902_v37, 2  ;;  %v6950_v29 = vld [vmem:[%s8056_s3 + $0x18] sm:$0xff]  ;;  %v6957_v46 = vld [vmem:[%s8056_s3 + $0x40] sm:$0xff] }
 0x76d   : > { %4248 = vpush %v2831_v9  ;;  %v2904_v4 = vadd.f32 %v2903_v50, %v2902_v37  ;;  %v6964_v9 = vld [vmem:[%s8056_s3 + $0x28] sm:$0xff]  ;;  %v6971_v50 = vld [vmem:[%s8056_s3 + $0x60] sm:$0xff] }
 0x76f   : > { %v2905_v6 = vrot.slane %v2904_v4, 1 }
 0x771   : > { %v2906_v2 = vadd.f32 %v2905_v6, %v2904_v4 }
 0x773   : > { %4250 = vpush %v2906_v2  ;;  %v6979_v2 = vld [vmem:[%s8056_s3 + $0x30] sm:$0xff] }
 0x79e   : > { %s4249_s17 = spop %4248 }
 0x79f   : > { %s6910_s13 = smul.f32 3.0517578e-05, %s4249_s17 }
 0x7a1   : > { %s2911_s25 = smul.f32 %s6910_s13, %s6910_s13  ;;  %v3046_v6 = vstv %s6910_s13 }
 0x7a4   : > { %s4251_s16 = spop %4250 }
 0x7a5   : > { %s2910_s19 = smul.f32 3.0517578e-05, %s4251_s16  ;;  %s8498_s16 = smov 127  }
 0x7a7   : > { %s2912_s20 = ssub.f32 %s2910_s19, %s2911_s25 }
 0x7a9   : > { %s2913_s22 = sadd.f32 1e-08, %s2912_s20 }
 0x7ab   : > { %v2914_v45 = vstv %s2913_s22  ;;  %s4223_s22 = sshll.u32 %s4588_s6, 12  ;;  %s4065_s6 = scalar_lea.sflag [#allocation5], %s4671_s10 }
 0x7ac   : > { %4353 = vrsqrt.f32 %v2914_v45 }
 0x7b6   : > { %v4354_v55 = vpop.eup %4353 }
 0x7b7   : > { %4252 = vpush %v4354_v55 }
 0x7e8   : > { %s4253_s9 = spop %4252 }
 0x7e9   : > { %v6914_v51 = vstv %s4253_s9  ;;  %s2349_s9 = smul.f32 %s6562_s30, %s6526_s24  ;;  %s8577_s24 = sshll.u32 %s4671_s10, 8 }
 0x7ea   : > { %v6923_v62 = vmul.f32 %v6919_v27, %v6914_v51  ;;  %v2918_v52 = vmul.f32 %v6928_v41, %v6914_v51  ;;  %v2920_v11 = vmul.f32 %v6936_v10, %v6914_v51  ;;  %v2922_v28 = vmul.f32 %v6943_v33, %v6914_v51  ;;  %s7843_s30 = scalar_lea.vmem [#allocation6], %s8577_s24 }
 0x7eb   : > { %v2921_v40 = vmul.f32 %v6950_v29, %v6914_v51  ;;  %v2926_v23 = vmul.f32 %v6957_v46, %v6914_v51  ;;  %v2923_v37 = vmul.f32 %v6964_v9, %v6914_v51  ;;  %v2930_v4 = vmul.f32 %v6971_v50, %v6914_v51 }
 0x7ec   : > { %2941 = vperm.xlu1 %4342, %v6923_v62   ;;  %2936 = vperm.xlu0 %4341, %v2918_v52   ;;  %v2924_v45 = vmul.f32 %v6979_v2, %v6914_v51  ;;  %v3047_v55 = vmul.f32 %v3046_v6, %v2918_v52  ;;  %v2925_v19 = vmul.f32 %v6988_v53, %v6914_v51  ;;  %v6996_v52 = vld [vmem:[%s8056_s3 + $0x48] sm:$0xff] }
 0x7ed   : > { %v3051_v3 = vmul.f32 %v3046_v6, %v2922_v28  ;;  %v3048_v39 = vmul.f32 %v3046_v6, %v6923_v62 }
 0x7ee   : > { %v3053_v25 = vmul.f32 %v3046_v6, %v2924_v45  ;;  %v3054_v60 = vmul.f32 %v3046_v6, %v2925_v19 }
 0x7f0   : > { %2946 = vperm.xlu1 %4342, %v2920_v11   ;;  %2956 = vperm.xlu0 %4341, %v2922_v28   ;;  %v3055_v28 = vmul.f32 %v3046_v6, %v2926_v23 }
 0x7f4   : > { %2951 = vperm.xlu1 %4342, %v2921_v40   ;;  %2976 = vperm.xlu0 %4341, %v2926_v23   ;;  %v2931_v23 = vmul.f32 %v7020_v16, %v6914_v51 }
 0x7f8   : > { %2961 = vperm.xlu1 %4342, %v2923_v37   ;;  %2996 = vperm.xlu0 %4341, %v2930_v4  }
 0x7fc   : > { %2966 = vperm.xlu1 %4342, %v2924_v45   ;;  %3079 = vrot.lane.b32.xlu0 %v3047_v55, %s4519_s21  ;;  %v2927_v55 = vmul.f32 %v6996_v52, %v6914_v51 }
 0x7fd   : > { %4344 = vset.pattern.permute.xlu0 %v8493_v20 }
 0x800   : > { %2971 = vperm.xlu1 %4342, %v2925_v19   ;;  %3087 = vrot.lane.b32.xlu0 %v3051_v3, %s4519_s21  ;;  %v2928_v3 = vmul.f32 %v7004_v26, %v6914_v51 }
 0x802   : > { %v3057_v45 = vmul.f32 %v3046_v6, %v2928_v3 }
 0x804   : > { %2981 = vperm.xlu1 %4342, %v2927_v55   ;;  %3091 = vrot.lane.b32.xlu0 %v3053_v25, %s4519_s21  ;;  %v2929_v25 = vmul.f32 %v7012_v0, %v6914_v51 }
 0x806   : > { %v3058_v62 = vmul.f32 %v3046_v6, %v2929_v25 }
 0x808   : > { %2986 = vperm.xlu1 %4342, %v2928_v3   ;;  %3095 = vrot.lane.b32.xlu0 %v3055_v28, %s4519_s21  ;;  %v3059_v28 = vmul.f32 %v3046_v6, %v2930_v4  ;;  %v2932_v3 = vmul.f32 %v7027_v18, %v6914_v51  ;;  %v2933_v4 = vmul.f32 %v7036_v43, %v6914_v51 }
 0x809   : > { %v3056_v51 = vmul.f32 %v3046_v6, %v2927_v55 }
 0x80c   : > { %2991 = vperm.xlu1 %4342, %v2929_v25   ;;  %3099 = vrot.lane.b32.xlu0 %v3057_v45, %s4519_s21  ;;  %v3061_v45 = vmul.f32 %v3046_v6, %v2932_v3 }
 0x810   : > { %3001 = vperm.xlu1 %4342, %v2931_v23   ;;  %3103 = vrot.lane.b32.xlu0 %v3059_v28, %s4519_s21  ;;  %v3049_v28 = vmul.f32 %v3046_v6, %v2920_v11 }
 0x814   : > { %3006 = vperm.xlu1 %4342, %v2932_v3   ;;  %3107 = vrot.lane.b32.xlu0 %v3061_v45, %s4519_s21  ;;  %v3050_v3 = vmul.f32 %v3046_v6, %v2921_v40  ;;  %v3052_v45 = vmul.f32 %v3046_v6, %v2923_v37 }
 0x818   : > { %3011 = vperm.xlu1 %4342, %v2933_v4  }
 0x81c   : > { %3081 = vrot.lane.b32.xlu1 %v3048_v39, %s4519_s21  ;;  %v3060_v39 = vmul.f32 %v3046_v6, %v2931_v23 }
 0x81d   : > { %4343 = vset.pattern.permute.xlu1 %v8493_v20  ;;  %v3062_v20 = vmul.f32 %v3046_v6, %v2933_v4 }
 0x820   : > { %3083 = vrot.lane.b32.xlu1 %v3049_v28, %s4519_s21 }
 0x824   : > { %3085 = vrot.lane.b32.xlu1 %v3050_v3, %s4519_s21 }
 0x828   : > { %3089 = vrot.lane.b32.xlu1 %v3052_v45, %s4519_s21 }
 0x82c   : > { %3093 = vrot.lane.b32.xlu1 %v3054_v60, %s4519_s21 }
 0x830   : > { %3097 = vrot.lane.b32.xlu1 %v3056_v51, %s4519_s21 }
 0x834   : > { %3101 = vrot.lane.b32.xlu1 %v3058_v62, %s4519_s21 }
 0x838   : > { %3105 = vrot.lane.b32.xlu1 %v3060_v39, %s4519_s21 }
 0x83c   : > { %3109 = vrot.lane.b32.xlu1 %v3062_v20, %s4519_s21 }
 0x86b   : > { %v7051_v11 = vpop.permute.xlu1 %2941  ;;  %v7053_v40 = vpop.permute.xlu0 %2936 }
 0x86f   : > { %v7055_v37 = vpop.permute.xlu1 %2946  ;;  %v7057_v19 = vpop.permute.xlu0 %2956 }
 0x873   : > { %v7059_v60 = vpop.permute.xlu1 %2951  ;;  %v7061_v55 = vpop.permute.xlu0 %2976 }
 0x877   : > { %v7063_v25 = vpop.permute.xlu1 %2961  ;;  %v7065_v23 = vpop.permute.xlu0 %2996 }
 0x878   : > { %8494 = vst [vmem:[#allocation24_spill] sm:$0xff] %v7065_v23 }
 0x87b   : > { %v7067_v28 = vpop.permute.xlu1 %2966  ;;  %v3080_v6 = vpop.permute.xlu0 %3079 }
 0x87c   : > { %v3127_v4 = vsub.f32 %v6928_v41, %v3080_v6 }
 0x87e   : > { %3145 = vperm.xlu1 %4343, %v3127_v4  }
 0x87f   : > { %v7070_v3 = vpop.permute.xlu1 %2971  ;;  %v3088_v22 = vpop.permute.xlu0 %3087 }
 0x883   : > { %v7072_v45 = vpop.permute.xlu1 %2981  ;;  %v3092_v4 = vpop.permute.xlu0 %3091 }
 0x887   : > { %v7074_v51 = vpop.permute.xlu1 %2986  ;;  %v3096_v23 = vpop.permute.xlu0 %3095 }
 0x88b   : > { %v7076_v62 = vpop.permute.xlu1 %2991 }
 0x88f   : > { %v7078_v39 = vpop.permute.xlu1 %3001 }
 0x890   : > { %8495 = vst [vmem:[#allocation27_spill] sm:$0xff] %v7078_v39 }
 0x893   : > { %v7080_v20 = vpop.permute.xlu1 %3006 }
 0x894   : > { %8496 = vst [vmem:[#allocation26_spill] sm:$0xff] %v7080_v20  ;;  %v3131_v20 = vsub.f32 %v6943_v33, %v3088_v22 }
 0x897   : > { %v7082_v34 = vpop.permute.xlu1 %3011 }
 0x898   : > { %8497 = vst [vmem:[#allocation29_spill] sm:$0xff] %v7082_v34 }
 0x89b   : > { %v3082_v35 = vpop.permute.xlu1 %3081 }
 0x89c   : > { %v3128_v31 = vsub.f32 %v6919_v27, %v3082_v35  ;;  %v3133_v35 = vsub.f32 %v6979_v2, %v3092_v4  ;;  %v3100_v27 = vpop.permute.xlu0 %3099 }
 0x89e   : > { %3150 = vperm.xlu0 %4344, %v3128_v31  }
 0x89f   : > { %v3084_v41 = vpop.permute.xlu1 %3083 }
 0x8a0   : > { %v3129_v6 = vsub.f32 %v6936_v10, %v3084_v41  ;;  %v3104_v22 = vpop.permute.xlu0 %3103 }
 0x8a2   : > { %3155 = vperm.xlu0 %4344, %v3129_v6  }
 0x8a3   : > { %v3086_v14 = vpop.permute.xlu1 %3085 }
 0x8a4   : > { %v3130_v17 = vsub.f32 %v6950_v29, %v3086_v14  ;;  %v3135_v14 = vsub.f32 %v6957_v46, %v3096_v23  ;;  %v3108_v2 = vpop.permute.xlu0 %3107 }
 0x8a6   : > { %3160 = vperm.xlu1 %4343, %v3130_v17  }
 0x8a7   : > { %v3090_v39 = vpop.permute.xlu1 %3089 }
 0x8a8   : > { %v3132_v34 = vsub.f32 %v6964_v9, %v3090_v39 }
 0x8aa   : > { %3170 = vperm.xlu0 %4344, %v3132_v34   ;;  %3165 = vperm.xlu1 %4343, %v3131_v20   ;;  %v3137_v34 = vsub.f32 %v7004_v26, %v3100_v27  ;;  %v3024_v27 = vmul.f32 %v7063_v25, %v6733_v58 }
 0x8ab   : > { %v3094_v12 = vpop.permute.xlu1 %3093 }
 0x8ac   : > { %v3134_v31 = vsub.f32 %v6988_v53, %v3094_v12  ;;  %v3139_v53 = vsub.f32 %v6971_v50, %v3104_v22  ;;  %v3015_v50 = vmul.f32 %v7053_v40, %v6659_v56  ;;  %v3017_v56 = vmul.f32 %v7051_v11, %v6674_v24 }
 0x8ad   : > { %v3028_v22 = vmul.f32 %v7070_v3, %v6767_v7 }
 0x8ae   : > { %3180 = vperm.xlu1 %4343, %v3134_v31   ;;  %3175 = vperm.xlu0 %4344, %v3133_v35   ;;  %v3022_v35 = vmul.f32 %v7057_v19, %v6716_v44 }
 0x8af   : > { %v3098_v10 = vpop.permute.xlu1 %3097 }
 0x8b0   : > { %v3136_v17 = vsub.f32 %v6996_v52, %v3098_v10  ;;  %v3141_v52 = vsub.f32 %v7027_v18, %v3108_v2  ;;  %v3016_v18 = vmul.f32 %v7051_v11, %v6668_v59  ;;  %v3019_v59 = vmul.f32 %v7055_v37, %v6691_v13 }
 0x8b1   : > { %v3020_v11 = vmul.f32 %v7059_v60, %v6699_v1 }
 0x8b2   : > { %3190 = vperm.xlu0 %4344, %v3136_v17   ;;  %3185 = vperm.xlu1 %4343, %v3135_v14   ;;  %v3026_v14 = vmul.f32 %v7067_v28, %v6750_v57 }
 0x8b3   : > { %v3102_v33 = vpop.permute.xlu1 %3101 }
 0x8b4   : > { %v3138_v29 = vsub.f32 %v7012_v0, %v3102_v33  ;;  %v3014_v0 = vmul.f32 %v7053_v40, %v6657_v48  ;;  %v3018_v40 = vmul.f32 %v7055_v37, %v6682_v61  ;;  %v3021_v37 = vmul.f32 %v7059_v60, %v6706_v21 }
 0x8b5   : > { %v3023_v21 = vmul.f32 %v7057_v19, %v6723_v30  ;;  %v3025_v19 = vmul.f32 %v7063_v25, %v6740_v32  ;;  %v3027_v32 = vmul.f32 %v7067_v28, %v6757_v5  ;;  %v3029_v28 = vmul.f32 %v7070_v3, %v6774_v49 }
 0x8b6   : > { %3200 = vperm.xlu1 %4343, %v3138_v29   ;;  %3195 = vperm.xlu0 %4344, %v3137_v34   ;;  %v3030_v34 = vmul.f32 %v7061_v55, %v6784_v54  ;;  %v3031_v49 = vmul.f32 %v7061_v55, %v6791_v47  ;;  %v3033_v55 = vmul.f32 %v7072_v45, %v6808_v36 }
 0x8b7   : > { %v3106_v9 = vpop.permute.xlu1 %3105  ;;  %v3035_v36 = vmul.f32 %v7074_v51, %v6825_v38 }
 0x8b8   : > { %v3140_v12 = vsub.f32 %v7020_v16, %v3106_v9  ;;  %v3032_v9 = vmul.f32 %v7072_v45, %v6801_v42 }
 0x8ba   : > { %3210 = vperm.xlu0 %4344, %v3140_v12   ;;  %3205 = vperm.xlu1 %4343, %v3139_v53   ;;  %v3034_v12 = vmul.f32 %v7074_v51, %v6818_v8 }
 0x8bb   : > { %v3110_v46 = vpop.permute.xlu1 %3109 }
 0x8bc   : > { %v3142_v23 = vsub.f32 %v7036_v43, %v3110_v46 }
 0x8be   : > { %3220 = vperm.xlu1 %4343, %v3142_v23   ;;  %3215 = vperm.xlu0 %4344, %v3141_v52   ;;  %v3036_v52 = vmul.f32 %v7076_v62, %v6835_v63  ;;  %v3037_v23 = vmul.f32 %v7076_v62, %v6842_v15 }
 0x8fd   : > { %v3146_v26 = vpop.permute.xlu1 %3145 }
 0x8fe   : > { %v7101_v39 = vadd.f32 %v3146_v26, %v3014_v0  ;;  %v7107_v16 = vadd.f32 %v3146_v26, %v3015_v50  ;;  %v8499_v26 = vld [vmem:[#allocation17_spill] sm:$0xff]  ;;  %v8500_v50 = vld [vmem:[#allocation24_spill] sm:$0xff] }
 0x900   : > { %3255 = vrot.lane.b32.xlu0 %v7101_v39, %s4519_s21 }
 0x904   : > { %3287 = vrot.lane.b32.xlu0 %v7107_v16, %s4519_s21 }
 0x908   : > { %3383 = vrot.lane.b32.xlu0 %v7101_v39, %s8498_s16 }
 0x90c   : > { %3415 = vrot.lane.b32.xlu0 %v7107_v16, %s8498_s16 }
 0x91d   : > { %v3151_v48 = vpop.permute.xlu0 %3150 }
 0x91e   : > { %v7117_v43 = vadd.f32 %v3151_v48, %v3016_v18  ;;  %v7125_v41 = vadd.f32 %v3151_v48, %v3017_v56  ;;  %v3038_v18 = vmul.f32 %v8500_v50, %v8499_v26 }
 0x920   : > { %3257 = vrot.lane.b32.xlu1 %v7117_v43, %s4519_s21 }
 0x921   : > { %v3156_v20 = vpop.permute.xlu0 %3155 }
 0x922   : > { %v7127_v6 = vadd.f32 %v3156_v20, %v3018_v40  ;;  %v7135_v24 = vadd.f32 %v3156_v20, %v3019_v59  ;;  %v8501_v40 = vld [vmem:[#allocation18_spill] sm:$0xff] }
 0x923   : > { %v3039_v15 = vmul.f32 %v8500_v50, %v8501_v40 }
 0x924   : > { %3289 = vrot.lane.b32.xlu1 %v7125_v41, %s4519_s21  ;;  %3259 = vrot.lane.b32.xlu0 %v7127_v6, %s4519_s21 }
 0x925   : > { %v3161_v61 = vpop.permute.xlu1 %3160 }
 0x926   : > { %v7147_v13 = vadd.f32 %v3161_v61, %v3020_v11  ;;  %v7157_v1 = vadd.f32 %v3161_v61, %v3021_v37 }
 0x928   : > { %3385 = vrot.lane.b32.xlu1 %v7117_v43, %s8498_s16  ;;  %3291 = vrot.lane.b32.xlu0 %v7135_v24, %s4519_s21 }
 0x929   : > { %v3166_v4 = vpop.permute.xlu1 %3165  ;;  %v3171_v44 = vpop.permute.xlu0 %3170 }
 0x92a   : > { %v7159_v31 = vadd.f32 %v3166_v4, %v3022_v35  ;;  %v7167_v60 = vadd.f32 %v3166_v4, %v3023_v21  ;;  %v7179_v30 = vadd.f32 %v3171_v44, %v3024_v27  ;;  %v7189_v58 = vadd.f32 %v3171_v44, %v3025_v19  ;;  %v8503_v35 = vld [vmem:[#allocation19_spill] sm:$0xff]  ;;  %v8505_v27 = vld [vmem:[#allocation60_spill] sm:$0xff] }
 0x92b   : > { %v8504_v21 = vld [vmem:[#allocation27_spill] sm:$0xff] }
 0x92c   : > { %3417 = vrot.lane.b32.xlu1 %v7125_v41, %s8498_s16  ;;  %3387 = vrot.lane.b32.xlu0 %v7127_v6, %s8498_s16  ;;  %v3040_v44 = vmul.f32 %v8504_v21, %v8503_v35 }
 0x92d   : > { %v3176_v10 = vpop.permute.xlu0 %3175  ;;  %v3181_v57 = vpop.permute.xlu1 %3180 }
 0x92e   : > { %v7191_v17 = vadd.f32 %v3176_v10, %v3026_v14  ;;  %v7199_v25 = vadd.f32 %v3176_v10, %v3027_v32  ;;  %v7211_v5 = vadd.f32 %v3181_v57, %v3028_v22  ;;  %v7221_v7 = vadd.f32 %v3181_v57, %v3029_v28  ;;  %v8506_v14 = vld [vmem:[#allocation57_spill] sm:$0xff] }
 0x92f   : > { %v3543_v32 = vmul.f32 %v7101_v39, %v8506_v14  ;;  %v3544_v28 = vmul.f32 %v7107_v16, %v8506_v14  ;;  %v8509_v39 = vld [vmem:[#allocation59_spill] sm:$0xff]  ;;  %v8511_v16 = vld [vmem:[#allocation26_spill] sm:$0xff] }
 0x930   : > { %3261 = vrot.lane.b32.xlu1 %v7147_v13, %s4519_s21  ;;  %3419 = vrot.lane.b32.xlu0 %v7135_v24, %s8498_s16 }
 0x931   : > { %v3186_v33 = vpop.permute.xlu1 %3185  ;;  %v3191_v54 = vpop.permute.xlu0 %3190 }
 0x932   : > { %v7223_v29 = vadd.f32 %v3186_v33, %v3030_v34  ;;  %v7231_v3 = vadd.f32 %v3186_v33, %v3031_v49  ;;  %v7243_v47 = vadd.f32 %v3191_v54, %v3032_v9  ;;  %v7253_v42 = vadd.f32 %v3191_v54, %v3033_v55  ;;  %v8507_v49 = vld [vmem:[#allocation21_spill] sm:$0xff] }
 0x933   : > { %v3041_v54 = vmul.f32 %v8504_v21, %v8507_v49 }
 0x934   : > { %3293 = vrot.lane.b32.xlu1 %v7157_v1, %s4519_s21  ;;  %3263 = vrot.lane.b32.xlu0 %v7159_v31, %s4519_s21 }
 0x935   : > { %v3196_v53 = vpop.permute.xlu0 %3195  ;;  %v3201_v8 = vpop.permute.xlu1 %3200 }
 0x936   : > { %v7255_v2 = vadd.f32 %v3196_v53, %v3034_v12  ;;  %v7263_v45 = vadd.f32 %v3196_v53, %v3035_v36  ;;  %v7275_v38 = vadd.f32 %v3201_v8, %v3036_v52  ;;  %v7285_v63 = vadd.f32 %v3201_v8, %v3037_v23  ;;  %v8510_v36 = vld [vmem:[#allocation20_spill] sm:$0xff] }
 0x937   : > { %v3042_v8 = vmul.f32 %v8511_v16, %v8510_v36 }
 0x938   : > { %3389 = vrot.lane.b32.xlu1 %v7147_v13, %s8498_s16  ;;  %3295 = vrot.lane.b32.xlu0 %v7167_v60, %s4519_s21 }
 0x939   : > { %v3211_v46 = vpop.permute.xlu0 %3210  ;;  %v3206_v0 = vpop.permute.xlu1 %3205 }
 0x93a   : > { %v7287_v56 = vadd.f32 %v3206_v0, %v3038_v18  ;;  %v7295_v20 = vadd.f32 %v3206_v0, %v3039_v15  ;;  %v7317_v57 = vadd.f32 %v3211_v46, %v3040_v44  ;;  %v7337_v0 = vadd.f32 %v3211_v46, %v3041_v54  ;;  %v8513_v15 = vld [vmem:[#allocation23_spill] sm:$0xff] }
 0x93c   : > { %3421 = vrot.lane.b32.xlu1 %v7157_v1, %s8498_s16  ;;  %3391 = vrot.lane.b32.xlu0 %v7159_v31, %s8498_s16 }
 0x93d   : > { %v3216_v51 = vpop.permute.xlu0 %3215  ;;  %v3221_v44 = vpop.permute.xlu1 %3220 }
 0x93e   : > { %v7339_v50 = vadd.f32 %v3216_v51, %v3042_v8 }
 0x940   : > { %3265 = vrot.lane.b32.xlu1 %v7179_v30, %s4519_s21  ;;  %3423 = vrot.lane.b32.xlu0 %v7167_v60, %s8498_s16 }
 0x944   : > { %3297 = vrot.lane.b32.xlu1 %v7189_v58, %s4519_s21  ;;  %3267 = vrot.lane.b32.xlu0 %v7191_v17, %s4519_s21 }
 0x948   : > { %3393 = vrot.lane.b32.xlu1 %v7179_v30, %s8498_s16  ;;  %3299 = vrot.lane.b32.xlu0 %v7199_v25, %s4519_s21 }
 0x94c   : > { %3425 = vrot.lane.b32.xlu1 %v7189_v58, %s8498_s16  ;;  %3395 = vrot.lane.b32.xlu0 %v7191_v17, %s8498_s16 }
 0x950   : > { %3269 = vrot.lane.b32.xlu1 %v7211_v5, %s4519_s21  ;;  %3427 = vrot.lane.b32.xlu0 %v7199_v25, %s8498_s16 }
 0x954   : > { %3301 = vrot.lane.b32.xlu1 %v7221_v7, %s4519_s21  ;;  %3271 = vrot.lane.b32.xlu0 %v7223_v29, %s4519_s21 }
 0x958   : > { %3397 = vrot.lane.b32.xlu1 %v7211_v5, %s8498_s16  ;;  %3303 = vrot.lane.b32.xlu0 %v7231_v3, %s4519_s21 }
 0x95c   : > { %3429 = vrot.lane.b32.xlu1 %v7221_v7, %s8498_s16  ;;  %3399 = vrot.lane.b32.xlu0 %v7223_v29, %s8498_s16 }
 0x960   : > { %3273 = vrot.lane.b32.xlu1 %v7243_v47, %s4519_s21  ;;  %3431 = vrot.lane.b32.xlu0 %v7231_v3, %s8498_s16 }
 0x964   : > { %3305 = vrot.lane.b32.xlu1 %v7253_v42, %s4519_s21  ;;  %3275 = vrot.lane.b32.xlu0 %v7255_v2, %s4519_s21 }
 0x968   : > { %3401 = vrot.lane.b32.xlu1 %v7243_v47, %s8498_s16  ;;  %3307 = vrot.lane.b32.xlu0 %v7263_v45, %s4519_s21 }
 0x96c   : > { %3433 = vrot.lane.b32.xlu1 %v7253_v42, %s8498_s16  ;;  %3403 = vrot.lane.b32.xlu0 %v7255_v2, %s8498_s16 }
 0x970   : > { %3277 = vrot.lane.b32.xlu1 %v7275_v38, %s4519_s21  ;;  %3435 = vrot.lane.b32.xlu0 %v7263_v45, %s8498_s16 }
 0x972   : > { %v3256_v48 = vpop.permute.xlu0 %3255 }
 0x974   : > { %3309 = vrot.lane.b32.xlu1 %v7285_v63, %s4519_s21  ;;  %3279 = vrot.lane.b32.xlu0 %v7287_v56, %s4519_s21 }
 0x976   : > { %v3288_v62 = vpop.permute.xlu0 %3287 }
 0x977   : > { %v3335_v61 = vsel %vm1467_vm1, %v3288_v62, %v3256_v48  ;;  %v3319_v37 = vsel %vm1467_vm1, %v3256_v48, %v3288_v62  ;;  %v8512_v48 = vld [vmem:[#allocation54_spill] sm:$0xff]  ;;  %v3043_v62 = vmul.f32 %v8511_v16, %v8513_v15 }
 0x978   : > { %3405 = vrot.lane.b32.xlu1 %v7275_v38, %s8498_s16  ;;  %v3351_v11 = vsel %vm1401_vm2, %v3335_v61, 0.0  ;;  %3311 = vrot.lane.b32.xlu0 %v7295_v20, %s4519_s21  ;;  %v3512_v10 = vmul.f32 %v3319_v37, %v8505_v27  ;;  %v8517_v16 = vld [vmem:[#allocation62_spill] sm:$0xff] }
 0x979   : > { %v3511_v19 = vmul.f32 %v3351_v11, %v8505_v27  ;;  %v7351_v11 = vadd.f32 %v3216_v51, %v3043_v62  ;;  %v8514_v27 = vld [vmem:[#allocation22_spill] sm:$0xff] }
 0x97a   : > { %v3384_v4 = vpop.permute.xlu0 %3383  ;;  %v3576_v52 = vadd.f32 %v3544_v28, %v3512_v10 }
 0x97b   : > { %v3575_v9 = vadd.f32 %v3543_v32, %v3511_v19  ;;  %v8515_v19 = vld [vmem:[#allocation29_spill] sm:$0xff] }
 0x97c   : > { %3437 = vrot.lane.b32.xlu1 %v7285_v63, %s8498_s16  ;;  %3407 = vrot.lane.b32.xlu0 %v7287_v56, %s8498_s16  ;;  %v3044_v10 = vmul.f32 %v8515_v19, %v8514_v27  ;;  %v8516_v32 = vld [vmem:[#allocation25_spill] sm:$0xff] }
 0x97e   : > { %v3416_v22 = vpop.permute.xlu0 %3415  ;;  %v7375_v14 = vadd.f32 %v3221_v44, %v3044_v10  ;;  %v8520_v10 = vld [vmem:[#allocation65_spill] sm:$0xff] }
 0x97f   : > { %v3447_v33 = vsel %vm1602_vm3, %v3384_v4, %v3416_v22  ;;  %v3463_v34 = vsel %vm1602_vm3, %v3416_v22, %v3384_v4  ;;  %v3045_v22 = vmul.f32 %v8515_v19, %v8516_v32 }
 0x980   : > { %v3480_v53 = vsel %vm1537_vm4, %v3463_v34, 0.0  ;;  %v3607_v12 = vmul.f32 %v3447_v33, %v8509_v39  ;;  %3281 = vrot.lane.b32.xlu1 %v7317_v57, %s4519_s21  ;;  %3439 = vrot.lane.b32.xlu0 %v7295_v20, %s8498_s16 }
 0x981   : > { %v3608_v23 = vmul.f32 %v3480_v53, %v8509_v39  ;;  %v7383_v28 = vadd.f32 %v3221_v44, %v3045_v22 }
 0x982   : > { %v3639_v26 = vadd.f32 %v3607_v12, %v3575_v9 }
 0x983   : > { %v3640_v18 = vadd.f32 %v3608_v23, %v3576_v52 }
 0x984   : > { %vm3671_vm0 = vcmp.ge.f32.partialorder %v3639_v26, 0.0  ;;  %v3703_v40 = vmul.f32 %v3639_v26, %v8512_v48  ;;  %3313 = vrot.lane.b32.xlu1 %v7337_v0, %s4519_s21  ;;  %3283 = vrot.lane.b32.xlu0 %v7339_v50, %s4519_s21 }
 0x985   : > { %v3704_v61 = vmul.f32 %v3640_v18, %v8512_v48  ;;  %vm3672_vm15 = vcmp.ge.f32.partialorder %v3640_v18, 0.0 }
 0x986   : > { %v7349_v46 = vsel %vm3671_vm0, %v3639_v26, %v3703_v40  ;;  %v8518_v26 = vld [vmem:[#allocation63_spill] sm:$0xff] }
 0x987   : > { %v3899_v37 = vmul.f32 %v7349_v46, %v7349_v46  ;;  %v7355_v4 = vsel %vm3672_vm15, %v3640_v18, %v3704_v61  ;;  %v3546_v18 = vmul.f32 %v7125_v41, %v8518_v26  ;;  %v3545_v40 = vmul.f32 %v7117_v43, %v8518_v26  ;;  %v8519_v61 = vld [vmem:[#allocation67_spill] sm:$0xff]  ;;  %v8521_v43 = vld [vmem:[#allocation58_spill] sm:$0xff]  ;;  %v8522_v26 = vld [vmem:[#allocation61_spill] sm:$0xff] }
 0x988   : > { %3409 = vrot.lane.b32.xlu1 %v7317_v57, %s8498_s16  ;;  %v7361_v35 = vadd.f32 %v7355_v4, %v7349_v46  ;;  %v3900_v21 = vmul.f32 %v7355_v4, %v7355_v4  ;;  %3315 = vrot.lane.b32.xlu0 %v7351_v11, %s4519_s21  ;;  %v3547_v22 = vmul.f32 %v7127_v6, %v8521_v43 }
 0x98a   : > { %v7367_v51 = vadd.f32 %v3900_v21, %v3899_v37 }
 0x98c   : > { %3441 = vrot.lane.b32.xlu1 %v7337_v0, %s8498_s16  ;;  %3411 = vrot.lane.b32.xlu0 %v7339_v50, %s8498_s16 }
 0x990   : > { %3285 = vrot.lane.b32.xlu1 %v7375_v14, %s4519_s21  ;;  %3443 = vrot.lane.b32.xlu0 %v7351_v11, %s8498_s16 }
 0x992   : > { %v3258_v33 = vpop.permute.xlu1 %3257 }
 0x994   : > { %3317 = vrot.lane.b32.xlu1 %v7383_v28, %s4519_s21 }
 0x996   : > { %v3290_v34 = vpop.permute.xlu1 %3289  ;;  %v3260_v49 = vpop.permute.xlu0 %3259 }
 0x997   : > { %v3336_v54 = vsel %vm1467_vm1, %v3290_v34, %v3258_v33  ;;  %v3320_v53 = vsel %vm1467_vm1, %v3258_v33, %v3290_v34 }
 0x998   : > { %3413 = vrot.lane.b32.xlu1 %v7375_v14, %s8498_s16  ;;  %v3353_v9 = vsel %vm1401_vm2, %v3336_v54, 0.0  ;;  %v3514_v23 = vmul.f32 %v3320_v53, %v8517_v16  ;;  %v3548_v53 = vmul.f32 %v7135_v24, %v8521_v43 }
 0x999   : > { %v3513_v8 = vmul.f32 %v3353_v9, %v8517_v16 }
 0x99a   : > { %v3386_v39 = vpop.permute.xlu1 %3385  ;;  %v3292_v12 = vpop.permute.xlu0 %3291  ;;  %v3578_v33 = vadd.f32 %v3546_v18, %v3514_v23 }
 0x99b   : > { %v3337_v36 = vsel %vm1467_vm1, %v3292_v12, %v3260_v49  ;;  %v3321_v62 = vsel %vm1467_vm1, %v3260_v49, %v3292_v12  ;;  %v3577_v19 = vadd.f32 %v3545_v40, %v3513_v8 }
 0x99c   : > { %v3355_v52 = vsel %vm1401_vm2, %v3337_v36, 0.0  ;;  %3445 = vrot.lane.b32.xlu1 %v7383_v28, %s8498_s16  ;;  %v3516_v49 = vmul.f32 %v3321_v62, %v8519_v61 }
 0x99d   : > { %v3515_v37 = vmul.f32 %v3355_v52, %v8519_v61 }
 0x99e   : > { %v3418_v15 = vpop.permute.xlu1 %3417  ;;  %v3388_v27 = vpop.permute.xlu0 %3387  ;;  %v3580_v24 = vadd.f32 %v3548_v53, %v3516_v49 }
 0x99f   : > { %v3448_v21 = vsel %vm1602_vm3, %v3386_v39, %v3418_v15  ;;  %v3464_v44 = vsel %vm1602_vm3, %v3418_v15, %v3386_v39  ;;  %v3579_v39 = vadd.f32 %v3547_v22, %v3515_v37 }
 0x9a0   : > { %v3482_v41 = vsel %vm1537_vm4, %v3464_v44, 0.0  ;;  %v3609_v32 = vmul.f32 %v3448_v21, %v8520_v10 }
 0x9a1   : > { %v3610_v34 = vmul.f32 %v3482_v41, %v8520_v10 }
 0x9a2   : > { %v3641_v54 = vadd.f32 %v3609_v32, %v3577_v19  ;;  %v3262_v9 = vpop.permute.xlu1 %3261  ;;  %v3420_v36 = vpop.permute.xlu0 %3419 }
 0x9a3   : > { %v3642_v12 = vadd.f32 %v3610_v34, %v3578_v33  ;;  %v3449_v8 = vsel %vm1602_vm3, %v3388_v27, %v3420_v36  ;;  %v3465_v6 = vsel %vm1602_vm3, %v3420_v36, %v3388_v27 }
 0x9a4   : > { %vm3673_vm5 = vcmp.ge.f32.partialorder %v3641_v54, 0.0  ;;  %v3705_v16 = vmul.f32 %v3641_v54, %v8512_v48  ;;  %v3484_v23 = vsel %vm1537_vm4, %v3465_v6, 0.0  ;;  %v3611_v18 = vmul.f32 %v3449_v8, %v8522_v26 }
 0x9a5   : > { %v3706_v52 = vmul.f32 %v3642_v12, %v8512_v48  ;;  %vm3674_vm6 = vcmp.ge.f32.partialorder %v3642_v12, 0.0  ;;  %v3612_v15 = vmul.f32 %v3484_v23, %v8522_v26 }
 0x9a6   : > { %v3737_v40 = vsel %vm3673_vm5, %v3641_v54, %v3705_v16  ;;  %v3294_v62 = vpop.permute.xlu1 %3293  ;;  %v3643_v37 = vadd.f32 %v3611_v18, %v3579_v39  ;;  %v3264_v44 = vpop.permute.xlu0 %3263  ;;  %v8523_v54 = vld [vmem:[#allocation69_spill] sm:$0xff]  ;;  %v8524_v16 = vld [vmem:[#allocation76_spill] sm:$0xff] }
 0x9a7   : > { %v3901_v61 = vmul.f32 %v3737_v40, %v3737_v40  ;;  %v3338_v21 = vsel %vm1467_vm1, %v3294_v62, %v3262_v9  ;;  %v3644_v27 = vadd.f32 %v3612_v15, %v3580_v24  ;;  %v3322_v19 = vsel %vm1467_vm1, %v3262_v9, %v3294_v62 }
 0x9a8   : > { %v3738_v41 = vsel %vm3674_vm6, %v3642_v12, %v3706_v52  ;;  %vm3675_vm7 = vcmp.ge.f32.partialorder %v3643_v37, 0.0  ;;  %v3707_v10 = vmul.f32 %v3643_v37, %v8512_v48  ;;  %v3357_v32 = vsel %vm1401_vm2, %v3338_v21, 0.0 }
 0x9a9   : > { %v3768_v43 = vpack.c.bf16 %v3738_v41, %v7355_v4  ;;  %v3708_v22 = vmul.f32 %v3644_v27, %v8512_v48  ;;  %v3857_v34 = vadd.f32 %v7361_v35, %v3737_v40  ;;  %v3902_v49 = vmul.f32 %v3738_v41, %v3738_v41 }
 0x9aa   : > { %v3390_v33 = vpop.permute.xlu1 %3389  ;;  %v3549_v53 = vmul.f32 %v7147_v13, %v8523_v54  ;;  %v7445_v39 = vsel %vm3675_vm7, %v3643_v37, %v3707_v10  ;;  %v3932_v9 = vadd.f32 %v7367_v51, %v3901_v61  ;;  %v3296_v12 = vpop.permute.xlu0 %3295  ;;  %v3767_v36 = vpack.c.bf16 %v3737_v40, %v7349_v46  ;;  %v8525_v40 = vld [vmem:[#allocation78_spill] sm:$0xff] }
 0x9ab   : > { %3783 = vmatprep.subr.bf16.mxu0 %v3768_v43  ;;  %v3517_v8 = vmul.f32 %v3357_v32, %v8524_v16  ;;  %v3518_v4 = vmul.f32 %v3322_v19, %v8524_v16  ;;  %v3858_v6 = vadd.f32 %v3857_v34, %v3738_v41  ;;  %v3339_v35 = vsel %vm1467_vm1, %v3296_v12, %v3264_v44  ;;  %v8526_v41 = vld [vmem:[#allocation71_spill] sm:$0xff] }
 0x9ac   : > { %v3903_v52 = vmul.f32 %v7445_v39, %v7445_v39  ;;  %v3933_v13 = vadd.f32 %v3932_v9, %v3902_v49  ;;  %v3359_v23 = vsel %vm1401_vm2, %v3339_v35, 0.0  ;;  %3784 = vmatpush1.bf16.msra.mxu0 %v3767_v36  ;;  %vm3676_vm8 = vcmp.ge.f32.partialorder %v3644_v27, 0.0 }
 0x9ad   : > { %v3550_v46 = vmul.f32 %v7157_v1, %v8523_v54  ;;  %v3323_v51 = vsel %vm1467_vm1, %v3264_v44, %v3296_v12  ;;  %v3740_v18 = vsel %vm3676_vm8, %v3644_v27, %v3708_v22  ;;  %v3859_v24 = vadd.f32 %v3858_v6, %v7445_v39  ;;  %v8527_v27 = vld [vmem:[#allocation73_spill] sm:$0xff] }
 0x9ae   : > { %v3422_v26 = vpop.permute.xlu1 %3421  ;;  %v3519_v15 = vmul.f32 %v3359_v23, %v8525_v40  ;;  %v3392_v37 = vpop.permute.xlu0 %3391  ;;  %v3904_v21 = vmul.f32 %v3740_v18, %v3740_v18  ;;  %v3581_v19 = vadd.f32 %v3549_v53, %v3517_v8  ;;  %v3551_v32 = vmul.f32 %v7159_v31, %v8527_v27 }
 0x9af   : > { %v3450_v62 = vsel %vm1602_vm3, %v3390_v33, %v3422_v26  ;;  %v3466_v61 = vsel %vm1602_vm3, %v3422_v26, %v3390_v33  ;;  %v3860_v10 = vadd.f32 %v3859_v24, %v3740_v18  ;;  %v3582_v43 = vadd.f32 %v3550_v46, %v3518_v4 }
 0x9b0   : > { %v3486_v1 = vsel %vm1537_vm4, %v3466_v61, 0.0  ;;  %v3613_v44 = vmul.f32 %v3450_v62, %v8526_v41  ;;  %v3934_v34 = vadd.f32 %v3933_v13, %v3903_v52  ;;  %v3520_v49 = vmul.f32 %v3323_v51, %v8525_v40  ;;  %v8528_v52 = vld [vmem:[#allocation64_spill] sm:$0xff] }
 0x9b1   : > { %v3614_v22 = vmul.f32 %v3486_v1, %v8526_v41  ;;  %v3552_v53 = vmul.f32 %v7167_v60, %v8527_v27  ;;  %v3583_v9 = vadd.f32 %v3551_v32, %v3519_v15 }
 0x9b2   : > { %v3645_v54 = vadd.f32 %v3613_v44, %v3581_v19  ;;  %v3266_v33 = vpop.permute.xlu1 %3265  ;;  %v3424_v36 = vpop.permute.xlu0 %3423  ;;  %v3935_v16 = vadd.f32 %v3934_v34, %v3904_v21 }
 0x9b3   : > { %v3646_v12 = vadd.f32 %v3614_v22, %v3582_v43  ;;  %v3451_v31 = vsel %vm1602_vm3, %v3392_v37, %v3424_v36  ;;  %v3467_v4 = vsel %vm1602_vm3, %v3424_v36, %v3392_v37  ;;  %v3584_v13 = vadd.f32 %v3552_v53, %v3520_v49  ;;  %v8529_v43 = vld [vmem:[#allocation75_spill] sm:$0xff]  ;;  %v8530_v53 = vld [vmem:[#allocation80_spill] sm:$0xff] }
 0x9b4   : > { %vm3677_vm9 = vcmp.ge.f32.partialorder %v3645_v54, 0.0  ;;  %v3709_v8 = vmul.f32 %v3645_v54, %v8512_v48  ;;  %v3488_v35 = vsel %vm1537_vm4, %v3467_v4, 0.0  ;;  %v3615_v60 = vmul.f32 %v3451_v31, %v8528_v52 }
 0x9b5   : > { %v3710_v6 = vmul.f32 %v3646_v12, %v8512_v48  ;;  %vm3678_vm10 = vcmp.ge.f32.partialorder %v3646_v12, 0.0  ;;  %v3616_v46 = vmul.f32 %v3488_v35, %v8528_v52  ;;  %v3553_v22 = vmul.f32 %v7179_v30, %v8529_v43  ;;  %v8531_v35 = vld [vmem:[#allocation82_spill] sm:$0xff] }
 0x9b6   : > { %v3741_v23 = vsel %vm3677_vm9, %v3645_v54, %v3709_v8  ;;  %v3298_v51 = vpop.permute.xlu1 %3297  ;;  %v3647_v24 = vadd.f32 %v3615_v60, %v3583_v9  ;;  %v3268_v15 = vpop.permute.xlu0 %3267 }
 0x9b7   : > { %v3905_v26 = vmul.f32 %v3741_v23, %v3741_v23  ;;  %v3340_v40 = vsel %vm1467_vm1, %v3298_v51, %v3266_v33  ;;  %v3648_v62 = vadd.f32 %v3616_v46, %v3584_v13  ;;  %v3324_v61 = vsel %vm1467_vm1, %v3266_v33, %v3298_v51 }
 0x9b8   : > { %v3742_v37 = vsel %vm3678_vm10, %v3646_v12, %v3710_v6  ;;  %vm3679_vm11 = vcmp.ge.f32.partialorder %v3647_v24, 0.0  ;;  %v3711_v21 = vmul.f32 %v3647_v24, %v8512_v48  ;;  %v3361_v19 = vsel %vm1401_vm2, %v3340_v40, 0.0 }
 0x9b9   : > { %v3770_v1 = vpack.c.bf16 %v3742_v37, %v3740_v18  ;;  %v3712_v41 = vmul.f32 %v3648_v62, %v8512_v48  ;;  %v3861_v27 = vadd.f32 %v3860_v10, %v3741_v23  ;;  %v3906_v32 = vmul.f32 %v3742_v37, %v3742_v37 }
 0x9ba   : > { %v3394_v44 = vpop.permute.xlu1 %3393  ;;  %v7496_v34 = vsel %vm3679_vm11, %v3647_v24, %v3711_v21  ;;  %v3936_v49 = vadd.f32 %v3935_v16, %v3905_v26  ;;  %v3300_v54 = vpop.permute.xlu0 %3299  ;;  %v3769_v33 = vpack.c.bf16 %v3741_v23, %v7445_v39  ;;  %v3521_v9 = vmul.f32 %v3361_v19, %v8530_v53  ;;  %v8532_v26 = vld [vmem:[#allocation77_spill] sm:$0xff] }
 0x9bb   : > { %3785 = vmatprep.subr.bf16.mxu0 %v3770_v1  ;;  %v3522_v12 = vmul.f32 %v3324_v61, %v8530_v53  ;;  %v3862_v18 = vadd.f32 %v3861_v27, %v3742_v37  ;;  %v3341_v36 = vsel %vm1467_vm1, %v3300_v54, %v3268_v15  ;;  %v3907_v10 = vmul.f32 %v7496_v34, %v7496_v34 }
 0x9bc   : > { %v3937_v8 = vadd.f32 %v3936_v49, %v3906_v32  ;;  %v3363_v30 = vsel %vm1401_vm2, %v3341_v36, 0.0  ;;  %3786 = vmatpush1.bf16.msra.mxu0 %v3769_v33  ;;  %vm3680_vm12 = vcmp.ge.f32.partialorder %v3648_v62, 0.0  ;;  %v3554_v39 = vmul.f32 %v7189_v58, %v8529_v43 }
 0x9bd   : > { %v3325_v16 = vsel %vm1467_vm1, %v3268_v15, %v3300_v54  ;;  %v3744_v4 = vsel %vm3680_vm12, %v3648_v62, %v3712_v41  ;;  %v3863_v6 = vadd.f32 %v3862_v18, %v7496_v34  ;;  %v3523_v52 = vmul.f32 %v3363_v30, %v8531_v35  ;;  %v8533_v15 = vld [vmem:[#allocation79_spill] sm:$0xff] }
 0x9be   : > { %v3426_v31 = vpop.permute.xlu1 %3425  ;;  %v3396_v23 = vpop.permute.xlu0 %3395  ;;  %v3908_v46 = vmul.f32 %v3744_v4, %v3744_v4  ;;  %v3585_v51 = vadd.f32 %v3553_v22, %v3521_v9  ;;  %v3555_v62 = vmul.f32 %v7191_v17, %v8533_v15  ;;  %v3586_v61 = vadd.f32 %v3554_v39, %v3522_v12  ;;  %v8534_v9 = vld [vmem:[#allocation66_spill] sm:$0xff] }
 0x9bf   : > { %v3452_v60 = vsel %vm1602_vm3, %v3394_v44, %v3426_v31  ;;  %v3468_v13 = vsel %vm1602_vm3, %v3426_v31, %v3394_v44  ;;  %v3864_v40 = vadd.f32 %v3863_v6, %v3744_v4  ;;  %v3938_v21 = vadd.f32 %v3937_v8, %v3907_v10 }
 0x9c0   : > { %v3490_v58 = vsel %vm1537_vm4, %v3468_v13, 0.0  ;;  %v3617_v24 = vmul.f32 %v3452_v60, %v8532_v26  ;;  %v3524_v19 = vmul.f32 %v3325_v16, %v8531_v35  ;;  %v3556_v44 = vmul.f32 %v7199_v25, %v8533_v15 }
 0x9c1   : > { %v3618_v37 = vmul.f32 %v3490_v58, %v8532_v26  ;;  %v3587_v27 = vadd.f32 %v3555_v62, %v3523_v52  ;;  %v3939_v22 = vadd.f32 %v3938_v21, %v3908_v46  ;;  %v8535_v26 = vld [vmem:[#allocation81_spill] sm:$0xff]  ;;  %v8536_v21 = vld [vmem:[#allocation84_spill] sm:$0xff] }
 0x9c2   : > { %v3649_v1 = vadd.f32 %v3617_v24, %v3585_v51  ;;  %v3270_v41 = vpop.permute.xlu1 %3269  ;;  %v3428_v43 = vpop.permute.xlu0 %3427  ;;  %v3588_v12 = vadd.f32 %v3556_v44, %v3524_v19  ;;  %v3557_v24 = vmul.f32 %v7211_v5, %v8535_v26 }
 0x9c3   : > { %v3650_v32 = vadd.f32 %v3618_v37, %v3586_v61  ;;  %v3453_v17 = vsel %vm1602_vm3, %v3396_v23, %v3428_v43  ;;  %v3469_v54 = vsel %vm1602_vm3, %v3428_v43, %v3396_v23 }
 0x9c4   : > { %vm3681_vm13 = vcmp.ge.f32.partialorder %v3649_v1, 0.0  ;;  %v3713_v49 = vmul.f32 %v3649_v1, %v8512_v48  ;;  %v3492_v53 = vsel %vm1537_vm4, %v3469_v54, 0.0  ;;  %v3619_v25 = vmul.f32 %v3453_v17, %v8534_v9 }
 0x9c5   : > { %v3714_v33 = vmul.f32 %v3650_v32, %v8512_v48  ;;  %vm3682_vm14 = vcmp.ge.f32.partialorder %v3650_v32, 0.0  ;;  %v3620_v36 = vmul.f32 %v3492_v53, %v8534_v9 }
 0x9c6   : > { %v3745_v18 = vsel %vm3681_vm13, %v3649_v1, %v3713_v49  ;;  %v3302_v10 = vpop.permute.xlu1 %3301  ;;  %v3651_v30 = vadd.f32 %v3619_v25, %v3587_v27  ;;  %v3272_v16 = vpop.permute.xlu0 %3271  ;;  %v8537_v49 = vld [vmem:[#allocation86_spill] sm:$0xff] }
 0x9c7   : > { %v3909_v8 = vmul.f32 %v3745_v18, %v3745_v18  ;;  %v3342_v39 = vsel %vm1467_vm1, %v3302_v10, %v3270_v41  ;;  %v3652_v31 = vadd.f32 %v3620_v36, %v3588_v12  ;;  %v3326_v6 = vsel %vm1467_vm1, %v3270_v41, %v3302_v10  ;;  %v8538_v12 = vld [vmem:[#allocation83_spill] sm:$0xff]  ;;  %v8539_v10 = vld [vmem:[#allocation85_spill] sm:$0xff] }
 0x9c8   : > { %v3746_v35 = vsel %vm3682_vm14, %v3650_v32, %v3714_v33  ;;  %vm3683_vm0 = vcmp.ge.f32.partialorder %v3651_v30, 0.0  ;;  %v3715_v52 = vmul.f32 %v3651_v30, %v8512_v48  ;;  %v3365_v60 = vsel %vm1401_vm2, %v3342_v39, 0.0 }
 0x9c9   : > { %v3772_v13 = vpack.c.bf16 %v3746_v35, %v3744_v4  ;;  %v3716_v23 = vmul.f32 %v3652_v31, %v8512_v48  ;;  %v3865_v51 = vadd.f32 %v3864_v40, %v3745_v18  ;;  %v3910_v58 = vmul.f32 %v3746_v35, %v3746_v35 }
 0x9ca   : > { %v3398_v46 = vpop.permute.xlu1 %3397  ;;  %v7546_v15 = vsel %vm3683_vm0, %v3651_v30, %v3715_v52  ;;  %v3940_v62 = vadd.f32 %v3939_v22, %v3909_v8  ;;  %v3304_v61 = vpop.permute.xlu0 %3303  ;;  %v3771_v37 = vpack.c.bf16 %v3745_v18, %v7496_v34  ;;  %v3525_v19 = vmul.f32 %v3365_v60, %v8536_v21 }
 0x9cb   : > { %3787 = vmatprep.subr.bf16.mxu0 %v3772_v13  ;;  %v3526_v1 = vmul.f32 %v3326_v6, %v8536_v21  ;;  %v3866_v4 = vadd.f32 %v3865_v51, %v3746_v35  ;;  %v3343_v41 = vsel %vm1467_vm1, %v3304_v61, %v3272_v16  ;;  %v3911_v40 = vmul.f32 %v7546_v15, %v7546_v15 }
 0x9cc   : > { %v3941_v44 = vadd.f32 %v3940_v62, %v3910_v58  ;;  %v3367_v5 = vsel %vm1401_vm2, %v3343_v41, 0.0  ;;  %3788 = vmatpush1.bf16.msra.mxu0 %v3771_v37  ;;  %vm3684_vm15 = vcmp.ge.f32.partialorder %v3652_v31, 0.0  ;;  %v3558_v34 = vmul.f32 %v7221_v7, %v8535_v26  ;;  %v8540_v62 = vld [vmem:[#allocation68_spill] sm:$0xff] }
 0x9cd   : > { %v3327_v27 = vsel %vm1467_vm1, %v3272_v16, %v3304_v61  ;;  %v3748_v43 = vsel %vm3684_vm15, %v3652_v31, %v3716_v23  ;;  %v3867_v22 = vadd.f32 %v3866_v4, %v7546_v15  ;;  %v3527_v17 = vmul.f32 %v3367_v5, %v8537_v49 }
 0x9ce   : > { %v3430_v32 = vpop.permute.xlu1 %3429  ;;  %v3400_v53 = vpop.permute.xlu0 %3399  ;;  %v3912_v9 = vmul.f32 %v3748_v43, %v3748_v43  ;;  %v3589_v25 = vadd.f32 %v3557_v24, %v3525_v19  ;;  %v3559_v8 = vmul.f32 %v7223_v29, %v8539_v10  ;;  %v3590_v30 = vadd.f32 %v3558_v34, %v3526_v1 }
 0x9cf   : > { %v3454_v54 = vsel %vm1602_vm3, %v3398_v46, %v3430_v32  ;;  %v3470_v33 = vsel %vm1602_vm3, %v3430_v32, %v3398_v46  ;;  %v3868_v36 = vadd.f32 %v3867_v22, %v3748_v43  ;;  %v3942_v16 = vadd.f32 %v3941_v44, %v3911_v40 }
 0x9d0   : > { %v3494_v7 = vsel %vm1537_vm4, %v3470_v33, 0.0  ;;  %v3621_v18 = vmul.f32 %v3454_v54, %v8538_v12  ;;  %v3528_v31 = vmul.f32 %v3327_v27, %v8537_v49  ;;  %v3560_v52 = vmul.f32 %v7231_v3, %v8539_v10  ;;  %v8542_v10 = vld [vmem:[#allocation89_spill] sm:$0xff] }
 0x9d1   : > { %v3622_v39 = vmul.f32 %v3494_v7, %v8538_v12  ;;  %v3591_v60 = vadd.f32 %v3559_v8, %v3527_v17  ;;  %v3943_v46 = vadd.f32 %v3942_v16, %v3912_v9 }
 0x9d2   : > { %v3653_v6 = vadd.f32 %v3621_v18, %v3589_v25  ;;  %v3274_v35 = vpop.permute.xlu1 %3273  ;;  %v3432_v23 = vpop.permute.xlu0 %3431  ;;  %v3592_v61 = vadd.f32 %v3560_v52, %v3528_v31 }
 0x9d3   : > { %v3654_v13 = vadd.f32 %v3622_v39, %v3590_v30  ;;  %v3455_v29 = vsel %vm1602_vm3, %v3400_v53, %v3432_v23  ;;  %v3471_v58 = vsel %vm1602_vm3, %v3432_v23, %v3400_v53  ;;  %v8541_v53 = vld [vmem:[#allocation87_spill] sm:$0xff] }
 0x9d4   : > { %vm3685_vm5 = vcmp.ge.f32.partialorder %v3653_v6, 0.0  ;;  %v3717_v51 = vmul.f32 %v3653_v6, %v8512_v48  ;;  %v3496_v24 = vsel %vm1537_vm4, %v3471_v58, 0.0  ;;  %v3623_v3 = vmul.f32 %v3455_v29, %v8540_v62 }
 0x9d5   : > { %v3718_v26 = vmul.f32 %v3654_v13, %v8512_v48  ;;  %vm3686_vm6 = vcmp.ge.f32.partialorder %v3654_v13, 0.0  ;;  %v3624_v21 = vmul.f32 %v3496_v24, %v8540_v62  ;;  %v3561_v9 = vmul.f32 %v7243_v47, %v8541_v53 }
 0x9d6   : > { %v3749_v37 = vsel %vm3685_vm5, %v3653_v6, %v3717_v51  ;;  %v3306_v19 = vpop.permute.xlu1 %3305  ;;  %v3655_v4 = vadd.f32 %v3623_v3, %v3591_v60  ;;  %v3276_v40 = vpop.permute.xlu0 %3275  ;;  %v8543_v60 = vld [vmem:[#allocation91_spill] sm:$0xff]  ;;  %v8545_v3 = vld [vmem:[#allocation90_spill] sm:$0xff] }
 0x9d7   : > { %v3913_v1 = vmul.f32 %v3749_v37, %v3749_v37  ;;  %v3344_v41 = vsel %vm1467_vm1, %v3306_v19, %v3274_v35  ;;  %v3656_v44 = vadd.f32 %v3624_v21, %v3592_v61  ;;  %v3328_v5 = vsel %vm1467_vm1, %v3274_v35, %v3306_v19 }
 0x9d8   : > { %v3750_v34 = vsel %vm3686_vm6, %v3654_v13, %v3718_v26  ;;  %vm3687_vm7 = vcmp.ge.f32.partialorder %v3655_v4, 0.0  ;;  %v3719_v27 = vmul.f32 %v3655_v4, %v8512_v48  ;;  %v3369_v32 = vsel %vm1401_vm2, %v3344_v41, 0.0  ;;  %v8544_v26 = vld [vmem:[#allocation88_spill] sm:$0xff] }
 0x9d9   : > { %v3774_v22 = vpack.c.bf16 %v3750_v34, %v3748_v43  ;;  %v3720_v49 = vmul.f32 %v3656_v44, %v8512_v48  ;;  %v3869_v54 = vadd.f32 %v3868_v36, %v3749_v37  ;;  %v3914_v33 = vmul.f32 %v3750_v34, %v3750_v34 }
 0x9da   : > { %v3402_v17 = vpop.permute.xlu1 %3401  ;;  %v7596_v25 = vsel %vm3687_vm7, %v3655_v4, %v3719_v27  ;;  %v3944_v7 = vadd.f32 %v3943_v46, %v3913_v1  ;;  %v3308_v12 = vpop.permute.xlu0 %3307  ;;  %v3773_v18 = vpack.c.bf16 %v3749_v37, %v7546_v15  ;;  %v3529_v8 = vmul.f32 %v3369_v32, %v8542_v10 }
 0x9db   : > { %3789 = vmatprep.subr.bf16.mxu0 %v3774_v22  ;;  %v3530_v30 = vmul.f32 %v3328_v5, %v8542_v10  ;;  %v3870_v43 = vadd.f32 %v3869_v54, %v3750_v34  ;;  %v3345_v39 = vsel %vm1467_vm1, %v3308_v12, %v3276_v40  ;;  %v3915_v36 = vmul.f32 %v7596_v25, %v7596_v25  ;;  %v8546_v54 = vld [vmem:[#allocation70_spill] sm:$0xff] }
 0x9dc   : > { %v3945_v16 = vadd.f32 %v3944_v7, %v3914_v33  ;;  %v3371_v47 = vsel %vm1401_vm2, %v3345_v39, 0.0  ;;  %3790 = vmatpush1.bf16.msra.mxu0 %v3773_v18  ;;  %vm3688_vm8 = vcmp.ge.f32.partialorder %v3656_v44, 0.0  ;;  %v3562_v15 = vmul.f32 %v7253_v42, %v8541_v53 }
 0x9dd   : > { %v3329_v31 = vsel %vm1467_vm1, %v3276_v40, %v3308_v12  ;;  %v3752_v35 = vsel %vm3688_vm8, %v3656_v44, %v3720_v49  ;;  %v3871_v52 = vadd.f32 %v3870_v43, %v7596_v25  ;;  %v3531_v13 = vmul.f32 %v3371_v47, %v8543_v60 }
 0x9de   : > { %v3434_v6 = vpop.permute.xlu1 %3433  ;;  %v3404_v51 = vpop.permute.xlu0 %3403  ;;  %v3916_v29 = vmul.f32 %v3752_v35, %v3752_v35  ;;  %v3593_v58 = vadd.f32 %v3561_v9, %v3529_v8  ;;  %v3563_v61 = vmul.f32 %v7255_v2, %v8545_v3  ;;  %v3594_v37 = vadd.f32 %v3562_v15, %v3530_v30 }
 0x9df   : > { %v3456_v23 = vsel %vm1602_vm3, %v3402_v17, %v3434_v6  ;;  %v3472_v46 = vsel %vm1602_vm3, %v3434_v6, %v3402_v17  ;;  %v3872_v62 = vadd.f32 %v3871_v52, %v3752_v35  ;;  %v3946_v19 = vadd.f32 %v3945_v16, %v3915_v36 }
 0x9e0   : > { %v3498_v42 = vsel %vm1537_vm4, %v3472_v46, 0.0  ;;  %v3625_v24 = vmul.f32 %v3456_v23, %v8544_v26  ;;  %v3532_v1 = vmul.f32 %v3329_v31, %v8543_v60  ;;  %v3564_v40 = vmul.f32 %v7263_v45, %v8545_v3  ;;  %v8547_v60 = vld [vmem:[#allocation92_spill] sm:$0xff] }
 0x9e1   : > { %v3626_v21 = vmul.f32 %v3498_v42, %v8544_v26  ;;  %v3595_v44 = vadd.f32 %v3563_v61, %v3531_v13  ;;  %v3947_v27 = vadd.f32 %v3946_v19, %v3916_v29  ;;  %v3565_v13 = vmul.f32 %v7275_v38, %v8547_v60 }
 0x9e2   : > { %v3657_v4 = vadd.f32 %v3625_v24, %v3593_v58  ;;  %v3278_v41 = vpop.permute.xlu1 %3277  ;;  %v3436_v34 = vpop.permute.xlu0 %3435  ;;  %v3596_v33 = vadd.f32 %v3564_v40, %v3532_v1  ;;  %v8548_v58 = vld [vmem:[#allocation93_spill] sm:$0xff]  ;;  %v8549_v1 = vld [vmem:[#allocation95_spill] sm:$0xff] }
 0x9e3   : > { %v3658_v5 = vadd.f32 %v3626_v21, %v3594_v37  ;;  %v3457_v2 = vsel %vm1602_vm3, %v3404_v51, %v3436_v34  ;;  %v3473_v22 = vsel %vm1602_vm3, %v3436_v34, %v3404_v51 }
 0x9e4   : > { %vm3689_vm9 = vcmp.ge.f32.partialorder %v3657_v4, 0.0  ;;  %v3721_v32 = vmul.f32 %v3657_v4, %v8512_v48  ;;  %v3500_v17 = vsel %vm1537_vm4, %v3473_v22, 0.0  ;;  %v3627_v45 = vmul.f32 %v3457_v2, %v8546_v54  ;;  %v8551_v22 = vld [vmem:[#allocation96_spill] sm:$0xff] }
 0x9e5   : > { %v3722_v49 = vmul.f32 %v3658_v5, %v8512_v48  ;;  %vm3690_vm10 = vcmp.ge.f32.partialorder %v3658_v5, 0.0  ;;  %v3628_v9 = vmul.f32 %v3500_v17, %v8546_v54 }
 0x9e6   : > { %v3753_v53 = vsel %vm3689_vm9, %v3657_v4, %v3721_v32  ;;  %v3310_v7 = vpop.permute.xlu1 %3309  ;;  %v3659_v18 = vadd.f32 %v3627_v45, %v3595_v44  ;;  %v3280_v8 = vpop.permute.xlu0 %3279 }
 0x9e7   : > { %v3917_v12 = vmul.f32 %v3753_v53, %v3753_v53  ;;  %v3346_v10 = vsel %vm1467_vm1, %v3310_v7, %v3278_v41  ;;  %v3660_v30 = vadd.f32 %v3628_v9, %v3596_v33  ;;  %v3330_v43 = vsel %vm1467_vm1, %v3278_v41, %v3310_v7 }
 0x9e8   : > { %v3754_v39 = vsel %vm3690_vm10, %v3658_v5, %v3722_v49  ;;  %vm3691_vm11 = vcmp.ge.f32.partialorder %v3659_v18, 0.0  ;;  %v3723_v36 = vmul.f32 %v3659_v18, %v8512_v48  ;;  %v3373_v16 = vsel %vm1401_vm2, %v3346_v10, 0.0 }
 0x9e9   : > { %v3776_v47 = vpack.c.bf16 %v3754_v39, %v3752_v35  ;;  %v3724_v15 = vmul.f32 %v3660_v30, %v8512_v48  ;;  %v3873_v6 = vadd.f32 %v3872_v62, %v3753_v53  ;;  %v3918_v52 = vmul.f32 %v3754_v39, %v3754_v39 }
 0x9ea   : > { %v3406_v31 = vpop.permute.xlu1 %3405  ;;  %v7646_v23 = vsel %vm3691_vm11, %v3659_v18, %v3723_v36  ;;  %v3948_v46 = vadd.f32 %v3947_v27, %v3917_v12  ;;  %v3312_v51 = vpop.permute.xlu0 %3311  ;;  %v3775_v29 = vpack.c.bf16 %v3753_v53, %v7596_v25  ;;  %v3533_v42 = vmul.f32 %v3373_v16, %v8548_v58  ;;  %v8550_v27 = vld [vmem:[#allocation94_spill] sm:$0xff]  ;;  %v8552_v16 = vld [vmem:[#allocation72_spill] sm:$0xff] }
 0x9eb   : > { %3791 = vmatprep.subr.bf16.mxu0 %v3776_v47  ;;  %v3534_v26 = vmul.f32 %v3330_v43, %v8548_v58  ;;  %v3874_v35 = vadd.f32 %v3873_v6, %v3754_v39  ;;  %v3347_v24 = vsel %vm1467_vm1, %v3312_v51, %v3280_v8  ;;  %v3919_v62 = vmul.f32 %v7646_v23, %v7646_v23 }
 0x9ec   : > { %v3949_v3 = vadd.f32 %v3948_v46, %v3918_v52  ;;  %v3375_v38 = vsel %vm1401_vm2, %v3347_v24, 0.0  ;;  %3792 = vmatpush1.bf16.msra.mxu0 %v3775_v29  ;;  %vm3692_vm12 = vcmp.ge.f32.partialorder %v3660_v30, 0.0  ;;  %v3566_v25 = vmul.f32 %v7285_v63, %v8547_v60 }
 0x9ed   : > { %v3331_v61 = vsel %vm1467_vm1, %v3280_v8, %v3312_v51  ;;  %v3756_v21 = vsel %vm3692_vm12, %v3660_v30, %v3724_v15  ;;  %v3875_v19 = vadd.f32 %v3874_v35, %v7646_v23  ;;  %v3535_v4 = vmul.f32 %v3375_v38, %v8549_v1 }
 0x9ee   : > { %v3438_v37 = vpop.permute.xlu1 %3437  ;;  %v3408_v44 = vpop.permute.xlu0 %3407  ;;  %v3920_v5 = vmul.f32 %v3756_v21, %v3756_v21  ;;  %v3597_v34 = vadd.f32 %v3565_v13, %v3533_v42  ;;  %v3567_v49 = vmul.f32 %v7287_v56, %v8551_v22  ;;  %v3598_v17 = vadd.f32 %v3566_v25, %v3534_v26 }
 0x9ef   : > { %v3458_v41 = vsel %vm1602_vm3, %v3406_v31, %v3438_v37  ;;  %v3474_v40 = vsel %vm1602_vm3, %v3438_v37, %v3406_v31  ;;  %v3876_v2 = vadd.f32 %v3875_v19, %v3756_v21  ;;  %v3950_v45 = vadd.f32 %v3949_v3, %v3919_v62 }
 0x9f0   : > { %v3502_v63 = vsel %vm1537_vm4, %v3474_v40, 0.0  ;;  %v3629_v32 = vmul.f32 %v3458_v41, %v8550_v27  ;;  %v3536_v33 = vmul.f32 %v3331_v61, %v8549_v1  ;;  %v3568_v7 = vmul.f32 %v7295_v20, %v8551_v22  ;;  %v8553_v1 = vld [vmem:[#allocation97_spill] sm:$0xff]  ;;  %v8554_v41 = vld [vmem:[#allocation98_spill] sm:$0xff] }
 0x9f1   : > { %v3630_v54 = vmul.f32 %v3502_v63, %v8550_v27  ;;  %v3599_v12 = vadd.f32 %v3567_v49, %v3535_v4  ;;  %v3951_v8 = vadd.f32 %v3950_v45, %v3920_v5  ;;  %v3569_v40 = vmul.f32 %v7317_v57, %v8554_v41  ;;  %v8555_v57 = vld [vmem:[#allocation99_spill] sm:$0xff] }
 0x9f2   : > { %v3661_v53 = vadd.f32 %v3629_v32, %v3597_v34  ;;  %v3282_v9 = vpop.permute.xlu1 %3281  ;;  %v3440_v10 = vpop.permute.xlu0 %3439  ;;  %v3600_v47 = vadd.f32 %v3568_v7, %v3536_v33  ;;  %v8556_v33 = vld [vmem:[#allocation100_spill] sm:$0xff]  ;;  %v8557_v7 = vld [vmem:[#allocation102_spill] sm:$0xff] }
 0x9f3   : > { %v3662_v18 = vadd.f32 %v3630_v54, %v3598_v17  ;;  %v3459_v56 = vsel %vm1602_vm3, %v3408_v44, %v3440_v10  ;;  %v3475_v43 = vsel %vm1602_vm3, %v3440_v10, %v3408_v44 }
 0x9f4   : > { %vm3693_vm13 = vcmp.ge.f32.partialorder %v3661_v53, 0.0  ;;  %v3725_v30 = vmul.f32 %v3661_v53, %v8512_v48  ;;  %v3504_v36 = vsel %vm1537_vm4, %v3475_v43, 0.0  ;;  %v3631_v20 = vmul.f32 %v3459_v56, %v8552_v16 }
 0x9f5   : > { %v3726_v39 = vmul.f32 %v3662_v18, %v8512_v48  ;;  %vm3694_vm14 = vcmp.ge.f32.partialorder %v3662_v18, 0.0  ;;  %v3632_v31 = vmul.f32 %v3504_v36, %v8552_v16 }
 0x9f6   : > { %v3757_v15 = vsel %vm3693_vm13, %v3661_v53, %v3725_v30  ;;  %v3314_v6 = vpop.permute.xlu1 %3313  ;;  %v3663_v60 = vadd.f32 %v3631_v20, %v3599_v12  ;;  %v3284_v46 = vpop.permute.xlu0 %3283  ;;  %v3571_v12 = vmul.f32 %v7339_v50, %v8557_v7 }
 0x9f7   : > { %v3921_v52 = vmul.f32 %v3757_v15, %v3757_v15  ;;  %v3348_v13 = vsel %vm1467_vm1, %v3314_v6, %v3282_v9  ;;  %v3664_v51 = vadd.f32 %v3632_v31, %v3600_v47  ;;  %v3758_v29 = vsel %vm3694_vm14, %v3662_v18, %v3726_v39 }
 0x9f8   : > { %vm3695_vm0 = vcmp.ge.f32.partialorder %v3663_v60, 0.0  ;;  %v3727_v58 = vmul.f32 %v3663_v60, %v8512_v48  ;;  %v3377_v42 = vsel %vm1401_vm2, %v3348_v13, 0.0  ;;  %v3778_v26 = vpack.c.bf16 %v3758_v29, %v3756_v21 }
 0x9f9   : > { %v3332_v35 = vsel %vm1467_vm1, %v3282_v9, %v3314_v6  ;;  %v3877_v62 = vadd.f32 %v3876_v2, %v3757_v15  ;;  %v3922_v38 = vmul.f32 %v3758_v29, %v3758_v29  ;;  %v3952_v25 = vadd.f32 %v3951_v8, %v3921_v52 }
 0x9fa   : > { %v3410_v24 = vpop.permute.xlu1 %3409  ;;  %v7693_v3 = vsel %vm3695_vm0, %v3663_v60, %v3727_v58  ;;  %3793 = vmatprep.subr.bf16.mxu0 %v3778_v26  ;;  %v3316_v61 = vpop.permute.xlu0 %3315  ;;  %v3777_v37 = vpack.c.bf16 %v3757_v15, %v7646_v23  ;;  %v3728_v19 = vmul.f32 %v3664_v51, %v8512_v48  ;;  %v3537_v4 = vmul.f32 %v3377_v42, %v8553_v1  ;;  %v8558_v60 = vld [vmem:[#allocation74_spill] sm:$0xff] }
 0x9fb   : > { %v3349_v21 = vsel %vm1467_vm1, %v3316_v61, %v3284_v46  ;;  %v3538_v44 = vmul.f32 %v3332_v35, %v8553_v1  ;;  %vm3696_vm15 = vcmp.ge.f32.partialorder %v3664_v51, 0.0  ;;  %v3570_v23 = vmul.f32 %v7337_v0, %v8554_v41 }
 0x9fc   : > { %v3379_v5 = vsel %vm1401_vm2, %v3349_v21, 0.0  ;;  %3794 = vmatpush1.bf16.msra.mxu0 %v3777_v37  ;;  %v3923_v34 = vmul.f32 %v7693_v3, %v7693_v3  ;;  %v3878_v63 = vadd.f32 %v3877_v62, %v3758_v29  ;;  %v3333_v27 = vsel %vm1467_vm1, %v3284_v46, %v3316_v61 }
 0x9fd   : > { %v3953_v2 = vadd.f32 %v3952_v25, %v3922_v38  ;;  %v3539_v22 = vmul.f32 %v3379_v5, %v8555_v57  ;;  %v3601_v45 = vadd.f32 %v3569_v40, %v3537_v4  ;;  %v3760_v9 = vsel %vm3696_vm15, %v3664_v51, %v3728_v19 }
 0x9fe   : > { %v3442_v32 = vpop.permute.xlu1 %3441  ;;  %v3412_v54 = vpop.permute.xlu0 %3411  ;;  %v3602_v18 = vadd.f32 %v3570_v23, %v3538_v44  ;;  %v3572_v8 = vmul.f32 %v7351_v11, %v8557_v7  ;;  %v3540_v30 = vmul.f32 %v3333_v27, %v8555_v57  ;;  %v3879_v39 = vadd.f32 %v3878_v63, %v7693_v3 }
 0x9ff   : > { %v3460_v49 = vsel %vm1602_vm3, %v3410_v24, %v3442_v32  ;;  %v3476_v17 = vsel %vm1602_vm3, %v3442_v32, %v3410_v24  ;;  %v3603_v36 = vadd.f32 %v3571_v12, %v3539_v22  ;;  %v3924_v47 = vmul.f32 %v3760_v9, %v3760_v9 }
 0xa00   : > { %v3506_v0 = vsel %vm1537_vm4, %v3476_v17, 0.0  ;;  %v3633_v53 = vmul.f32 %v3460_v49, %v8556_v33  ;;  %v3954_v15 = vadd.f32 %v3953_v2, %v3923_v34  ;;  %v3604_v46 = vadd.f32 %v3572_v8, %v3540_v30  ;;  %v8559_v34 = vld [vmem:[#allocation101_spill] sm:$0xff]  ;;  %v8560_v2 = vld [vmem:[#allocation103_spill] sm:$0xff] }
 0xa01   : > { %v3634_v10 = vmul.f32 %v3506_v0, %v8556_v33  ;;  %v3880_v38 = vadd.f32 %v3879_v39, %v3760_v9  ;;  %v3573_v57 = vmul.f32 %v7375_v14, %v8560_v2  ;;  %v3574_v22 = vmul.f32 %v7383_v28, %v8560_v2 }
 0xa02   : > { %v3665_v56 = vadd.f32 %v3633_v53, %v3601_v45  ;;  %v3286_v43 = vpop.permute.xlu1 %3285  ;;  %v3444_v20 = vpop.permute.xlu0 %3443  ;;  %v3955_v25 = vadd.f32 %v3954_v15, %v3924_v47  ;;  %v8561_v53 = vld [vmem:[#allocation104_spill] sm:$0xff] }
 0xa03   : > { %v3666_v16 = vadd.f32 %v3634_v10, %v3602_v18  ;;  %v3461_v31 = vsel %vm1602_vm3, %v3412_v54, %v3444_v20  ;;  %v3477_v11 = vsel %vm1602_vm3, %v3444_v20, %v3412_v54 }
 0xa04   : > { %vm3697_vm5 = vcmp.ge.f32.partialorder %v3665_v56, 0.0  ;;  %v3729_v50 = vmul.f32 %v3665_v56, %v8512_v48  ;;  %v3508_v52 = vsel %vm1537_vm4, %v3477_v11, 0.0  ;;  %v3635_v13 = vmul.f32 %v3461_v31, %v8558_v60 }
 0xa05   : > { %v3730_v6 = vmul.f32 %v3666_v16, %v8512_v48  ;;  %vm3698_vm6 = vcmp.ge.f32.partialorder %v3666_v16, 0.0  ;;  %v3636_v29 = vmul.f32 %v3508_v52, %v8558_v60  ;;  %v8562_v52 = vld [vmem:[#allocation55_spill] sm:$0xff]  ;;  %v8564_v60 = vmov 0  }
 0xa06   : > { %v3761_v51 = vsel %vm3697_vm5, %v3665_v56, %v3729_v50  ;;  %v3318_v58 = vpop.permute.xlu1 %3317  ;;  %v3667_v26 = vadd.f32 %v3635_v13, %v3603_v36  ;;  %v8565_v13 = vld [vmem:[#allocation46_spill] sm:$0xff] }
 0xa07   : > { %v3925_v42 = vmul.f32 %v3761_v51, %v3761_v51  ;;  %v3350_v35 = vsel %vm1467_vm1, %v3318_v58, %v3286_v43  ;;  %v3668_v24 = vadd.f32 %v3636_v29, %v3604_v46  ;;  %v3762_v62 = vsel %vm3698_vm6, %v3666_v16, %v3730_v6  ;;  %v8566_v46 = vld [vmem:[#allocation53_spill] sm:$0xff] }
 0xa08   : > { %vm3699_vm7 = vcmp.ge.f32.partialorder %v3667_v26, 0.0  ;;  %v3731_v61 = vmul.f32 %v3667_v26, %v8512_v48  ;;  %v3381_v37 = vsel %vm1401_vm2, %v3350_v35, 0.0  ;;  %v3780_v19 = vpack.c.bf16 %v3762_v62, %v3760_v9  ;;  %v4165_v29 = vld [vmem:[%s8057_s4 + $0x1] ss:$0 sm:$0xff]  ;;  %v4373_v35 = vld [vmem:[%s8058_s5 + $0x8] sm:$0xff] }
 0xa09   : > { %v3334_v1 = vsel %vm1467_vm1, %v3286_v43, %v3318_v58  ;;  %v3881_v21 = vadd.f32 %v3880_v38, %v3761_v51  ;;  %v3926_v41 = vmul.f32 %v3762_v62, %v3762_v62  ;;  %v3956_v40 = vadd.f32 %v3955_v25, %v3925_v42  ;;  %v8568_v58 = vld [vmem:[#allocation49_spill] sm:$0xff]  ;;  %v8569_v42 = vld [vmem:[#allocation107_spill] sm:$0xff]  ;;  %v4374_v38 = vld [vmem:[%s8058_s5 + $0x18] sm:$0xff] }
 0xa0a   : > { %v3414_v4 = vpop.permute.xlu1 %3413  ;;  %3795 = vmatprep.subr.bf16.mxu0 %v3780_v19  ;;  %v3779_v44 = vpack.c.bf16 %v3761_v51, %v7693_v3  ;;  %v3732_v5 = vmul.f32 %v3668_v24, %v8512_v48  ;;  %v3763_v23 = vsel %vm3699_vm7, %v3667_v26, %v3731_v61  ;;  %v3541_v63 = vmul.f32 %v3381_v37, %v8559_v34  ;;  %v8567_v51 = vld [vmem:[#allocation56_spill] sm:$0xff]  ;;  %v8570_v26 = vld [vmem:[#allocation110_spill] sm:$0xff]  ;;  %v8573_v37 = vld [vmem:[#allocation109_spill] sm:$0xff] }
 0xa0b   : > { %v3542_v27 = vmul.f32 %v3334_v1, %v8559_v34  ;;  %v3882_v32 = vadd.f32 %v3881_v21, %v3762_v62  ;;  %vm3700_vm2 = vcmp.ge.f32.partialorder %v3668_v24, 0.0  ;;  %v3927_v17 = vmul.f32 %v3763_v23, %v3763_v23  ;;  %v8571_v62 = vld [vmem:[#allocation52_spill] sm:$0xff]  ;;  %v4375_v19 = vld [vmem:[%s8058_s5] sm:$0xff] }
 0xa0c   : > { %3796 = vmatpush1.bf16.msra.mxu0 %v3779_v44  ;;  %v3957_v54 = vadd.f32 %v3956_v40, %v3926_v41  ;;  %v3605_v0 = vadd.f32 %v3573_v57, %v3541_v63  ;;  %v3764_v7 = vsel %vm3700_vm2, %v3668_v24, %v3732_v5  ;;  %v528_v24 = vmul.f32 %v4373_v35, %v4165_v29  ;;  %v8572_v61 = vld [vmem:[#allocation108_spill] sm:$0xff]  ;;  %v4377_v41 = vld [vmem:[%s8058_s5 + $0x10] sm:$0xff]  ;;  %v4379_v34 = vld [vmem:[%s8058_s5 + $0x20] sm:$0xff] }
 0xa0d   : > { %v3606_v14 = vadd.f32 %v3574_v22, %v3542_v27  ;;  %v3883_v28 = vadd.f32 %v3882_v32, %v3763_v23  ;;  %v3928_v8 = vmul.f32 %v3764_v7, %v3764_v7  ;;  %v530_v25 = vmul.f32 %v4374_v38, %v4165_v29  ;;  %v4378_v44 = vld [vmem:[%s8058_s5 + $0x38] sm:$0xff]  ;;  %v4380_v27 = vld [vmem:[%s8058_s5 + $0x30] sm:$0xff] }
 0xa0e   : > { %v3446_v49 = vpop.permute.xlu1 %3445  ;;  %v3958_v30 = vadd.f32 %v3957_v54, %v3927_v17  ;;  %v527_v1 = vmul.f32 %v4375_v19, %v4165_v29  ;;  %v529_v40 = vmul.f32 %v4377_v41, %v4165_v29  ;;  %v534_v5 = vmul.f32 %v4378_v44, %v4165_v29  ;;  %v4383_v38 = vld [vmem:[%s4677_s18 + $0x30] sm:$0xff]  ;;  %v8580_v19 = vld [vmem:[#allocation14_spill] sm:$0xff] }
 0xa0f   : > { %v3462_v3 = vsel %vm1602_vm3, %v3414_v4, %v3446_v49  ;;  %v3478_v45 = vsel %vm1602_vm3, %v3446_v49, %v3414_v4  ;;  %v3884_v43 = vadd.f32 %v3883_v28, %v3764_v7  ;;  %v4376_v4 = vld [vmem:[%s8058_s5 + $0x28] sm:$0xff]  ;;  %v531_v63 = vmul.f32 %v4379_v34, %v4165_v29 }
 0xa10   : > { %v3510_v33 = vsel %vm1537_vm4, %v3478_v45, 0.0  ;;  %v3637_v9 = vmul.f32 %v3462_v3, %v8561_v53  ;;  %v3959_v20 = vadd.f32 %v3958_v30, %v3928_v8  ;;  %v532_v21 = vmul.f32 %v4376_v4, %v4165_v29  ;;  %v8581_v4 = vld [vmem:[#allocation15_spill] sm:$0xff]  ;;  %v4386_v34 = vld [vmem:[%s4677_s18 + $0x8] sm:$0xff] }
 0xa11   : > { %v3638_v12 = vmul.f32 %v3510_v33, %v8561_v53  ;;  %v533_v32 = vmul.f32 %v4380_v27, %v4165_v29 }
 0xa12   : > { %v3669_v18 = vadd.f32 %v3637_v9, %v3605_v0 }
 0xa13   : > { %v3670_v10 = vadd.f32 %v3638_v12, %v3606_v14 }
 0xa14   : > { %vm3701_vm1 = vcmp.ge.f32.partialorder %v3669_v18, 0.0  ;;  %v3733_v56 = vmul.f32 %v3669_v18, %v8512_v48 }
 0xa15   : > { %v3734_v59 = vmul.f32 %v3670_v10, %v8512_v48  ;;  %vm3702_vm3 = vcmp.ge.f32.partialorder %v3670_v10, 0.0  ;;  %v8563_v48 = vld [vmem:[#allocation106_spill] sm:$0xff] }
 0xa16   : > { %v3765_v55 = vsel %vm3701_vm1, %v3669_v18, %v3733_v56  ;;  %v7817_v56 = vstv %s2349_s9  ;;  %s4079_s9 = sshll.u32 %s7843_s30, 4  ;;  %s8005_s9 = int_to_ptr.vmem [resolvable:$true] %s4079_s9 }
 0xa17   : > { %v3766_v39 = vsel %vm3702_vm3, %v3670_v10, %v3734_v59  ;;  %v3885_v36 = vadd.f32 %v3884_v43, %v3765_v55  ;;  %v3929_v16 = vmul.f32 %v3765_v55, %v3765_v55  ;;  %v3781_v31 = vpack.c.bf16 %v3765_v55, %v3763_v23  ;;  %v8574_v23 = vld [vmem:[#allocation111_spill] sm:$0xff] }
 0xa18   : > { %v3782_v47 = vpack.c.bf16 %v3766_v39, %v3764_v7  ;;  %v3930_v15 = vmul.f32 %v3766_v39, %v3766_v39 }
 0xa19   : > { %v3886_v50 = vadd.f32 %v3885_v36, %v3766_v39  ;;  %v3960_v11 = vadd.f32 %v3959_v20, %v3929_v16  ;;  %v8575_v20 = vld [vmem:[#allocation10_spill] sm:$0xff] }
 0xa1a   : > { %3797 = vmatprep.subr.bf16.mxu0 %v3782_v47 }
 0xa1b   : > { %3887 = vadd.xlane.f32.xlu0 %v3886_v50  ;;  %3798 = vmatpush1.bf16.msra.mxu0 %v3781_v31  ;;  %v3961_v6 = vadd.f32 %v3960_v11, %v3930_v15  ;;  %v8576_v15 = vld [vmem:[#allocation11_spill] sm:$0xff] }
 0xa1d   : > { %3962 = vadd.xlane.f32.xlu1 %v3961_v6  ;;  %v4381_v6 = vld [vmem:[%s4677_s18 + $0x10] sm:$0xff] }
 0xa1e   : > { %3816 = vmatmul.mubr.bf16.vlgmr.msra.gmra.mrb[32].mxu0 %v8562_v52 }
 0xa1f   : > { %507 = vadd.xlane.f32.xlu0 %v8563_v48  ;;  %3825 = vmatprep.mubr.bf16.mxu0 %v8564_v60  ;;  %v4382_v48 = vld [vmem:[%s4677_s18 + $0x18] sm:$0xff] }
 0xa21   : > { %513 = vadd.xlane.f32.xlu1 %v8565_v13 }
 0xa23   : > { %509 = vadd.xlane.f32.xlu0 %v8566_v46 }
 0xa25   : > { %517 = vadd.xlane.f32.xlu1 %v8567_v51  ;;  %v8578_v51 = vld [vmem:[#allocation12_spill] sm:$0xff] }
 0xa26   : > { %3826 = vmatmul.mubr.bf16.gmra.mrb[36].mxu0 %v8568_v58  ;;  %v8579_v58 = vld [vmem:[#allocation13_spill] sm:$0xff] }
 0xa27   : > { %511 = vadd.xlane.f32.xlu0 %v8569_v42  ;;  %3835 = vmatprep.mubr.bf16.mxu0 %v8564_v60 }
 0xa29   : > { %521 = vadd.xlane.f32.xlu1 %v8570_v26 }
 0xa2b   : > { %515 = vadd.xlane.f32.xlu0 %v8571_v62 }
 0xa2d   : > { %537 = vadd.xlane.f32.xlu1 %v528_v24 }
 0xa2e   : > { %3836 = vmatmul.mubr.bf16.gmra.mrb[40].mxu0 %v8572_v61  ;;  %v4384_v61 = vld [vmem:[%s4677_s18 + $0x38] sm:$0xff] }
 0xa2f   : > { %519 = vadd.xlane.f32.xlu0 %v8573_v37  ;;  %3845 = vmatprep.mubr.bf16.mxu0 %v8564_v60 }
 0xa31   : > { %541 = vadd.xlane.f32.xlu1 %v530_v25 }
 0xa33   : > { %535 = vadd.xlane.f32.xlu0 %v527_v1 }
 0xa35   : > { %545 = vadd.xlane.f32.xlu1 %v532_v21 }
 0xa36   : > { %3846 = vmatmul.mubr.bf16.gmra.mrb[44].mxu0 %v8574_v23 }
 0xa37   : > { %539 = vadd.xlane.f32.xlu0 %v529_v40 }
 0xa39   : > { %549 = vadd.xlane.f32.xlu1 %v534_v5  ;;  %v4385_v5 = vld [vmem:[%s4677_s18] sm:$0xff] }
 0xa3b   : > { %543 = vadd.xlane.f32.xlu0 %v531_v63 }
 0xa3f   : > { %547 = vadd.xlane.f32.xlu0 %v533_v32  ;;  %v8582_v32 = vld [vmem:[#allocation16_spill] sm:$0xff] }
 0xaa8   : > { %v3888_v2 = vpop.xlane.xlu0 %3887 }
 0xaa9   : > { %v3889_v57 = vrot.slane %v3888_v2, 4 }
 0xaaa   : > { %v3963_v22 = vpop.xlane.xlu1 %3962 }
 0xaab   : > { %v3890_v49 = vadd.f32 %v3889_v57, %v3888_v2  ;;  %v3964_v17 = vrot.slane %v3963_v22, 4  ;;  %v8583_v57 = vld [vmem:[#allocation112_spill] sm:$0xff] }
 0xaac   : > { %v7803_v54 = vpop.xlane.xlu0 %507 }
 0xaad   : > { %v3891_v3 = vrot.slane %v3890_v49, 2  ;;  %v3965_v45 = vadd.f32 %v3964_v17, %v3963_v22  ;;  %v2351_v11 = vmul.f32 %v7817_v56, %v7803_v54  ;;  %v8584_v17 = vld [vmem:[#allocation113_spill] sm:$0xff] }
 0xaae   : > { %v7805_v0 = vpop.xlane.xlu1 %513 }
 0xaaf   : > { %v3966_v33 = vrot.slane %v3965_v45, 2  ;;  %v3892_v53 = vadd.f32 %v3891_v3, %v3890_v49  ;;  %v2354_v16 = vmul.f32 %v7817_v56, %v7805_v0 }
 0xab0   : > { %v7807_v9 = vpop.xlane.xlu0 %509 }
 0xab1   : > { %v3893_v7 = vrot.slane %v3892_v53, 1  ;;  %v3967_v14 = vadd.f32 %v3966_v33, %v3965_v45  ;;  %v2352_v43 = vmul.f32 %v7817_v56, %v7807_v9  ;;  %v8585_v45 = vld [vmem:[#allocation114_spill] sm:$0xff] }
 0xab2   : > { %v7809_v12 = vpop.xlane.xlu1 %517 }
 0xab3   : > { %v3894_v28 = vadd.f32 %v3893_v7, %v3892_v53  ;;  %v3968_v18 = vrot.slane %v3967_v14, 1  ;;  %v2356_v35 = vmul.f32 %v7817_v56, %v7809_v12 }
 0xab4   : > { %v7813_v10 = vpop.xlane.xlu0 %511 }
 0xab5   : > { %4254 = vpush %v3894_v28  ;;  %v3969_v8 = vadd.f32 %v3968_v18, %v3967_v14  ;;  %v2353_v24 = vmul.f32 %v7817_v56, %v7813_v10  ;;  %v4387_v14 = vld [vmem:[%s4677_s18 + $0x50] sm:$0xff]  ;;  %v4388_v18 = vld [vmem:[%s4677_s18 + $0x58] sm:$0xff] }
 0xab6   : > { %v7815_v30 = vpop.xlane.xlu1 %521 }
 0xab7   : > { %4256 = vpush %v3969_v8  ;;  %v2358_v44 = vmul.f32 %v7817_v56, %v7815_v30 }
 0xab8   : > { %v7819_v59 = vpop.xlane.xlu0 %515 }
 0xab9   : > { %v2355_v7 = vmul.f32 %v7817_v56, %v7819_v59 }
 0xaba   : > { %v7823_v55 = vpop.xlane.xlu1 %537 }
 0xabb   : > { %v2360_v39 = vsub.f32 %v7823_v55, %v2352_v43 }
 0xabc   : > { %v7826_v36 = vpop.xlane.xlu0 %519 }
 0xabd   : > { %v2386_v47 = vadd.f32 %v8575_v20, %v2360_v39  ;;  %v2387_v50 = vadd.f32 %v8576_v15, %v2360_v39  ;;  %v4389_v39 = vld [vmem:[%s4677_s18 + $0x20] sm:$0xff]  ;;  %v4390_v20 = vld [vmem:[%s4677_s18 + $0x28] sm:$0xff]  ;;  %v8586_v15 = vld [vmem:[#allocation115_spill] sm:$0xff] }
 0xabe   : > { %v7832_v31 = vpop.xlane.xlu1 %541 }
 0xabf   : > { %v2402_v52 = vadd.f32 %v4381_v6, %v2386_v47  ;;  %v2403_v60 = vadd.f32 %v4382_v48, %v2387_v50  ;;  %v2362_v13 = vsub.f32 %v7832_v31, %v2354_v16  ;;  %v2357_v48 = vmul.f32 %v7817_v56, %v7826_v36 }
 0xac0   : > { %v7839_v46 = vpop.xlane.xlu0 %535 }
 0xac1   : > { %2418 = vst [vmem:[%s7843_s30 + $0x10] sm:$0xff] %v2402_v52  ;;  %2419 = vst [vmem:[%s7843_s30 + $0x18] sm:$0xff] %v2403_v60  ;;  %v2390_v29 = vadd.f32 %v8578_v51, %v2362_v13  ;;  %v2391_v42 = vadd.f32 %v8579_v58, %v2362_v13  ;;  %v2359_v26 = vsub.f32 %v7839_v46, %v2351_v11  ;;  %v8587_v11 = vld [vmem:[#allocation9_spill] sm:$0xff]  ;;  %v4391_v60 = vld [vmem:[%s4677_s18 + $0x70] sm:$0xff] }
 0xac2   : > { %v7854_v62 = vpop.xlane.xlu1 %545  ;;  %v4392_v51 = vld [vmem:[%s4677_s18 + $0x78] sm:$0xff] }
 0xac3   : > { %v2406_v25 = vadd.f32 %v4383_v38, %v2390_v29  ;;  %v2407_v37 = vadd.f32 %v4384_v61, %v2391_v42  ;;  %v2384_v1 = vadd.f32 %v8580_v19, %v2359_v26  ;;  %v2385_v21 = vadd.f32 %v8581_v4, %v2359_v26  ;;  %v8588_v58 = vld [vmem:[#allocation116_spill] sm:$0xff]  ;;  %v8589_v26 = vld [vmem:[#allocation117_spill] sm:$0xff]  ;;  %v4394_v61 = vld [vmem:[%s4677_s18 + $0x48] sm:$0xff] }
 0xac4   : > { %v2364_v41 = vsub.f32 %v7854_v62, %v2356_v35  ;;  %v7861_v40 = vpop.xlane.xlu0 %539  ;;  %v4393_v38 = vld [vmem:[%s4677_s18 + $0x40] sm:$0xff]  ;;  %v8590_v19 = vld [vmem:[#allocation118_spill] sm:$0xff]  ;;  %v8591_v4 = vld [vmem:[#allocation119_spill] sm:$0xff] }
 0xac5   : > { %2422 = vst [vmem:[%s7843_s30 + $0x30] sm:$0xff] %v2406_v25  ;;  %2423 = vst [vmem:[%s7843_s30 + $0x38] sm:$0xff] %v2407_v37  ;;  %v2400_v23 = vadd.f32 %v4385_v5, %v2384_v1  ;;  %v2401_v63 = vadd.f32 %v4386_v34, %v2385_v21  ;;  %v2361_v27 = vsub.f32 %v7861_v40, %v2353_v24  ;;  %v4396_v5 = vld [vmem:[%s4677_s18 + $0x68] sm:$0xff] }
 0xac6   : > { %v2394_v2 = vadd.f32 %v8582_v32, %v2364_v41  ;;  %v2395_v22 = vadd.f32 %v8583_v57, %v2364_v41  ;;  %v7872_v49 = vpop.xlane.xlu1 %549  ;;  %v4395_v41 = vld [vmem:[%s4677_s18 + $0x60] sm:$0xff] }
 0xac7   : > { %2416 = vst [vmem:[%s7843_s30] sm:$0xff] %v2400_v23  ;;  %2417 = vst [vmem:[%s7843_s30 + $0x8] sm:$0xff] %v2401_v63  ;;  %v2388_v3 = vadd.f32 %v8584_v17, %v2361_v27  ;;  %v2389_v33 = vadd.f32 %v8585_v45, %v2361_v27  ;;  %v2366_v53 = vsub.f32 %v7872_v49, %v2358_v44 }
 0xac8   : > { %v2410_v28 = vadd.f32 %v4387_v14, %v2394_v2  ;;  %v2411_v8 = vadd.f32 %v4388_v18, %v2395_v22  ;;  %v7883_v43 = vpop.xlane.xlu0 %543 }
 0xac9   : > { %v2404_v16 = vadd.f32 %v4389_v39, %v2388_v3  ;;  %v2405_v47 = vadd.f32 %v4390_v20, %v2389_v33  ;;  %v2398_v50 = vadd.f32 %v8586_v15, %v2366_v53  ;;  %v2399_v6 = vadd.f32 %v8587_v11, %v2366_v53 }
 0xaca   : > { %2426 = vst [vmem:[%s7843_s30 + $0x50] sm:$0xff] %v2410_v28  ;;  %2427 = vst [vmem:[%s7843_s30 + $0x58] sm:$0xff] %v2411_v8  ;;  %v2363_v52 = vsub.f32 %v7883_v43, %v2355_v7 }
 0xacb   : > { %2420 = vst [vmem:[%s7843_s30 + $0x20] sm:$0xff] %v2404_v16  ;;  %2421 = vst [vmem:[%s7843_s30 + $0x28] sm:$0xff] %v2405_v47  ;;  %v2414_v13 = vadd.f32 %v4391_v60, %v2398_v50  ;;  %v2415_v29 = vadd.f32 %v4392_v51, %v2399_v6 }
 0xacc   : > { %v2392_v42 = vadd.f32 %v8588_v58, %v2363_v52  ;;  %v2393_v35 = vadd.f32 %v8589_v26, %v2363_v52  ;;  %v7900_v24 = vpop.xlane.xlu0 %547 }
 0xacd   : > { %2430 = vst [vmem:[%s7843_s30 + $0x70] sm:$0xff] %v2414_v13  ;;  %2431 = vst [vmem:[%s7843_s30 + $0x78] sm:$0xff] %v2415_v29  ;;  %v2365_v56 = vsub.f32 %v7900_v24, %v2357_v48 }
 0xace   : > { %v2408_v25 = vadd.f32 %v4393_v38, %v2392_v42  ;;  %v2409_v37 = vadd.f32 %v4394_v61, %v2393_v35 }
 0xacf   : > { %v2396_v1 = vadd.f32 %v8590_v19, %v2365_v56  ;;  %v2397_v21 = vadd.f32 %v8591_v4, %v2365_v56 }
 0xad0   : > { %2424 = vst [vmem:[%s7843_s30 + $0x40] sm:$0xff] %v2408_v25  ;;  %2425 = vst [vmem:[%s7843_s30 + $0x48] sm:$0xff] %v2409_v37 }
 0xad1   : > { %v2412_v44 = vadd.f32 %v4395_v41, %v2396_v1  ;;  %v2413_v23 = vadd.f32 %v4396_v5, %v2397_v21 }
 0xad3   : > { %2428 = vst [vmem:[%s7843_s30 + $0x60] sm:$0xff] %v2412_v44  ;;  %2429 = vst [vmem:[%s7843_s30 + $0x68] sm:$0xff] %v2413_v23 }
 0xae6   : > { %s4255_s13 = spop %4254 }
 0xae7   : > { %s7915_s17 = smul.f32 3.0517578e-05, %s4255_s13 }
 0xae8   : > { %s4257_s16 = spop %4256 }
 0xae9   : > { %s3974_s21 = smul.f32 %s7915_s17, %s7915_s17 }
 0xaea   : > { %s3973_s25 = smul.f32 3.0517578e-05, %s4257_s16  ;;  %s4443_s16 = scalar_lea.vmem %s8005_s9, 4096 }
 0xaeb   : > { %p4444_p6 = scmp.ne.s32.totalorder %s8005_s9, %s4443_s16 }
 0xaec   : > { %s3975_s19 = ssub.f32 %s3973_s25, %s3974_s21  ;;  %s4521_s21 = smov [#allocation6]  }
 0xaed   : > { %p4445_p12 = pnand %p4444_p6, %p8592_p11  ;;  %s4447_s25 = sshll.u32 %s4521_s21, 4  ;;  %s4448_s25 = int_to_ptr.vmem [resolvable:$false] %s4447_s25 }
 0xaee   : > { %s3976_s12 = sadd.f32 1e-08, %s3975_s19  ;;  %s4449_s19 = scalar_lea.vmem %s4448_s25, 8192 }
 0xaef   : > { %p4446_p13 = pneg %p4445_p12  ;;  %p4450_p8 = scmp.lt.s32.totalorder %s8005_s9, %s4448_s25 }
 0xaf0   : > { %v3977_v34 = vstv %s3976_s12  ;;  %p4451_p10 = scmp.lt.s32.totalorder %s4449_s19, %s4443_s16 }
 0xaf1   : > { %4355 = vrsqrt.f32 %v3977_v34  ;;  %v3817_v63 = vpop.f32.mrb[32].mxu0  ;;  %v4397_v34 = vld [vmem:[%s4677_s18 + $0x80] sm:$0xff] }
 0xaf2   : > { %v3819_v27 = vpop.f32.mrb[33].mxu0  ;;  %p4452_p0 = por %p4451_p10, %p4450_p8 }
 0xaf3   : > { %v3821_v32 = vpop.f32.mrb[34].mxu0 }
 0xaf4   : > { %v3823_v2 = vpop.f32.mrb[35].mxu0  ;;  %p4453_p2 = pnand %p4452_p0, %p4446_p13 }
 0xaf9   : > { %v3827_v57 = vpop.f32.mrb[36].mxu0 }
 0xafa   : > { %v3829_v22 = vpop.f32.mrb[37].mxu0 }
 0xafb   : > { %v4356_v17 = vpop.eup %4355  ;;  %v3831_v3 = vpop.f32.mrb[38].mxu0 }
 0xafc   : > { %4258 = vpush %v4356_v17  ;;  %v3833_v45 = vpop.f32.mrb[39].mxu0 }
 0xb01   : > { %v3837_v33 = vpop.f32.mrb[40].mxu0 }
 0xb02   : > { %v3839_v53 = vpop.f32.mrb[41].mxu0 }
 0xb03   : > { %v3841_v7 = vpop.f32.mrb[42].mxu0 }
 0xb04   : > { %v3843_v14 = vpop.f32.mrb[43].mxu0 }
 0xb09   : > { %v3847_v28 = vpop.f32.mrb[44].mxu0 }
 0xb0a   : > { %v3849_v18 = vpop.f32.mrb[45].mxu0 }
 0xb0b   : > { %v7919_v8 = vpop.f32.mrb[46].mxu0 }
 0xb0c   : > { %v7921_v39 = vpop.f32.mrb[47].mxu0 }
 0xb2d   : > { %s4259_s23 = spop %4258 }
 0xb2e   : > { %s3980_s20 = smul.f32 %s4259_s23, %s7915_s17  ;;  %v7924_v16 = vstv %s4259_s23  ;;  %s8003_s17 = scalar_lea.hbm %s8060_s7, %s4223_s22 }
 0xb2f   : > { %v3999_v20 = vmul.f32 %v7924_v16, %v3817_v63  ;;  %v4000_v47 = vmul.f32 %v7924_v16, %v3819_v27  ;;  %v4001_v15 = vmul.f32 %v7924_v16, %v3821_v32  ;;  %v4002_v50 = vmul.f32 %v7924_v16, %v3823_v2  ;;  %v4398_v27 = vld [vmem:[%s4677_s18 + $0x88] sm:$0xff]  ;;  %v4399_v2 = vld [vmem:[%s4677_s18 + $0x90] sm:$0xff] }
 0xb30   : > { %v7930_v11 = vstv %s3980_s20  ;;  %v4003_v6 = vmul.f32 %v7924_v16, %v3827_v57  ;;  %v4004_v52 = vmul.f32 %v7924_v16, %v3829_v22  ;;  %v4005_v48 = vmul.f32 %v7924_v16, %v3831_v3  ;;  %v4400_v22 = vld [vmem:[%s4677_s18 + $0x98] sm:$0xff]  ;;  %v4401_v3 = vld [vmem:[%s4677_s18 + $0xa0] sm:$0xff] }
 0xb31   : > { %v3982_v60 = vmul.f32 %v7930_v11, %v7803_v54  ;;  %v3983_v13 = vmul.f32 %v7930_v11, %v7807_v9  ;;  %v3984_v51 = vmul.f32 %v7930_v11, %v7813_v10  ;;  %v3985_v29 = vmul.f32 %v7930_v11, %v7805_v0 }
 0xb32   : > { %v3986_v58 = vmul.f32 %v7930_v11, %v7819_v59  ;;  %v3987_v42 = vmul.f32 %v7930_v11, %v7809_v12  ;;  %v3988_v26 = vmul.f32 %v7930_v11, %v7826_v36  ;;  %v4006_v54 = vmul.f32 %v7924_v16, %v3833_v45 }
 0xb33   : > { %v3990_v35 = vsub.f32 %v7839_v46, %v3982_v60  ;;  %v3991_v9 = vsub.f32 %v7823_v55, %v3983_v13  ;;  %v3992_v10 = vsub.f32 %v7861_v40, %v3984_v51  ;;  %v3993_v56 = vsub.f32 %v7832_v31, %v3985_v29  ;;  %v4409_v13 = vld [vmem:[%s4677_s18 + $0xe0] sm:$0xff]  ;;  %v4410_v29 = vld [vmem:[%s4677_s18 + $0xe8] sm:$0xff] }
 0xb34   : > { %v3994_v0 = vsub.f32 %v7883_v43, %v3986_v58  ;;  %v3995_v59 = vsub.f32 %v7854_v62, %v3987_v42  ;;  %v3996_v38 = vsub.f32 %v7900_v24, %v3988_v26  ;;  %v4007_v12 = vmul.f32 %v7924_v16, %v3837_v33  ;;  %v4402_v33 = vld [vmem:[%s4677_s18 + $0xa8] sm:$0xff] }
 0xb35   : > { %v4008_v36 = vmul.f32 %v7924_v16, %v3839_v53  ;;  %v4009_v25 = vmul.f32 %v7924_v16, %v3841_v7  ;;  %v4010_v46 = vmul.f32 %v7924_v16, %v3843_v14  ;;  %v4011_v55 = vmul.f32 %v7924_v16, %v3847_v28  ;;  %v4403_v7 = vld [vmem:[%s4677_s18 + $0xb0] sm:$0xff]  ;;  %v4404_v28 = vld [vmem:[%s4677_s18 + $0xb8] sm:$0xff] }
 0xb36   : > { %v4012_v40 = vmul.f32 %v7924_v16, %v3849_v18  ;;  %v4015_v31 = vadd.f32 %v3999_v20, %v3990_v35  ;;  %v4016_v43 = vadd.f32 %v4000_v47, %v3990_v35  ;;  %v4017_v61 = vadd.f32 %v4001_v15, %v3991_v9  ;;  %v4405_v20 = vld [vmem:[%s4677_s18 + $0xc0] sm:$0xff]  ;;  %v4406_v15 = vld [vmem:[%s4677_s18 + $0xc8] sm:$0xff] }
 0xb37   : > { %v4018_v62 = vadd.f32 %v4002_v50, %v3991_v9  ;;  %v4019_v24 = vadd.f32 %v4003_v6, %v3992_v10  ;;  %v4020_v37 = vadd.f32 %v4004_v52, %v3992_v10  ;;  %v4021_v19 = vadd.f32 %v4005_v48, %v3993_v56  ;;  %v4407_v6 = vld [vmem:[%s4677_s18 + $0xd0] sm:$0xff]  ;;  %v4408_v48 = vld [vmem:[%s4677_s18 + $0xd8] sm:$0xff] }
 0xb38   : > { %v4022_v1 = vadd.f32 %v4006_v54, %v3993_v56  ;;  %v4023_v4 = vadd.f32 %v4007_v12, %v3994_v0  ;;  %v4024_v21 = vadd.f32 %v4008_v36, %v3994_v0  ;;  %v4025_v41 = vadd.f32 %v4009_v25, %v3995_v59  ;;  %v4412_v9 = vld [vmem:[%s4677_s18 + $0xf8] sm:$0xff] }
 0xb39   : > { %v4026_v44 = vadd.f32 %v4010_v46, %v3995_v59  ;;  %v4027_v5 = vadd.f32 %v4011_v55, %v3996_v38  ;;  %v4028_v23 = vadd.f32 %v4012_v40, %v3996_v38  ;;  %v4031_v63 = vadd.f32 %v4397_v34, %v4015_v31 }
 0xb3a   : > { %v4032_v32 = vadd.f32 %v4398_v27, %v4016_v43  ;;  %v4033_v57 = vadd.f32 %v4399_v2, %v4017_v61  ;;  %v4034_v17 = vadd.f32 %v4400_v22, %v4018_v62  ;;  %v4035_v45 = vadd.f32 %v4401_v3, %v4019_v24 }
 0xb3b   : > { %v4036_v53 = vadd.f32 %v4402_v33, %v4020_v37  ;;  %v4037_v14 = vadd.f32 %v4403_v7, %v4021_v19  ;;  %v4038_v18 = vadd.f32 %v4404_v28, %v4022_v1  ;;  %v4039_v47 = vadd.f32 %v4405_v20, %v4023_v4  ;;  %4198 = vst [vmem:[%s7843_s30 + $0x80] sm:$0xff] %v4031_v63 }
 0xb3c   : > { %v4040_v50 = vadd.f32 %v4406_v15, %v4024_v21  ;;  %v4041_v52 = vadd.f32 %v4407_v6, %v4025_v41  ;;  %v4042_v60 = vadd.f32 %v4408_v48, %v4026_v44  ;;  %v4043_v51 = vadd.f32 %v4409_v13, %v4027_v5  ;;  %4199 = vst [vmem:[%s7843_s30 + $0x88] sm:$0xff] %v4032_v32 }
 0xb3d   : > { %4200 = vst [vmem:[%s7843_s30 + $0x90] sm:$0xff] %v4033_v57  ;;  %4201 = vst [vmem:[%s7843_s30 + $0x98] sm:$0xff] %v4034_v17  ;;  %v4044_v58 = vadd.f32 %v4410_v29, %v4028_v23  ;;  %v3989_v42 = vmul.f32 %v7930_v11, %v7815_v30  ;;  %v4013_v54 = vmul.f32 %v7924_v16, %v7919_v8 }
 0xb3e   : > { %4202 = vst [vmem:[%s7843_s30 + $0xa0] sm:$0xff] %v4035_v45  ;;  %4203 = vst [vmem:[%s7843_s30 + $0xa8] sm:$0xff] %v4036_v53  ;;  %v4014_v35 = vmul.f32 %v7924_v16, %v7921_v39 }
 0xb3f   : > { %4204 = vst [vmem:[%s7843_s30 + $0xb0] sm:$0xff] %v4037_v14  ;;  %4205 = vst [vmem:[%s7843_s30 + $0xb8] sm:$0xff] %v4038_v18  ;;  %v3997_v26 = vsub.f32 %v7872_v49, %v3989_v42  ;;  %v4411_v49 = vld [vmem:[%s4677_s18 + $0xf0] sm:$0xff] }
 0xb40   : > { %4206 = vst [vmem:[%s7843_s30 + $0xc0] sm:$0xff] %v4039_v47  ;;  %4207 = vst [vmem:[%s7843_s30 + $0xc8] sm:$0xff] %v4040_v50 }
 0xb41   : > { %4208 = vst [vmem:[%s7843_s30 + $0xd0] sm:$0xff] %v4041_v52  ;;  %4209 = vst [vmem:[%s7843_s30 + $0xd8] sm:$0xff] %v4042_v60  ;;  %v4029_v30 = vadd.f32 %v4013_v54, %v3997_v26  ;;  %v4030_v11 = vadd.f32 %v4014_v35, %v3997_v26 }
 0xb42   : > { %4210 = vst [vmem:[%s7843_s30 + $0xe0] sm:$0xff] %v4043_v51  ;;  %4211 = vst [vmem:[%s7843_s30 + $0xe8] sm:$0xff] %v4044_v58 }
 0xb43   : > { %v4045_v8 = vadd.f32 %v4411_v49, %v4029_v30  ;;  %v4046_v10 = vadd.f32 %v4412_v9, %v4030_v11 }
 0xb45   : > { %4212 = vst [vmem:[%s7843_s30 + $0xf0] sm:$0xff] %v4045_v8  ;;  %4213 = vst [vmem:[%s7843_s30 + $0xf8] sm:$0xff] %v4046_v10 }
 0xb46   : > { %4456 = shalt.err (!%p4453_p2)
}
 0xb47   : > { %s4457_s18 = scalar_lea.hbm %s8003_s17, 4096  ;;  %s4461_s23 = scalar_lea.hbm %s8060_s7, 8192 }
 0xb48   : > { %p4458_p4 = scmp.ne.s32.totalorder %s8003_s17, %s4457_s18  ;;  %p4462_p9 = scmp.lt.u32.totalorder %s8003_s17, %s8060_s7 }
 0xb49   : > { %p4463_p1 = scmp.lt.u32.totalorder %s4461_s23, %s4457_s18  ;;  %p4465_p6 = scmp.lt.u32.totalorder %s4457_s18, %s8003_s17 }
 0xb4a   : > { %p4459_p5 = pnand %p4458_p4, %p8592_p11 }
 0xb4b   : > { %p4464_p3 = por %p4463_p1, %p4462_p9 }
 0xb4c   : > { %p4460_p7 = pneg %p4459_p5 }
 0xb4d   : > { %p4466_p12 = por %p4465_p6, %p4464_p3 }
 0xb4f   : > { %p4467_p13 = pnand %p4466_p12, %p4460_p7 }
 0xb51   : > { %4470 = shalt.err (!%p4467_p13)
}
 0xb52   : > { %s4522_s24 = smov 256   ;;  %s4523_s13 = smov 16  }
 0xb53   : > { %4262 = dma.vmem_to_hbm [thread:$0]  (%p8592_p11), %s8005_s9, 4096, %s8003_s17, %s4065_s6, %s4522_s24, %s4522_s24, %s4523_s13  }
 0xb54 PF: > { %s4094_s16 = sand.u32 1, %s4497_s26   ;;  %p8593_p8 = scmp.ne.s32.totalorder %s8251_s15, 0 }
 0xb55   : > { %p8594_p10 = scmp.ge.s32.totalorder %s4509_s29, 2  ;;  %s4095_s21 = scalar_lea.sflag [#allocation5], %s4094_s16 }
 0xb57   : > { %p4269_p0 = pnand %p8594_p10, %p8593_p8 }
 0xb59   : > { %4492 = dma.done.wait (!%p4269_p0), %s4095_s21, 4096  }
 0xb5a   : > { %4494 = vsyncadd (!%p4269_p0), %s4095_s21, 4294963200  ;;  %p21_p2 = scmp.ge.s32.totalorder %s4592_s8, 4   ;;  %s8595_s26 = smov %s4501_s27 }
 0xb5b   : > { %s8596_s27 = smov %s4505_s28  ;;  %s8597_s28 = smov %s4604_s11 }
 0xb5c   : > { %s8598_s29 = smov %s4592_s8  ;;  %23 = sbr.rel (!%p21_p2) target bundleno = 7 (0x7), region = 95 }
 0xb63   :  { %4100 = vsyncpa [#allocation4], 1 }
 0xb64   :  { %4102 = vsyncpa [#allocation4 + $0x1], 1 }
 0xb65   :  { %4103 = vsyncpa [#allocation5], 1 }
 0xb66   :  { %4105 = vsyncpa [#allocation5 + $0x1], 1 }

</bundles_post_ra>
